<compile_context>
chip_gen: v5e
topology: v5e:2x2
jax: 0.10.0
libtpu: 0.0.40
codegen_flags: <defaults>
</compile_context>

<pallas_src>
import functools
import math

import jax
import jax.numpy as jnp
from jax.experimental import pallas as pl
from jax.experimental.pallas import tpu as pltpu

F32 = jnp.float32
BF16 = jnp.bfloat16
EPS = 1e-5


# ----------------------------------------------------------------------------
# Kernels
# ----------------------------------------------------------------------------
def _conv3x3_kernel(xw_ref, w_ref, scale_ref, shift_ref, y_ref, stat_ref,
                    *, apply_bn, nt, h):
    """One grid step = one (batch, row-tile) window.

    xw_ref   : (1, TH+2, W+2, Cin) zero-padded activation window (2-row halo), f32.
               If apply_bn, this is the *pre-BN* output of the previous conv.
    w_ref    : (9*Cin, Cout)       conv weights, tap-major (dy, dx, cin), bf16.
    scale_ref/shift_ref : (1, Cin) fused BN scale/shift for the input (unused if !apply_bn).
    y_ref    : (1, TH*W, Cout)     pre-BN conv output tile, f32.
    stat_ref : (1, 2, Cout)        per-tile [sum ; sum-of-squares] of the conv output.
    """
    th = xw_ref.shape[1] - 2
    wd = xw_ref.shape[2] - 2
    cin = xw_ref.shape[3]

    xw = xw_ref[0]                                              # (TH+2, W+2, Cin) f32
    if apply_bn:
        scale = scale_ref[...].reshape(1, 1, cin)
        shift = shift_ref[...].reshape(1, 1, cin)
        a = jnp.maximum(xw * scale + shift, 0.0)                # BN + ReLU of prev layer
        # Re-zero the conv "same" padding border (normalisation turned the padded zeros
        # into relu(shift), which is generally nonzero).
        tile = pl.program_id(0) % nt
        row = jax.lax.broadcasted_iota(jnp.int32, (th + 2, wd + 2, 1), 0) + tile * th
        col = jax.lax.broadcasted_iota(jnp.int32, (th + 2, wd + 2, 1), 1)
        interior = (row > 0) & (row < h + 1) & (col > 0) & (col < wd + 1)
        a = jnp.where(interior, a, 0.0)
    else:
        a = xw

    # Lane-dense im2col block (TH*W, 9*Cin) built in VMEM from shifted slices.
    taps = []
    for dy in range(3):
        for dx in range(3):
            taps.append(a[dy:dy + th, dx:dx + wd, :].reshape(th * wd, cin))
    patches = jnp.concatenate(taps, axis=-1)                    # (TH*W, 9*Cin)

    # Single MXU matmul, bf16 operands, f32 accumulation.
    acc = jnp.dot(patches.astype(BF16), w_ref[...],
                  preferred_element_type=F32)                   # (TH*W, Cout) f32
    y_ref[0] = acc

    # Per-tile BatchNorm statistics (f32); reduced across tiles in the wrapper.
    s = jnp.sum(acc, axis=0, keepdims=True)
    ss = jnp.sum(acc * acc, axis=0, keepdims=True)
    stat_ref[0] = jnp.concatenate([s, ss], axis=0)              # (2, Cout)


def _bn_relu_kernel(y_ref, scale_ref, shift_ref, o_ref):
    """Elementwise y*scale + shift, then ReLU. y/o: (TR, W*C), scale/shift: (1, W*C)."""
    o_ref[...] = jnp.maximum(y_ref[...] * scale_ref[...] + shift_ref[...], 0.0)


# ----------------------------------------------------------------------------
# Wrappers
# ----------------------------------------------------------------------------
def _pick_tile(total, preferred):
    for t in preferred:
        if t <= total and total % t == 0:
            return t
    return total


def conv3x3_stats(x, w_flat, scale=None, shift=None):
    """3x3 'same' conv (no bias) with optional fused input BN+ReLU, plus batch stats.

    x      : (N, H, W, Cin) f32 — raw input (scale is None) or the *pre-BN* output of the
             previous conv (scale/shift given → applied + ReLU inside the kernel).
    w_flat : (9*Cin, Cout) bf16, tap-major (dy, dx, cin).
    Returns: y (N, H, W, Cout) f32 pre-BN conv output, stat (2, Cout) f32 [sum; sumsq].
    """
    n, h, w, cin = x.shape
    cout = w_flat.shape[-1]
    th = _pick_tile(h, (8, 16, 32, 4, 2))
    nt = h // th
    apply_bn = scale is not None

    xp = jnp.pad(x, ((0, 0), (1, 1), (1, 1), (0, 0)))
    # Overlapping row windows with a 2-row halo: ~(TH+2)/TH input duplication instead of
    # the 9x of a materialised im2col tensor.
    # TODO(synk): express the halo with an overlapping (pl.Element) input BlockSpec to
    # avoid even this small duplication.
    win = jnp.stack([xp[:, i * th:i * th + th + 2] for i in range(nt)], axis=1)
    win = win.reshape(n * nt, th + 2, w + 2, cin)

    if not apply_bn:   # dummies; statically unused inside the kernel
        scale = jnp.ones((cin,), F32)
        shift = jnp.zeros((cin,), F32)

    kernel = functools.partial(_conv3x3_kernel, apply_bn=apply_bn, nt=nt, h=h)

    y, stats = pl.pallas_call(
        kernel,
        grid=(n * nt,),
        in_specs=[
            pl.BlockSpec((1, th + 2, w + 2, cin), lambda i: (i, 0, 0, 0)),
            pl.BlockSpec((9 * cin, cout), lambda i: (0, 0)),    # weights stay VMEM-resident
            pl.BlockSpec((1, cin), lambda i: (0, 0)),
            pl.BlockSpec((1, cin), lambda i: (0, 0)),
        ],
        out_specs=(
            pl.BlockSpec((1, th * w, cout), lambda i: (i, 0, 0)),
            pl.BlockSpec((1, 2, cout), lambda i: (i, 0, 0)),    # per-tile stats
        ),
        out_shape=(
            jax.ShapeDtypeStruct((n * nt, th * w, cout), F32),
            jax.ShapeDtypeStruct((n * nt, 2, cout), F32),
        ),
        compiler_params=pltpu.CompilerParams(
            dimension_semantics=("parallel",)),                 # independent tiles
    )(win, w_flat, scale.reshape(1, cin), shift.reshape(1, cin))

    return y.reshape(n, h, w, cout), stats.sum(axis=0)


def _bn_scale_shift(stat, gamma, beta, count):
    """Training-mode BatchNorm: batch mean, biased variance → affine scale/shift."""
    mean = stat[0] / count
    var = jnp.maximum(stat[1] / count - mean * mean, 0.0)
    scale = gamma * jax.lax.rsqrt(var + EPS)
    shift = beta - mean * scale
    return scale, shift


def batchnorm_relu(y, scale, shift):
    """BN affine + ReLU on a lane-dense (N*H, W*C) view."""
    n, h, w, c = y.shape
    rows, cols = n * h, w * c
    tr = _pick_tile(rows, (512, 256, 128, 64, 32, 16, 8, 4, 2))

    out = pl.pallas_call(
        _bn_relu_kernel,
        grid=(rows // tr,),
        in_specs=[
            pl.BlockSpec((tr, cols), lambda i: (i, 0)),
            pl.BlockSpec((1, cols), lambda i: (0, 0)),
            pl.BlockSpec((1, cols), lambda i: (0, 0)),
        ],
        out_specs=pl.BlockSpec((tr, cols), lambda i: (i, 0)),
        out_shape=jax.ShapeDtypeStruct((rows, cols), F32),
        compiler_params=pltpu.CompilerParams(
            dimension_semantics=("parallel",)),
    )(y.reshape(rows, cols),
      jnp.tile(scale, (w,)).reshape(1, cols),
      jnp.tile(shift, (w,)).reshape(1, cols))

    return out.reshape(n, h, w, c)


def conv_block_forward(params, x_nchw):
    """Matches conv_block.forward: (Conv3x3 + BN + ReLU) x 2.  x: NCHW -> NCHW."""
    x = jnp.transpose(x_nchw.astype(F32), (0, 2, 3, 1))         # NCHW -> NHWC
    n, h, w, _ = x.shape
    count = jnp.float32(n * h * w)

    # Layer 1: conv (pre-BN output) + batch statistics.
    y1, stat1 = conv3x3_stats(x, params["w1"])
    scale1, shift1 = _bn_scale_shift(stat1, params["gamma1"], params["beta1"], count)

    # Layer 2: BN1 + ReLU1 fused into the conv kernel (no HBM round trip for a1).
    y2, stat2 = conv3x3_stats(y1, params["w2"], scale1, shift1)
    scale2, shift2 = _bn_scale_shift(stat2, params["gamma2"], params["beta2"], count)

    # Final BN2 + ReLU2.
    out = batchnorm_relu(y2, scale2, shift2)
    return jnp.transpose(out, (0, 3, 1, 2))                     # NHWC -> NCHW


# ----------------------------------------------------------------------------
# Parameter init (PyTorch-style uniform bounds; BN gamma=1, beta=0)
# ----------------------------------------------------------------------------
def init_conv_block(key, ch_in, ch_out):
    def conv_w(k, cin, cout):
        bound = 1.0 / math.sqrt(cin * 9)
        w = jax.random.uniform(k, (3, 3, cin, cout), F32, -bound, bound)
        # (dy, dx, cin, cout) -> (9*cin, cout); tap order matches the in-kernel concat.
        return w.reshape(9 * cin, cout).astype(BF16)

    # NOTE: the PyTorch Conv2d bias (bias=True) is omitted on purpose — it is exactly
    # cancelled by the following BatchNorm's mean subtraction.
    k1, k2 = jax.random.split(key)
    return {
        "w1": conv_w(k1, ch_in, ch_out),
        "gamma1": jnp.ones((ch_out,), F32),
        "beta1": jnp.zeros((ch_out,), F32),
        "w2": conv_w(k2, ch_out, ch_out),
        "gamma2": jnp.ones((ch_out,), F32),
        "beta2": jnp.zeros((ch_out,), F32),
    }


# ----------------------------------------------------------------------------
# Plain-JAX reference (for a sanity check only)
# ----------------------------------------------------------------------------
def _reference_forward(params, x_nchw):
    x = jnp.transpose(x_nchw.astype(F32), (0, 2, 3, 1))

    def layer(x, w_flat, gamma, beta):
        cin, cout = x.shape[-1], w_flat.shape[-1]
        w = w_flat.astype(F32).reshape(3, 3, cin, cout)
        y = jax.lax.conv_general_dilated(
            x, w, window_strides=(1, 1), padding="SAME",
            dimension_numbers=("NHWC", "HWIO", "NHWC"))
        mean = y.mean(axis=(0, 1, 2))
        var = y.var(axis=(0, 1, 2))
        return jnp.maximum((y - mean) * gamma * jax.lax.rsqrt(var + EPS) + beta, 0.0)

    x = layer(x, params["w1"], params["gamma1"], params["beta1"])
    x = layer(x, params["w2"], params["gamma2"], params["beta2"])
    return jnp.transpose(x, (0, 3, 1, 2))


# ----------------------------------------------------------------------------
if __name__ == "__main__":
    key = jax.random.PRNGKey(0)
    kp, kx = jax.random.split(key)

    ch_in, ch_out = 4, 32
    params = init_conv_block(kp, ch_in, ch_out)
    x = jax.random.normal(kx, (2, ch_in, 16, 16), F32)          # NCHW

    fwd = jax.jit(conv_block_forward)
    out = jax.block_until_ready(fwd(params, x))

    assert out.shape == (2, ch_out, 16, 16), out.shape
    assert bool(jnp.isfinite(out).all())

    ref = jax.block_until_ready(_reference_forward(params, x))
    max_err = float(jnp.max(jnp.abs(out - ref)))
    assert max_err < 5e-2, f"max abs error vs reference: {max_err}"

    print("KERNEL_OK")
</pallas_src>

<mosaic_0001>
module attributes {stable_mosaic.version = 11 : i64} {
  func.func @_conv3x3_kernel(%arg0: i32, %arg1: memref<1x10x18x4xf32, #tpu.memory_space<vmem>>, %arg2: memref<36x32xbf16, #tpu.memory_space<vmem>>, %arg3: memref<1x4xf32, #tpu.memory_space<vmem>>, %arg4: memref<1x4xf32, #tpu.memory_space<vmem>>, %arg5: memref<1x128x32xf32, #tpu.memory_space<vmem>>, %arg6: memref<1x2x32xf32, #tpu.memory_space<vmem>>) attributes {dimension_semantics = [#tpu.dimension_semantics<parallel>], iteration_bounds = array<i64: 4>, scalar_prefetch = 0 : i64, scratch_operands = 0 : i64, tpu.core_type = #tpu.core_type<tc>, window_params = [{transform_indices = @transform_0, window_bounds = array<i64: 1, 10, 18, 4>}, {pipeline_mode = #tpu.pipeline_mode<synchronous>, transform_indices = @transform_1, window_bounds = array<i64: 36, 32>}, {pipeline_mode = #tpu.pipeline_mode<synchronous>, transform_indices = @transform_2, window_bounds = array<i64: 1, 4>}, {pipeline_mode = #tpu.pipeline_mode<synchronous>, transform_indices = @transform_3, window_bounds = array<i64: 1, 4>}, {transform_indices = @transform_4, window_bounds = array<i64: 1, 128, 32>}, {transform_indices = @transform_5, window_bounds = array<i64: 1, 2, 32>}]} {
    %c0 = arith.constant 0 : index
    %c0_0 = arith.constant 0 : index
    %c0_1 = arith.constant 0 : index
    %c0_2 = arith.constant 0 : index
    %0 = vector.load %arg1[%c0, %c0_0, %c0_1, %c0_2] : memref<1x10x18x4xf32, #tpu.memory_space<vmem>>, vector<1x10x18x4xf32>
    %1 = vector.shape_cast %0 : vector<1x10x18x4xf32> to vector<10x18x4xf32>
    %2 = vector.extract_strided_slice %1 {offsets = [0, 0, 0], sizes = [8, 16, 4], strides = [1, 1, 1]} : vector<10x18x4xf32> to vector<8x16x4xf32>
    %3 = vector.shape_cast %2 : vector<8x16x4xf32> to vector<128x4xf32>
    %4 = vector.extract_strided_slice %1 {offsets = [0, 1, 0], sizes = [8, 16, 4], strides = [1, 1, 1]} : vector<10x18x4xf32> to vector<8x16x4xf32>
    %5 = vector.shape_cast %4 : vector<8x16x4xf32> to vector<128x4xf32>
    %6 = vector.extract_strided_slice %1 {offsets = [0, 2, 0], sizes = [8, 16, 4], strides = [1, 1, 1]} : vector<10x18x4xf32> to vector<8x16x4xf32>
    %7 = vector.shape_cast %6 : vector<8x16x4xf32> to vector<128x4xf32>
    %8 = vector.extract_strided_slice %1 {offsets = [1, 0, 0], sizes = [8, 16, 4], strides = [1, 1, 1]} : vector<10x18x4xf32> to vector<8x16x4xf32>
    %9 = vector.shape_cast %8 : vector<8x16x4xf32> to vector<128x4xf32>
    %10 = vector.extract_strided_slice %1 {offsets = [1, 1, 0], sizes = [8, 16, 4], strides = [1, 1, 1]} : vector<10x18x4xf32> to vector<8x16x4xf32>
    %11 = vector.shape_cast %10 : vector<8x16x4xf32> to vector<128x4xf32>
    %12 = vector.extract_strided_slice %1 {offsets = [1, 2, 0], sizes = [8, 16, 4], strides = [1, 1, 1]} : vector<10x18x4xf32> to vector<8x16x4xf32>
    %13 = vector.shape_cast %12 : vector<8x16x4xf32> to vector<128x4xf32>
    %14 = vector.extract_strided_slice %1 {offsets = [2, 0, 0], sizes = [8, 16, 4], strides = [1, 1, 1]} : vector<10x18x4xf32> to vector<8x16x4xf32>
    %15 = vector.shape_cast %14 : vector<8x16x4xf32> to vector<128x4xf32>
    %16 = vector.extract_strided_slice %1 {offsets = [2, 1, 0], sizes = [8, 16, 4], strides = [1, 1, 1]} : vector<10x18x4xf32> to vector<8x16x4xf32>
    %17 = vector.shape_cast %16 : vector<8x16x4xf32> to vector<128x4xf32>
    %18 = vector.extract_strided_slice %1 {offsets = [2, 2, 0], sizes = [8, 16, 4], strides = [1, 1, 1]} : vector<10x18x4xf32> to vector<8x16x4xf32>
    %19 = vector.shape_cast %18 : vector<8x16x4xf32> to vector<128x4xf32>
    %20 = tpu.concatenate %3, %5, %7, %9, %11, %13, %15, %17, %19 in 1 : vector<128x4xf32>, vector<128x4xf32>, vector<128x4xf32>, vector<128x4xf32>, vector<128x4xf32>, vector<128x4xf32>, vector<128x4xf32>, vector<128x4xf32>, vector<128x4xf32> -> vector<128x36xf32>
    %21 = arith.truncf %20 : vector<128x36xf32> to vector<128x36xbf16>
    %c0_3 = arith.constant 0 : index
    %c0_4 = arith.constant 0 : index
    %22 = vector.load %arg2[%c0_3, %c0_4] : memref<36x32xbf16, #tpu.memory_space<vmem>>, vector<36x32xbf16>
    %cst = arith.constant dense<0.000000e+00> : vector<128x32xf32>
    %23 = tpu.matmul %21, %22, %cst {dimension_numbers = #tpu.dot_dimension_numbers<[1], [0], [0], [1], [0, 0, 1, 1], [], []>} : vector<128x36xbf16>, vector<36x32xbf16>, vector<128x32xf32> -> vector<128x32xf32>
    %c0_5 = arith.constant 0 : index
    %c0_6 = arith.constant 0 : index
    %c0_7 = arith.constant 0 : index
    %24 = vector.load %arg5[%c0_5, %c0_6, %c0_7] : memref<1x128x32xf32, #tpu.memory_space<vmem>>, vector<1x128x32xf32>
    %25 = vector.shape_cast %24 : vector<1x128x32xf32> to vector<128x32xf32>
    %26 = vector.shape_cast %23 : vector<128x32xf32> to vector<1x128x32xf32>
    tpu.vector_store %arg5[%c0_5, %c0_6, %c0_7], %26 {strides = array<i32>} : memref<1x128x32xf32, #tpu.memory_space<vmem>>, vector<1x128x32xf32>,
    %cst_8 = arith.constant dense<0.000000e+00> : vector<32xf32>
    %27 = vector.multi_reduction <add>, %23, %cst_8 [0] : vector<128x32xf32> to vector<32xf32>
    %28 = vector.shape_cast %27 : vector<32xf32> to vector<1x32xf32>
    %29 = arith.mulf %23, %23 : vector<128x32xf32>
    %cst_9 = arith.constant dense<0.000000e+00> : vector<32xf32>
    %30 = vector.multi_reduction <add>, %29, %cst_9 [0] : vector<128x32xf32> to vector<32xf32>
    %31 = vector.shape_cast %30 : vector<32xf32> to vector<1x32xf32>
    %32 = tpu.concatenate %28, %31 in 0 : vector<1x32xf32>, vector<1x32xf32> -> vector<2x32xf32>
    %c0_10 = arith.constant 0 : index
    %c0_11 = arith.constant 0 : index
    %c0_12 = arith.constant 0 : index
    %33 = vector.load %arg6[%c0_10, %c0_11, %c0_12] : memref<1x2x32xf32, #tpu.memory_space<vmem>>, vector<1x2x32xf32>
    %34 = vector.shape_cast %33 : vector<1x2x32xf32> to vector<2x32xf32>
    %35 = vector.shape_cast %32 : vector<2x32xf32> to vector<1x2x32xf32>
    tpu.vector_store %arg6[%c0_10, %c0_11, %c0_12], %35 {strides = array<i32>} : memref<1x2x32xf32, #tpu.memory_space<vmem>>, vector<1x2x32xf32>,
    return
  }
  func.func @transform_0(%arg0: i32) -> (i32, i32, i32, i32) {
    %c0_i32 = arith.constant 0 : i32
    %c0_i32_0 = arith.constant 0 : i32
    %c0_i32_1 = arith.constant 0 : i32
    %c0_i32_2 = arith.constant 0 : i32
    return %arg0, %c0_i32, %c0_i32_0, %c0_i32_1 : i32, i32, i32, i32
  }
  func.func @transform_1(%arg0: i32) -> (i32, i32) {
    %c0_i32 = arith.constant 0 : i32
    %c0_i32_0 = arith.constant 0 : i32
    %c0_i32_1 = arith.constant 0 : i32
    return %c0_i32, %c0_i32_0 : i32, i32
  }
  func.func @transform_2(%arg0: i32) -> (i32, i32) {
    %c0_i32 = arith.constant 0 : i32
    %c0_i32_0 = arith.constant 0 : i32
    %c0_i32_1 = arith.constant 0 : i32
    return %c0_i32, %c0_i32_0 : i32, i32
  }
  func.func @transform_3(%arg0: i32) -> (i32, i32) {
    %c0_i32 = arith.constant 0 : i32
    %c0_i32_0 = arith.constant 0 : i32
    %c0_i32_1 = arith.constant 0 : i32
    return %c0_i32, %c0_i32_0 : i32, i32
  }
  func.func @transform_4(%arg0: i32) -> (i32, i32, i32) {
    %c0_i32 = arith.constant 0 : i32
    %c0_i32_0 = arith.constant 0 : i32
    %c0_i32_1 = arith.constant 0 : i32
    return %arg0, %c0_i32, %c0_i32_0 : i32, i32, i32
  }
  func.func @transform_5(%arg0: i32) -> (i32, i32, i32) {
    %c0_i32 = arith.constant 0 : i32
    %c0_i32_0 = arith.constant 0 : i32
    %c0_i32_1 = arith.constant 0 : i32
    return %arg0, %c0_i32, %c0_i32_0 : i32, i32, i32
  }
}

module attributes {stable_mosaic.version = 11 : i64} {
  func.func @_conv3x3_kernel(%arg0: i32, %arg1: memref<1x10x18x32xf32, #tpu.memory_space<vmem>>, %arg2: memref<288x32xbf16, #tpu.memory_space<vmem>>, %arg3: memref<1x32xf32, #tpu.memory_space<vmem>>, %arg4: memref<1x32xf32, #tpu.memory_space<vmem>>, %arg5: memref<1x128x32xf32, #tpu.memory_space<vmem>>, %arg6: memref<1x2x32xf32, #tpu.memory_space<vmem>>) attributes {dimension_semantics = [#tpu.dimension_semantics<parallel>], iteration_bounds = array<i64: 4>, scalar_prefetch = 0 : i64, scratch_operands = 0 : i64, tpu.core_type = #tpu.core_type<tc>, window_params = [{transform_indices = @transform_0, window_bounds = array<i64: 1, 10, 18, 32>}, {pipeline_mode = #tpu.pipeline_mode<synchronous>, transform_indices = @transform_1, window_bounds = array<i64: 288, 32>}, {pipeline_mode = #tpu.pipeline_mode<synchronous>, transform_indices = @transform_2, window_bounds = array<i64: 1, 32>}, {pipeline_mode = #tpu.pipeline_mode<synchronous>, transform_indices = @transform_3, window_bounds = array<i64: 1, 32>}, {transform_indices = @transform_4, window_bounds = array<i64: 1, 128, 32>}, {transform_indices = @transform_5, window_bounds = array<i64: 1, 2, 32>}]} {
    %c0 = arith.constant 0 : index
    %c0_0 = arith.constant 0 : index
    %c0_1 = arith.constant 0 : index
    %c0_2 = arith.constant 0 : index
    %0 = vector.load %arg1[%c0, %c0_0, %c0_1, %c0_2] : memref<1x10x18x32xf32, #tpu.memory_space<vmem>>, vector<1x10x18x32xf32>
    %1 = vector.shape_cast %0 : vector<1x10x18x32xf32> to vector<10x18x32xf32>
    %c0_3 = arith.constant 0 : index
    %c0_4 = arith.constant 0 : index
    %2 = vector.load %arg3[%c0_3, %c0_4] : memref<1x32xf32, #tpu.memory_space<vmem>>, vector<1x32xf32>
    %3 = vector.shape_cast %2 : vector<1x32xf32> to vector<1x1x32xf32>
    %c0_5 = arith.constant 0 : index
    %c0_6 = arith.constant 0 : index
    %4 = vector.load %arg4[%c0_5, %c0_6] : memref<1x32xf32, #tpu.memory_space<vmem>>, vector<1x32xf32>
    %5 = vector.shape_cast %4 : vector<1x32xf32> to vector<1x1x32xf32>
    %6 = vector.broadcast %3 : vector<1x1x32xf32> to vector<10x18x32xf32>
    %7 = arith.mulf %1, %6 : vector<10x18x32xf32>
    %8 = vector.broadcast %5 : vector<1x1x32xf32> to vector<10x18x32xf32>
    %9 = arith.addf %7, %8 : vector<10x18x32xf32>
    %cst = arith.constant 0.000000e+00 : f32
    %10 = vector.broadcast %cst : f32 to vector<10x18x32xf32>
    %11 = arith.maximumf %9, %10 : vector<10x18x32xf32>
    %c2_i32 = arith.constant 2 : i32
    %c0_i32 = arith.constant 0 : i32
    %12 = arith.cmpi eq, %c2_i32, %c0_i32 : i32
    %c1_i32 = arith.constant 1 : i32
    %13 = arith.select %12, %c1_i32, %c2_i32 : i32
    %14 = arith.remsi %arg0, %13 : i32
    %c0_i32_7 = arith.constant 0 : i32
    %15 = arith.cmpi ne, %14, %c0_i32_7 : i32
    %c0_i32_8 = arith.constant 0 : i32
    %16 = arith.cmpi slt, %14, %c0_i32_8 : i32
    %c0_i32_9 = arith.constant 0 : i32
    %17 = arith.cmpi slt, %13, %c0_i32_9 : i32
    %18 = arith.xori %16, %17 : i1
    %19 = arith.andi %18, %15 : i1
    %20 = arith.addi %14, %13 : i32
    %21 = arith.select %19, %20, %14 : i32
    %22 = tpu.iota {dimensions = array<i32: 0>} : vector<10x18x1xi32>
    %c8_i32 = arith.constant 8 : i32
    %23 = arith.muli %21, %c8_i32 : i32
    %24 = vector.broadcast %23 : i32 to vector<10x18x1xi32>
    %25 = arith.addi %22, %24 : vector<10x18x1xi32>
    %26 = tpu.iota {dimensions = array<i32: 1>} : vector<10x18x1xi32>
    %c0_i32_10 = arith.constant 0 : i32
    %27 = vector.broadcast %c0_i32_10 : i32 to vector<10x18x1xi32>
    %28 = arith.cmpi sgt, %25, %27 : vector<10x18x1xi32>
    %c17_i32 = arith.constant 17 : i32
    %29 = vector.broadcast %c17_i32 : i32 to vector<10x18x1xi32>
    %30 = arith.cmpi slt, %25, %29 : vector<10x18x1xi32>
    %31 = arith.andi %28, %30 : vector<10x18x1xi1>
    %c0_i32_11 = arith.constant 0 : i32
    %32 = vector.broadcast %c0_i32_11 : i32 to vector<10x18x1xi32>
    %33 = arith.cmpi sgt, %26, %32 : vector<10x18x1xi32>
    %34 = arith.andi %31, %33 : vector<10x18x1xi1>
    %c17_i32_12 = arith.constant 17 : i32
    %35 = vector.broadcast %c17_i32_12 : i32 to vector<10x18x1xi32>
    %36 = arith.cmpi slt, %26, %35 : vector<10x18x1xi32>
    %37 = arith.andi %34, %36 : vector<10x18x1xi1>
    %cst_13 = arith.constant 0.000000e+00 : f32
    %38 = vector.shape_cast %37 : vector<10x18x1xi1> to vector<10x18x1xi1>
    %39 = vector.broadcast %38 : vector<10x18x1xi1> to vector<10x18x32xi1>
    %40 = vector.broadcast %cst_13 : f32 to vector<10x18x32xf32>
    %41 = arith.select %39, %11, %40 : vector<10x18x32xi1>, vector<10x18x32xf32>
    %42 = vector.extract_strided_slice %41 {offsets = [0, 0, 0], sizes = [8, 16, 32], strides = [1, 1, 1]} : vector<10x18x32xf32> to vector<8x16x32xf32>
    %43 = vector.shape_cast %42 : vector<8x16x32xf32> to vector<128x32xf32>
    %44 = vector.extract_strided_slice %41 {offsets = [0, 1, 0], sizes = [8, 16, 32], strides = [1, 1, 1]} : vector<10x18x32xf32> to vector<8x16x32xf32>
    %45 = vector.shape_cast %44 : vector<8x16x32xf32> to vector<128x32xf32>
    %46 = vector.extract_strided_slice %41 {offsets = [0, 2, 0], sizes = [8, 16, 32], strides = [1, 1, 1]} : vector<10x18x32xf32> to vector<8x16x32xf32>
    %47 = vector.shape_cast %46 : vector<8x16x32xf32> to vector<128x32xf32>
    %48 = vector.extract_strided_slice %41 {offsets = [1, 0, 0], sizes = [8, 16, 32], strides = [1, 1, 1]} : vector<10x18x32xf32> to vector<8x16x32xf32>
    %49 = vector.shape_cast %48 : vector<8x16x32xf32> to vector<128x32xf32>
    %50 = vector.extract_strided_slice %41 {offsets = [1, 1, 0], sizes = [8, 16, 32], strides = [1, 1, 1]} : vector<10x18x32xf32> to vector<8x16x32xf32>
    %51 = vector.shape_cast %50 : vector<8x16x32xf32> to vector<128x32xf32>
    %52 = vector.extract_strided_slice %41 {offsets = [1, 2, 0], sizes = [8, 16, 32], strides = [1, 1, 1]} : vector<10x18x32xf32> to vector<8x16x32xf32>
    %53 = vector.shape_cast %52 : vector<8x16x32xf32> to vector<128x32xf32>
    %54 = vector.extract_strided_slice %41 {offsets = [2, 0, 0], sizes = [8, 16, 32], strides = [1, 1, 1]} : vector<10x18x32xf32> to vector<8x16x32xf32>
    %55 = vector.shape_cast %54 : vector<8x16x32xf32> to vector<128x32xf32>
    %56 = vector.extract_strided_slice %41 {offsets = [2, 1, 0], sizes = [8, 16, 32], strides = [1, 1, 1]} : vector<10x18x32xf32> to vector<8x16x32xf32>
    %57 = vector.shape_cast %56 : vector<8x16x32xf32> to vector<128x32xf32>
    %58 = vector.extract_strided_slice %41 {offsets = [2, 2, 0], sizes = [8, 16, 32], strides = [1, 1, 1]} : vector<10x18x32xf32> to vector<8x16x32xf32>
    %59 = vector.shape_cast %58 : vector<8x16x32xf32> to vector<128x32xf32>
    %60 = tpu.concatenate %43, %45, %47, %49, %51, %53, %55, %57, %59 in 1 : vector<128x32xf32>, vector<128x32xf32>, vector<128x32xf32>, vector<128x32xf32>, vector<128x32xf32>, vector<128x32xf32>, vector<128x32xf32>, vector<128x32xf32>, vector<128x32xf32> -> vector<128x288xf32>
    %61 = arith.truncf %60 : vector<128x288xf32> to vector<128x288xbf16>
    %c0_14 = arith.constant 0 : index
    %c0_15 = arith.constant 0 : index
    %62 = vector.load %arg2[%c0_14, %c0_15] : memref<288x32xbf16, #tpu.memory_space<vmem>>, vector<288x32xbf16>
    %cst_16 = arith.constant dense<0.000000e+00> : vector<128x32xf32>
    %63 = tpu.matmul %61, %62, %cst_16 {dimension_numbers = #tpu.dot_dimension_numbers<[1], [0], [0], [1], [0, 0, 1, 1], [], []>} : vector<128x288xbf16>, vector<288x32xbf16>, vector<128x32xf32> -> vector<128x32xf32>
    %c0_17 = arith.constant 0 : index
    %c0_18 = arith.constant 0 : index
    %c0_19 = arith.constant 0 : index
    %64 = vector.load %arg5[%c0_17, %c0_18, %c0_19] : memref<1x128x32xf32, #tpu.memory_space<vmem>>, vector<1x128x32xf32>
    %65 = vector.shape_cast %64 : vector<1x128x32xf32> to vector<128x32xf32>
    %66 = vector.shape_cast %63 : vector<128x32xf32> to vector<1x128x32xf32>
    tpu.vector_store %arg5[%c0_17, %c0_18, %c0_19], %66 {strides = array<i32>} : memref<1x128x32xf32, #tpu.memory_space<vmem>>, vector<1x128x32xf32>,
    %cst_20 = arith.constant dense<0.000000e+00> : vector<32xf32>
    %67 = vector.multi_reduction <add>, %63, %cst_20 [0] : vector<128x32xf32> to vector<32xf32>
    %68 = vector.shape_cast %67 : vector<32xf32> to vector<1x32xf32>
    %69 = arith.mulf %63, %63 : vector<128x32xf32>
    %cst_21 = arith.constant dense<0.000000e+00> : vector<32xf32>
    %70 = vector.multi_reduction <add>, %69, %cst_21 [0] : vector<128x32xf32> to vector<32xf32>
    %71 = vector.shape_cast %70 : vector<32xf32> to vector<1x32xf32>
    %72 = tpu.concatenate %68, %71 in 0 : vector<1x32xf32>, vector<1x32xf32> -> vector<2x32xf32>
    %c0_22 = arith.constant 0 : index
    %c0_23 = arith.constant 0 : index
    %c0_24 = arith.constant 0 : index
    %73 = vector.load %arg6[%c0_22, %c0_23, %c0_24] : memref<1x2x32xf32, #tpu.memory_space<vmem>>, vector<1x2x32xf32>
    %74 = vector.shape_cast %73 : vector<1x2x32xf32> to vector<2x32xf32>
    %75 = vector.shape_cast %72 : vector<2x32xf32> to vector<1x2x32xf32>
    tpu.vector_store %arg6[%c0_22, %c0_23, %c0_24], %75 {strides = array<i32>} : memref<1x2x32xf32, #tpu.memory_space<vmem>>, vector<1x2x32xf32>,
    return
  }
  func.func @transform_0(%arg0: i32) -> (i32, i32, i32, i32) {
    %c0_i32 = arith.constant 0 : i32
    %c0_i32_0 = arith.constant 0 : i32
    %c0_i32_1 = arith.constant 0 : i32
    %c0_i32_2 = arith.constant 0 : i32
    return %arg0, %c0_i32, %c0_i32_0, %c0_i32_1 : i32, i32, i32, i32
  }
  func.func @transform_1(%arg0: i32) -> (i32, i32) {
    %c0_i32 = arith.constant 0 : i32
    %c0_i32_0 = arith.constant 0 : i32
    %c0_i32_1 = arith.constant 0 : i32
    return %c0_i32, %c0_i32_0 : i32, i32
  }
  func.func @transform_2(%arg0: i32) -> (i32, i32) {
    %c0_i32 = arith.constant 0 : i32
    %c0_i32_0 = arith.constant 0 : i32
    %c0_i32_1 = arith.constant 0 : i32
    return %c0_i32, %c0_i32_0 : i32, i32
  }
  func.func @transform_3(%arg0: i32) -> (i32, i32) {
    %c0_i32 = arith.constant 0 : i32
    %c0_i32_0 = arith.constant 0 : i32
    %c0_i32_1 = arith.constant 0 : i32
    return %c0_i32, %c0_i32_0 : i32, i32
  }
  func.func @transform_4(%arg0: i32) -> (i32, i32, i32) {
    %c0_i32 = arith.constant 0 : i32
    %c0_i32_0 = arith.constant 0 : i32
    %c0_i32_1 = arith.constant 0 : i32
    return %arg0, %c0_i32, %c0_i32_0 : i32, i32, i32
  }
  func.func @transform_5(%arg0: i32) -> (i32, i32, i32) {
    %c0_i32 = arith.constant 0 : i32
    %c0_i32_0 = arith.constant 0 : i32
    %c0_i32_1 = arith.constant 0 : i32
    return %arg0, %c0_i32, %c0_i32_0 : i32, i32, i32
  }
}

module attributes {stable_mosaic.version = 11 : i64} {
  func.func @_bn_relu_kernel(%arg0: i32, %arg1: memref<32x512xf32, #tpu.memory_space<vmem>>, %arg2: memref<1x512xf32, #tpu.memory_space<vmem>>, %arg3: memref<1x512xf32, #tpu.memory_space<vmem>>, %arg4: memref<32x512xf32, #tpu.memory_space<vmem>>) attributes {dimension_semantics = [#tpu.dimension_semantics<parallel>], iteration_bounds = array<i64: 1>, scalar_prefetch = 0 : i64, scratch_operands = 0 : i64, tpu.core_type = #tpu.core_type<tc>, window_params = [{transform_indices = @transform_0, window_bounds = array<i64: 32, 512>}, {pipeline_mode = #tpu.pipeline_mode<synchronous>, transform_indices = @transform_1, window_bounds = array<i64: 1, 512>}, {pipeline_mode = #tpu.pipeline_mode<synchronous>, transform_indices = @transform_2, window_bounds = array<i64: 1, 512>}, {transform_indices = @transform_3, window_bounds = array<i64: 32, 512>}]} {
    %c0 = arith.constant 0 : index
    %c0_0 = arith.constant 0 : index
    %0 = vector.load %arg1[%c0, %c0_0] : memref<32x512xf32, #tpu.memory_space<vmem>>, vector<32x512xf32>
    %c0_1 = arith.constant 0 : index
    %c0_2 = arith.constant 0 : index
    %1 = vector.load %arg2[%c0_1, %c0_2] : memref<1x512xf32, #tpu.memory_space<vmem>>, vector<1x512xf32>
    %2 = vector.broadcast %1 : vector<1x512xf32> to vector<32x512xf32>
    %3 = arith.mulf %0, %2 : vector<32x512xf32>
    %c0_3 = arith.constant 0 : index
    %c0_4 = arith.constant 0 : index
    %4 = vector.load %arg3[%c0_3, %c0_4] : memref<1x512xf32, #tpu.memory_space<vmem>>, vector<1x512xf32>
    %5 = vector.broadcast %4 : vector<1x512xf32> to vector<32x512xf32>
    %6 = arith.addf %3, %5 : vector<32x512xf32>
    %cst = arith.constant 0.000000e+00 : f32
    %7 = vector.broadcast %cst : f32 to vector<32x512xf32>
    %8 = arith.maximumf %6, %7 : vector<32x512xf32>
    %c0_5 = arith.constant 0 : index
    %c0_6 = arith.constant 0 : index
    %9 = vector.load %arg4[%c0_5, %c0_6] : memref<32x512xf32, #tpu.memory_space<vmem>>, vector<32x512xf32>
    tpu.vector_store %arg4[%c0_5, %c0_6], %8 {strides = array<i32>} : memref<32x512xf32, #tpu.memory_space<vmem>>, vector<32x512xf32>,
    return
  }
  func.func @transform_0(%arg0: i32) -> (i32, i32) {
    %c0_i32 = arith.constant 0 : i32
    %c0_i32_0 = arith.constant 0 : i32
    return %arg0, %c0_i32 : i32, i32
  }
  func.func @transform_1(%arg0: i32) -> (i32, i32) {
    %c0_i32 = arith.constant 0 : i32
    %c0_i32_0 = arith.constant 0 : i32
    %c0_i32_1 = arith.constant 0 : i32
    return %c0_i32, %c0_i32_0 : i32, i32
  }
  func.func @transform_2(%arg0: i32) -> (i32, i32) {
    %c0_i32 = arith.constant 0 : i32
    %c0_i32_0 = arith.constant 0 : i32
    %c0_i32_1 = arith.constant 0 : i32
    return %c0_i32, %c0_i32_0 : i32, i32
  }
  func.func @transform_3(%arg0: i32) -> (i32, i32) {
    %c0_i32 = arith.constant 0 : i32
    %c0_i32_0 = arith.constant 0 : i32
    return %arg0, %c0_i32 : i32, i32
  }
}

</mosaic_0001>

<bundles_post_ra>
// kernel: tile.13
= control target key start
LH: loop header
LB: loop body
LE: loop exit
PB: predicated region body
PF: predicated region fallthrough
CT: control target
= control target key end

     0   :  { %s28_s0 = inlined_call_operand.vmem [shape: f32[32], index: 0, kind: input, shape index: {}]   ;;  %s29_s1 = inlined_call_operand.vmem [shape: f32[16,32], index: 1, kind: output, shape index: {}]  }
   0x1   :  { %v4_v0 = vld [vmem:[%s28_s0] ss:$0 sm:$0xff] }
   0x2   :  { %5 = vst [vmem:[%s29_s1] sm:$0xff] %v4_v0 }
   0x3   :  { %8 = vst [vmem:[%s29_s1 + $0x8] sm:$0xff] %v4_v0 }

// kernel: tile.14
= control target key start
LH: loop header
LB: loop body
LE: loop exit
PB: predicated region body
PF: predicated region fallthrough
CT: control target
= control target key end

     0   :  { %s56_s8 = smov 96   ;;  %s57_s11 = smov 32   ;;  %vm3_vm0 = vcmask 261120   ;;  %vm9_vm1 = vcmask 1048320   ;;  %vm15_vm2 = vcmask 785920   ;;  %vm21_vm3 = vcmask 523520   ;;  %s93_s0 = inlined_call_operand.vmem [shape: f32[16,32], index: 0, kind: input, shape index: {}]   ;;  %s94_s1 = inlined_call_operand.vmem [shape: f32[1,512], index: 1, kind: output, shape index: {}]  }
   0x1   :  { %v47_v0 = vld [vmem:[%s93_s0 + $0x3] ss:$4 sm:$0xf]   ;;  %v49_v1 = vld [vmem:[%s93_s0 + $0x1] ss:$4 sm:$0xf]  }
   0x2   :  { %7 = vrot.lane.b32.xlu0 %v47_v0, %s56_s8  ;;  %19 = vrot.lane.b32.xlu1 %v49_v1, %s57_s11  ;;  %v48_v2 = vld [vmem:[%s93_s0 + $0x2] ss:$4 sm:$0xf]   ;;  %s58_s14 = smov 64  }
   0x3   :  { %v2_v3 = vld [vmem:[%s93_s0] ss:$4 sm:$0xf]  }
   0x4   :  { %4 = vst.msk [vmem:[#allocation0] ss:$8 sm:$0xf] %vm3_vm0, %v2_v3  }
   0xa   :  { %13 = vrot.lane.b32.xlu0 %v48_v2, %s58_s14 }
  0x74   :  { %v8_v4 = vpop.permute.xlu0 %7   ;;  %v20_v5 = vpop.permute.xlu1 %19  }
  0x75   :  { %10 = vst.msk [vmem:[#allocation0] ss:$8 sm:$0xf] %vm9_vm1, %v8_v4  }
  0x7c   :  { %v14_v6 = vpop.permute.xlu0 %13  }
  0x7d   :  { %16 = vst.msk [vmem:[#allocation0] ss:$8 sm:$0xf] %vm15_vm2, %v14_v6  }
  0x7e   :  { %22 = vst.msk [vmem:[#allocation0] ss:$8 sm:$0xf] %vm21_vm3, %v20_v5  }
  0x85   :  { %v25_v7 = vld [vmem:[#allocation0] sm:$0x1]  ;;  %v30_v8 = vld [vmem:[#allocation0 + $0x8] sm:$0x1]  ;;  %v36_v9 = vld [vmem:[#allocation0 + $0x10] sm:$0x1] }
  0x86   :  { %28 = vst [vmem:[%s94_s1] sm:$0x1] %v25_v7  ;;  %v42_v10 = vld [vmem:[#allocation0 + $0x18] sm:$0x1] }
  0x87   :  { %50 = vst [vmem:[%s94_s1 + $0x1] sm:$0x1] %v30_v8 }
  0x88   :  { %51 = vst [vmem:[%s94_s1 + $0x2] sm:$0x1] %v36_v9 }
  0x89   :  { %52 = vst [vmem:[%s94_s1 + $0x3] sm:$0x1] %v42_v10 }

// kernel: conv_block_forward.5
= control target key start
LH: loop header
LB: loop body
LE: loop exit
PB: predicated region body
PF: predicated region fallthrough
CT: control target
= control target key end

     0   :  { %s264_s0 = inlined_call_operand.vmem [shape: f32[32,512], index: 0, kind: input, shape index: {}]   ;;  %s265_s1 = inlined_call_operand.vmem [shape: f32[1,512], index: 1, kind: input, shape index: {}]   ;;  %s266_s2 = inlined_call_operand.vmem [shape: f32[1,512], index: 2, kind: input, shape index: {}]   ;;  %s267_s3 = inlined_call_operand.vmem [shape: f32[32,512], index: 3, kind: output, shape index: {}]  }
   0x1   :  { %v14_v0 = vld [vmem:[%s264_s0] sm:$0xff]  ;;  %v15_v5 = vld [vmem:[%s264_s0 + $0x8] sm:$0xff]  ;;  %v16_v8 = vld [vmem:[%s264_s0 + $0x10] sm:$0xff] }
   0x2   :  { %v30_v1 = vld [vmem:[%s265_s1] sm:$0xf]  ;;  %v17_v11 = vld [vmem:[%s264_s0 + $0x18] sm:$0xff]  ;;  %v19_v18 = vld [vmem:[%s264_s0 + $0x28] sm:$0xff] }
   0x3   :  { %v56_v2 = vld [vmem:[%s266_s2] sm:$0xf]  ;;  %v32_v3 = vperm.slane %v30_v1, 0  ;;  %v33_v6 = vperm.slane %v30_v1, 1  ;;  %v34_v9 = vperm.slane %v30_v1, 2  ;;  %v35_v12 = vperm.slane %v30_v1, 3 }
   0x4   :  { %v147_v4 = vperm.slane %v56_v2, 0  ;;  %v152_v7 = vperm.slane %v56_v2, 1  ;;  %v157_v10 = vperm.slane %v56_v2, 2  ;;  %v162_v13 = vperm.slane %v56_v2, 3  ;;  %v18_v14 = vld [vmem:[%s264_s0 + $0x20] sm:$0xff]  ;;  %v20_v19 = vld [vmem:[%s264_s0 + $0x30] sm:$0xff] }
   0x5   :  { %v40_v15 = vmul.f32 %v32_v3, %v14_v0  ;;  %v41_v16 = vmul.f32 %v33_v6, %v15_v5  ;;  %v44_v17 = vmul.f32 %v32_v3, %v18_v14  ;;  %v21_v20 = vld [vmem:[%s264_s0 + $0x38] sm:$0xff]  ;;  %v42_v21 = vmul.f32 %v34_v9, %v16_v8  ;;  %v22_v33 = vld [vmem:[%s264_s0 + $0x40] sm:$0xff]  ;;  %v23_v34 = vld [vmem:[%s264_s0 + $0x48] sm:$0xff] }
   0x6   :  { %v43_v22 = vmul.f32 %v35_v12, %v17_v11  ;;  %v45_v23 = vmul.f32 %v33_v6, %v19_v18  ;;  %v46_v24 = vmul.f32 %v34_v9, %v20_v19  ;;  %v47_v28 = vmul.f32 %v35_v12, %v21_v20  ;;  %v24_v35 = vld [vmem:[%s264_s0 + $0x50] sm:$0xff]  ;;  %v25_v38 = vld [vmem:[%s264_s0 + $0x58] sm:$0xff]  ;;  %v26_v39 = vld [vmem:[%s264_s0 + $0x60] sm:$0xff] }
   0x7   :  { %v66_v25 = vadd.f32 %v147_v4, %v40_v15  ;;  %v67_v26 = vadd.f32 %v152_v7, %v41_v16  ;;  %v70_v27 = vadd.f32 %v147_v4, %v44_v17  ;;  %v68_v29 = vadd.f32 %v157_v10, %v42_v21  ;;  %v27_v40 = vld [vmem:[%s264_s0 + $0x68] sm:$0xff]  ;;  %v28_v45 = vld [vmem:[%s264_s0 + $0x70] sm:$0xff]  ;;  %v29_v50 = vld [vmem:[%s264_s0 + $0x78] sm:$0xff] }
   0x8   :  { %v69_v30 = vadd.f32 %v162_v13, %v43_v22  ;;  %v71_v31 = vadd.f32 %v152_v7, %v45_v23  ;;  %v72_v32 = vadd.f32 %v157_v10, %v46_v24  ;;  %v73_v44 = vadd.f32 %v162_v13, %v47_v28 }
   0x9   :  { %v82_v36 = vmax.f32 %v66_v25, 0.0  ;;  %v83_v37 = vmax.f32 %v67_v26, 0.0  ;;  %v84_v41 = vmax.f32 %v68_v29, 0.0  ;;  %v86_v43 = vmax.f32 %v70_v27, 0.0 }
   0xa   :  { %v85_v42 = vmax.f32 %v69_v30, 0.0  ;;  %v87_v46 = vmax.f32 %v71_v31, 0.0  ;;  %v48_v47 = vmul.f32 %v32_v3, %v22_v33  ;;  %v49_v48 = vmul.f32 %v33_v6, %v23_v34 }
   0xb   :  { %98 = vst [vmem:[%s267_s3] sm:$0xff] %v82_v36  ;;  %v50_v49 = vmul.f32 %v34_v9, %v24_v35  ;;  %v88_v51 = vmax.f32 %v72_v32, 0.0  ;;  %v51_v52 = vmul.f32 %v35_v12, %v25_v38  ;;  %v52_v53 = vmul.f32 %v32_v3, %v26_v39 }
   0xc   :  { %99 = vst [vmem:[%s267_s3 + $0x8] sm:$0xff] %v83_v37  ;;  %v53_v54 = vmul.f32 %v33_v6, %v27_v40  ;;  %v74_v55 = vadd.f32 %v147_v4, %v48_v47  ;;  %v75_v56 = vadd.f32 %v152_v7, %v49_v48  ;;  %v54_v58 = vmul.f32 %v34_v9, %v28_v45 }
   0xd   :  { %100 = vst [vmem:[%s267_s3 + $0x10] sm:$0xff] %v84_v41  ;;  %v76_v57 = vadd.f32 %v157_v10, %v50_v49  ;;  %v89_v59 = vmax.f32 %v73_v44, 0.0  ;;  %v77_v60 = vadd.f32 %v162_v13, %v51_v52  ;;  %v55_v61 = vmul.f32 %v35_v12, %v29_v50 }
   0xe   :  { %101 = vst [vmem:[%s267_s3 + $0x18] sm:$0xff] %v85_v42  ;;  %v90_v62 = vmax.f32 %v74_v55, 0.0  ;;  %v78_v63 = vadd.f32 %v147_v4, %v52_v53  ;;  %v91_v0 = vmax.f32 %v75_v56, 0.0  ;;  %v79_v1 = vadd.f32 %v152_v7, %v53_v54 }
   0xf   :  { %102 = vst [vmem:[%s267_s3 + $0x20] sm:$0xff] %v86_v43  ;;  %v92_v2 = vmax.f32 %v76_v57, 0.0  ;;  %v80_v3 = vadd.f32 %v157_v10, %v54_v58  ;;  %v93_v5 = vmax.f32 %v77_v60, 0.0  ;;  %v81_v4 = vadd.f32 %v162_v13, %v55_v61 }
  0x10   :  { %103 = vst [vmem:[%s267_s3 + $0x28] sm:$0xff] %v87_v46  ;;  %v94_v6 = vmax.f32 %v78_v63, 0.0  ;;  %v95_v7 = vmax.f32 %v79_v1, 0.0 }
  0x11   :  { %104 = vst [vmem:[%s267_s3 + $0x30] sm:$0xff] %v88_v51  ;;  %v96_v8 = vmax.f32 %v80_v3, 0.0  ;;  %v97_v9 = vmax.f32 %v81_v4, 0.0 }
  0x12   :  { %105 = vst [vmem:[%s267_s3 + $0x38] sm:$0xff] %v89_v59 }
  0x13   :  { %106 = vst [vmem:[%s267_s3 + $0x40] sm:$0xff] %v90_v62 }
  0x14   :  { %107 = vst [vmem:[%s267_s3 + $0x48] sm:$0xff] %v91_v0 }
  0x15   :  { %108 = vst [vmem:[%s267_s3 + $0x50] sm:$0xff] %v92_v2 }
  0x16   :  { %109 = vst [vmem:[%s267_s3 + $0x58] sm:$0xff] %v93_v5 }
  0x17   :  { %110 = vst [vmem:[%s267_s3 + $0x60] sm:$0xff] %v94_v6 }
  0x18   :  { %111 = vst [vmem:[%s267_s3 + $0x68] sm:$0xff] %v95_v7 }
  0x19   :  { %112 = vst [vmem:[%s267_s3 + $0x70] sm:$0xff] %v96_v8 }
  0x1a   :  { %113 = vst [vmem:[%s267_s3 + $0x78] sm:$0xff] %v97_v9 }

// kernel: conv_block_forward.3
= control target key start
LH: loop header
LB: loop body
LE: loop exit
PB: predicated region body
PF: predicated region fallthrough
CT: control target
= control target key end

     0   :  { %s1643_s18 = smov 0   ;;  %s2329_s0 = inlined_call_operand.vmem [shape: f32[4,10,18,4], index: 0, kind: input, shape index: {}]   ;;  %s2330_s1 = inlined_call_operand.vmem [shape: bf16[36,32], index: 1, kind: input, shape index: {}]   ;;  %s2331_s2 = inlined_call_operand.vmem [shape: f32[1,4], index: 2, kind: input, shape index: {}]   ;;  %s2332_s3 = inlined_call_operand.vmem [shape: f32[1,4], index: 3, kind: input, shape index: {}]   ;;  %s2333_s4 = inlined_call_operand.vmem [shape: f32[4,128,32], index: 4, kind: output, shape index: {0}]   ;;  %s2334_s5 = inlined_call_operand.vmem [shape: f32[4,2,32], index: 5, kind: output, shape index: {1}]  }
   0x1 LB: > { %s1221_s2 = sadd.s32 4294967295, %s1603_s18   ;;  %p1225_p0 = scmp.ge.s32.totalorder %s1603_s18, 1  ;;  %s1603_s18 = sphi %s1643_s18, %s16_s18  }
   0x2   : > { %p190_p1 = scmp.lt.s32.totalorder %s1603_s18, 5 }
   0x4   : > { %p191_p2 = pnand %p1225_p0, %p190_p1 }
   0x5   : > { %p222_p3 = scmp.lt.s32.totalorder (!%p191_p2), %s1221_s2, 3  ;;  %s1605_s22 = smov (!%p191_p2), 4  }
   0x6   : > { %194 = sbr.rel (%p191_p2) target bundleno = 471 (0x1d7), region = 36  ;;  %s1606_s23 = smov (!%p191_p2), 8  }
   0x7   : > { %s1607_s24 = smov (!%p191_p2), 12   ;;  %s1608_s25 = smov (!%p191_p2), 24  }
   0x8   : > { %s1609_s26 = smov (!%p191_p2), 20   ;;  %s1610_s27 = smov (!%p191_p2), 16  }
   0x9   : > { %s1611_s28 = smov (!%p191_p2), 32   ;;  %s1612_s29 = smov (!%p191_p2), 28  }
   0xb   : > { %s2336_s2 = smov (!%p222_p3, %s1221_s2), 3  ;;  %vm291_vm0 = vcmask 1046528   ;;  %vm332_vm1 = vcmask 1045504   ;;  %vm783_vm2 = vcmask 31744   ;;  %vm800_vm3 = vcmask 64512  }
   0xc   : > { %s1260_s3 = smul.u32 240, %s2336_s2  ;;  %vm817_vm4 = vcmask 97280   ;;  %vm972_vm5 = vcmask 1041408   ;;  %vm834_vm6 = vcmask 130048   ;;  %vm851_vm7 = vcmask 162816   ;;  %s1248_s11 = sshll.u32 %s2336_s2, 7 }
   0xd   : > { %vm868_vm8 = vcmask 195584   ;;  %vm885_vm9 = vcmask 228352   ;;  %vm902_vm10 = vcmask 261120   ;;  %vm947_vm11 = vcmask 293888   ;;  %s2256_s14 = scalar_lea.vmem %s2333_s4, %s1248_s11  ;;  %s1229_s15 = sshll.u32 %s2336_s2, 1 }
   0xe   : > { %s1657_s21 = scalar_lea.vmem %s2329_s0, %s1260_s3  ;;  %vm1131_vm12 = vcmask 1040384   ;;  %s235_s3 = scalar_lea.vmem %s2334_s5, %s1229_s15  ;;  %vm1133_vm13 = vcmask 254976  }
   0xf   : > { %v1660_v0 = vld [vmem:[%s1657_s21 + $0x60] sm:$0xff]  ;;  %v1663_v1 = vld [vmem:[%s1657_s21 + $0x68] sm:$0xff]  ;;  %v1666_v2 = vld [vmem:[%s1657_s21 + $0x70] sm:$0x3] }
  0x10   : > { %v312_v3 = vrot.slane %v1660_v0, 1  ;;  %v313_v4 = vrot.slane %v1663_v1, 1  ;;  %v315_v5 = vrot.slane %v1666_v2, 1  ;;  %v1672_v6 = vld [vmem:[%s1657_s21 + $0x30] sm:$0xff]  ;;  %v1675_v7 = vld [vmem:[%s1657_s21 + $0x38] sm:$0xff]  ;;  %v1683_v11 = vld [vmem:[%s1657_s21] sm:$0xff] }
  0x11   : > { %v1678_v8 = vld [vmem:[%s1657_s21 + $0x40] sm:$0x3]  ;;  %v302_v9 = vrot.slane %v1672_v6, 1  ;;  %v303_v10 = vrot.slane %v1675_v7, 1  ;;  %v1686_v12 = vld [vmem:[%s1657_s21 + $0x8] sm:$0xff]  ;;  %v1693_v17 = vld [vmem:[%s1657_s21 + $0x78] sm:$0xff] }
  0x12   : > { %v314_v13 = vsel %vm291_vm0, %v312_v3, %v313_v4  ;;  %v316_v14 = vsel %vm291_vm0, %v313_v4, %v315_v5  ;;  %v305_v15 = vrot.slane %v1678_v8, 1  ;;  %v239_v16 = vld [vmem:[%s1657_s21 + $0x10] sm:$0x3]  ;;  %v1696_v18 = vld [vmem:[%s1657_s21 + $0x80] sm:$0xff]  ;;  %v292_v21 = vrot.slane %v1683_v11, 1  ;;  %v1707_v24 = vld [vmem:[%s1657_s21 + $0x48] sm:$0xff] }
  0x13   : > { %v1698_v19 = vpack.i.bf16 %v316_v14, %v314_v13  ;;  %v304_v20 = vsel %vm291_vm0, %v302_v9, %v303_v10  ;;  %v293_v22 = vrot.slane %v1686_v12, 1  ;;  %v1704_v23 = vld [vmem:[%s1657_s21 + $0x88] sm:$0x3]  ;;  %v1710_v25 = vld [vmem:[%s1657_s21 + $0x50] sm:$0xff]  ;;  %v295_v27 = vrot.slane %v239_v16, 1  ;;  %v1718_v30 = vld [vmem:[%s1657_s21 + $0x18] sm:$0xff] }
  0x14   : > { %v306_v26 = vsel %vm291_vm0, %v303_v10, %v305_v15  ;;  %v317_v28 = vrot.slane %v1693_v17, 1  ;;  %v1715_v29 = vld [vmem:[%s1657_s21 + $0x58] sm:$0x3]  ;;  %v318_v33 = vrot.slane %v1696_v18, 1  ;;  %v320_v34 = vrot.slane %v1704_v23, 1  ;;  %v1728_v35 = vld [vmem:[%s1657_s21 + $0x20] sm:$0xff] }
  0x15   : > { %1298 = vrot.lane.b32.xlu2 %v1698_v19, %s1605_s22  ;;  %v1722_v31 = vpack.i.bf16 %v306_v26, %v304_v20  ;;  %v294_v32 = vsel %vm291_vm0, %v292_v21, %v293_v22  ;;  %v296_v36 = vsel %vm291_vm0, %v293_v22, %v295_v27  ;;  %v307_v37 = vrot.slane %v1707_v24, 1  ;;  %v1735_v40 = vld [vmem:[%s1657_s21 + $0x28] sm:$0x3]  ;;  %v1753_v51 = vld [vmem:[%s1657_s21 + $0xb0] sm:$0xff]  ;;  %v1756_v52 = vld [vmem:[%s1657_s21 + $0xb8] sm:$0x3] }
  0x16   : > { %v308_v38 = vrot.slane %v1710_v25, 1  ;;  %v310_v39 = vrot.slane %v1715_v29, 1  ;;  %v1277_v41 = vpack.i.bf16 %v296_v36, %v294_v32  ;;  %v319_v42 = vsel %vm291_vm0, %v317_v28, %v318_v33  ;;  %v1750_v50 = vld [vmem:[%s1657_s21 + $0xa8] sm:$0xff]  ;;  %v1762_v57 = vld [vmem:[%s1657_s21 + $0x90] sm:$0xff]  ;;  %v1765_v58 = vld [vmem:[%s1657_s21 + $0x98] sm:$0xff] }
  0x17   : > { %1288 = vrot.lane.b32.xlu1 %v1722_v31, %s1605_s22  ;;  %v321_v43 = vsel %vm291_vm0, %v318_v33, %v320_v34  ;;  %v297_v44 = vrot.slane %v1718_v30, 1  ;;  %v298_v47 = vrot.slane %v1728_v35, 1  ;;  %v300_v49 = vrot.slane %v1735_v40, 1  ;;  %v257_v61 = vld [vmem:[%s1657_s21 + $0xa0] sm:$0x3] }
  0x18   : > { %v309_v45 = vsel %vm291_vm0, %v307_v37, %v308_v38  ;;  %v311_v46 = vsel %vm291_vm0, %v308_v38, %v310_v39  ;;  %1278 = vrot.lane.b32.xlu0 %v1277_v41, %s1605_s22  ;;  %v1746_v48 = vpack.i.bf16 %v321_v43, %v319_v42  ;;  %v336_v53 = vrot.slane %v239_v16, 2 }
  0x19   : > { %v299_v54 = vsel %vm291_vm0, %v297_v44, %v298_v47  ;;  %v333_v55 = vrot.slane %v1683_v11, 2  ;;  %v334_v56 = vrot.slane %v1686_v12, 2  ;;  %v1767_v59 = vpack.i.bf16 %v311_v46, %v309_v45 }
  0x1a   : > { %v301_v60 = vsel %vm291_vm0, %v298_v47, %v300_v49  ;;  %v327_v62 = vrot.slane %v1750_v50, 1  ;;  %v328_v63 = vrot.slane %v1753_v51, 1  ;;  %v330_v3 = vrot.slane %v1756_v52, 1 }
  0x1b   : > { %v1776_v4 = vpack.i.bf16 %v301_v60, %v299_v54  ;;  %v322_v5 = vrot.slane %v1762_v57, 1  ;;  %v323_v9 = vrot.slane %v1765_v58, 1  ;;  %v335_v10 = vsel %vm332_vm1, %v333_v55, %v334_v56 }
  0x1c   : > { %v337_v13 = vsel %vm332_vm1, %v334_v56, %v336_v53  ;;  %v325_v14 = vrot.slane %v257_v61, 1  ;;  %v329_v15 = vsel %vm291_vm0, %v327_v62, %v328_v63  ;;  %v331_v16 = vsel %vm291_vm0, %v328_v63, %v330_v3 }
  0x1d   : > { %1303 = vrot.lane.b32.xlu2 %v1746_v48, %s1605_s22  ;;  %v1317_v20 = vpack.i.bf16 %v337_v13, %v335_v10  ;;  %v324_v21 = vsel %vm291_vm0, %v322_v5, %v323_v9  ;;  %v348_v26 = vrot.slane %v1707_v24, 2  ;;  %v349_v27 = vrot.slane %v1710_v25, 2 }
  0x1e   : > { %v326_v22 = vsel %vm291_vm0, %v323_v9, %v325_v14  ;;  %v351_v28 = vrot.slane %v1715_v29, 2  ;;  %v1793_v32 = vpack.i.bf16 %v331_v16, %v329_v15  ;;  %v346_v33 = vrot.slane %v1678_v8, 2 }
  0x1f   : > { %1293 = vrot.lane.b32.xlu1 %v1767_v59, %s1605_s22  ;;  %v343_v34 = vrot.slane %v1672_v6, 2  ;;  %v344_v36 = vrot.slane %v1675_v7, 2  ;;  %v1799_v37 = vpack.i.bf16 %v326_v22, %v324_v21  ;;  %v338_v38 = vrot.slane %v1718_v30, 2 }
  0x20   : > { %1283 = vrot.lane.b32.xlu0 %v1776_v4, %s1605_s22  ;;  %v339_v39 = vrot.slane %v1728_v35, 2  ;;  %v350_v41 = vsel %vm332_vm1, %v348_v26, %v349_v27  ;;  %v352_v29 = vsel %vm332_vm1, %v349_v27, %v351_v28  ;;  %v341_v42 = vrot.slane %v1735_v40, 2 }
  0x21   : > { %v345_v8 = vsel %vm332_vm1, %v343_v34, %v344_v36  ;;  %v347_v43 = vsel %vm332_vm1, %v344_v36, %v346_v33  ;;  %v1812_v44 = vpack.i.bf16 %v352_v29, %v350_v41  ;;  %v363_v47 = vrot.slane %v1762_v57, 2 }
  0x22   : > { %v340_v45 = vsel %vm332_vm1, %v338_v38, %v339_v39  ;;  %v342_v46 = vsel %vm332_vm1, %v339_v39, %v341_v42  ;;  %v364_v40 = vrot.slane %v1765_v58, 2  ;;  %v366_v49 = vrot.slane %v257_v61, 2  ;;  %v1872_v38 = vld [vmem:[%s1657_s21 + $0xc0] sm:$0xff]  ;;  %v1875_v39 = vld [vmem:[%s1657_s21 + $0xc8] sm:$0xff] }
  0x23   : > { %v1818_v53 = vpack.i.bf16 %v347_v43, %v345_v8  ;;  %v358_v54 = vrot.slane %v1693_v17, 2  ;;  %v359_v55 = vrot.slane %v1696_v18, 2  ;;  %v361_v56 = vrot.slane %v1704_v23, 2 }
  0x24   : > { %v356_v60 = vrot.slane %v1666_v2, 2  ;;  %v1322_v62 = vpack.i.bf16 %v342_v46, %v340_v45  ;;  %v365_v63 = vsel %vm332_vm1, %v363_v47, %v364_v40  ;;  %v367_v3 = vsel %vm332_vm1, %v364_v40, %v366_v49  ;;  %v263_v49 = vld [vmem:[%s1657_s21 + $0xd0] sm:$0x3] }
  0x25   : > { %1318 = vrot.lane.b32.xlu2 %v1317_v20, %s1606_s23  ;;  %v353_v61 = vrot.slane %v1660_v0, 2  ;;  %v354_v5 = vrot.slane %v1663_v1, 2  ;;  %v360_v9 = vsel %vm332_vm1, %v358_v54, %v359_v55  ;;  %v362_v23 = vsel %vm332_vm1, %v359_v55, %v361_v56 }
  0x26   : > { %v1835_v2 = vpack.i.bf16 %v367_v3, %v365_v63  ;;  %v1839_v14 = vpack.i.bf16 %v362_v23, %v360_v9  ;;  %v368_v16 = vrot.slane %v1750_v50, 2  ;;  %v369_v20 = vrot.slane %v1753_v51, 2 }
  0x27   : > { %1313 = vrot.lane.b32.xlu1 %v1793_v32, %s1605_s22  ;;  %v355_v10 = vsel %vm332_vm1, %v353_v61, %v354_v5  ;;  %v357_v13 = vsel %vm332_vm1, %v354_v5, %v356_v60  ;;  %v371_v21 = vrot.slane %v1756_v52, 2  ;;  %v1362_v22 = vpack.i.bf16 %v1675_v7, %v1672_v6 }
  0x28   : > { %1308 = vrot.lane.b32.xlu0 %v1799_v37, %s1605_s22  ;;  %v1843_v15 = vpack.i.bf16 %v357_v13, %v355_v10  ;;  %v370_v26 = vsel %vm332_vm1, %v368_v16, %v369_v20  ;;  %v1357_v28 = vpack.i.bf16 %v1728_v35, %v1718_v30  ;;  %v1864_v33 = vpack.i.bf16 %v1696_v18, %v1693_v17 }
  0x29   : > { %v372_v27 = vsel %vm332_vm1, %v369_v20, %v371_v21  ;;  %v1372_v34 = vpack.i.bf16 %v1663_v1, %v1660_v0  ;;  %v1367_v36 = vpack.i.bf16 %v1710_v25, %v1707_v24  ;;  %v1392_v41 = vpack.i.bf16 %v1875_v39, %v1872_v38 }
  0x2a   : > { %v1858_v52 = vpack.i.bf16 %v372_v27, %v370_v26  ;;  %v1881_v29 = vpack.i.bf16 %v1753_v51, %v1750_v50  ;;  %v1382_v42 = vpack.i.bf16 %v1765_v58, %v1762_v57  ;;  %v376_v54 = vrot.slane %v1872_v38, 1 }
  0x2b   : > { %v379_v55 = vrot.slane %v263_v49, 1  ;;  %v382_v63 = vrot.slane %v1875_v39, 2  ;;  %v384_v3 = vrot.slane %v263_v49, 2 }
  0x2d   : > { %1333 = vrot.lane.b32.xlu2 %v1812_v44, %s1606_s23  ;;  %v385_v20 = vsel %vm332_vm1, %v382_v63, %v384_v3 }
  0x2f   : > { %1328 = vrot.lane.b32.xlu1 %v1818_v53, %s1606_s23 }
  0x30   : > { %1323 = vrot.lane.b32.xlu0 %v1322_v62, %s1606_s23 }
  0x35   : > { %1348 = vrot.lane.b32.xlu2 %v1835_v2, %s1606_s23 }
  0x37   : > { %1343 = vrot.lane.b32.xlu1 %v1839_v14, %s1606_s23 }
  0x38   : > { %1338 = vrot.lane.b32.xlu0 %v1843_v15, %s1606_s23 }
  0x3d   : > { %1363 = vrot.lane.b32.xlu2 %v1362_v22, %s1607_s24 }
  0x3f   : > { %1358 = vrot.lane.b32.xlu1 %v1357_v28, %s1607_s24 }
  0x40   : > { %1353 = vrot.lane.b32.xlu0 %v1858_v52, %s1606_s23 }
  0x45   : > { %1378 = vrot.lane.b32.xlu2 %v1864_v33, %s1607_s24 }
  0x47   : > { %1373 = vrot.lane.b32.xlu1 %v1372_v34, %s1607_s24 }
  0x48   : > { %1368 = vrot.lane.b32.xlu0 %v1367_v36, %s1607_s24 }
  0x4d   : > { %1393 = vrot.lane.b32.xlu2 %v1392_v41, %s1607_s24 }
  0x4f   : > { %1388 = vrot.lane.b32.xlu1 %v1881_v29, %s1607_s24 }
  0x50   : > { %1383 = vrot.lane.b32.xlu0 %v1382_v42, %s1607_s24 }
  0x55   : > { %1408 = vrot.lane.b32.xlu2 %v1362_v22, %s1608_s25 }
  0x57   : > { %1403 = vrot.lane.b32.xlu1 %v1322_v62, %s1609_s26 }
  0x58   : > { %1398 = vrot.lane.b32.xlu0 %v1776_v4, %s1610_s27 }
  0x5d   : > { %1423 = vrot.lane.b32.xlu2 %v1767_v59, %s1610_s27 }
  0x5f   : > { %1418 = vrot.lane.b32.xlu1 %v1818_v53, %s1611_s28 }
  0x60   : > { %1413 = vrot.lane.b32.xlu0 %v1722_v31, %s1612_s29 }
  0x65   : > { %1438 = vrot.lane.b32.xlu2 %v1372_v34, %s1608_s25 }
  0x67   : > { %1433 = vrot.lane.b32.xlu1 %v1746_v48, %s1610_s27 }
  0x68   : > { %1428 = vrot.lane.b32.xlu0 %v1812_v44, %s1609_s26 }
  0x6d   : > { %1453 = vrot.lane.b32.xlu2 %v1382_v42, %s1608_s25 }
  0x6f   : > { %1448 = vrot.lane.b32.xlu1 %v1698_v19, %s1612_s29  ;;  %v1904_v4 = vpop.permute.xlu2 %1298 }
  0x70   : > { %1443 = vrot.lane.b32.xlu0 %v1839_v14, %s1609_s26 }
  0x75   : > { %1468 = vrot.lane.b32.xlu2 %v1835_v2, %s1611_s28 }
  0x77   : > { %1463 = vrot.lane.b32.xlu1 %v1799_v37, %s1612_s29  ;;  %v1304_v8 = vpop.permute.xlu2 %1303 }
  0x78   : > { %v1306_v43 = vunpack.i.h.bf16 %v1304_v8  ;;  %v1305_v45 = vunpack.i.l.bf16 %v1304_v8  ;;  %1458 = vrot.lane.b32.xlu0 %v1843_v15, %s1611_s28 }
  0x7a   : > { %v1916_v46 = vsel %vm783_vm2, %v1696_v18, %v1306_v43  ;;  %v1920_v47 = vsel %vm783_vm2, %v1693_v17, %v1305_v45  ;;  %v377_v18 = vrot.slane %v1875_v39, 1 }
  0x7c   : > { %v378_v17 = vsel %vm291_vm0, %v376_v54, %v377_v18  ;;  %v380_v56 = vsel %vm291_vm0, %v377_v18, %v379_v55 }
  0x7d   : > { %1483 = vrot.lane.b32.xlu2 %v1793_v32, %s1610_s27 }
  0x7f   : > { %1478 = vrot.lane.b32.xlu1 %v1818_v53, %s1609_s26  ;;  %v1926_v40 = vpop.permute.xlu2 %1318 }
  0x80   : > { %1473 = vrot.lane.b32.xlu0 %v1722_v31, %s1610_s27  ;;  %v1940_v31 = vpack.i.bf16 %v380_v56, %v378_v17 }
  0x85   : > { %1498 = vrot.lane.b32.xlu2 %v1767_v59, %s1612_s29  ;;  %v381_v59 = vrot.slane %v1872_v38, 2 }
  0x87   : > { %1493 = vrot.lane.b32.xlu1 %v1858_v52, %s1609_s26  ;;  %v1334_v53 = vpop.permute.xlu2 %1333  ;;  %v383_v16 = vsel %vm332_vm1, %v381_v59, %v382_v63 }
  0x88   : > { %1488 = vrot.lane.b32.xlu0 %v1367_v36, %s1608_s25  ;;  %v1336_v5 = vunpack.i.h.bf16 %v1334_v53  ;;  %v1335_v9 = vunpack.i.l.bf16 %v1334_v53 }
  0x89   : > { %v1289_v60 = vpop.permute.xlu1 %1288 }
  0x8a   : > { %v1942_v62 = vpop.permute.xlu0 %1278  ;;  %v1291_v49 = vunpack.i.h.bf16 %v1289_v60  ;;  %v1290_v54 = vunpack.i.l.bf16 %v1289_v60 }
  0x8c   : > { %v788_v56 = vsel %vm783_vm2, %v1672_v6, %v1290_v54 }
  0x8d   : > { %1513 = vrot.lane.b32.xlu2 %v1940_v31, %s1612_s29 }
  0x8f   : > { %1508 = vrot.lane.b32.xlu1 %v1812_v44, %s1611_s28  ;;  %v1349_v61 = vpop.permute.xlu2 %1348  ;;  %v1959_v44 = vpack.i.bf16 %v385_v20, %v383_v16 }
  0x90   : > { %1503 = vrot.lane.b32.xlu0 %v1392_v41, %s1608_s25  ;;  %v1351_v38 = vunpack.i.h.bf16 %v1349_v61 }
  0x91   : > { %v1294_v23 = vpop.permute.xlu1 %1293 }
  0x92   : > { %v1296_v10 = vunpack.i.h.bf16 %v1294_v23  ;;  %v1295_v13 = vunpack.i.l.bf16 %v1294_v23  ;;  %v1284_v21 = vpop.permute.xlu0 %1283 }
  0x93   : > { %v1286_v18 = vunpack.i.h.bf16 %v1284_v21  ;;  %v1285_v55 = vunpack.i.l.bf16 %v1284_v21  ;;  %v265_v21 = vld [vmem:[%s1657_s21 + $0xe0] sm:$0xff] }
  0x94   : > { %v791_v22 = vsel %vm783_vm2, %v1710_v25, %v1296_v10  ;;  %v790_v26 = vsel %vm783_vm2, %v1707_v24, %v1295_v13 }
  0x95   : > { %1528 = vrot.lane.b32.xlu2 %v1843_v15, %s1609_s26  ;;  %v1962_v27 = vsel %vm800_vm3, %v790_v26, %v1335_v9  ;;  %v1965_v28 = vsel %vm800_vm3, %v791_v22, %v1336_v5  ;;  %v1350_v15 = vunpack.i.l.bf16 %v1349_v61  ;;  %v787_v5 = vsel %vm783_vm2, %v1728_v35, %v1286_v18  ;;  %v931_v35 = vld [vmem:[%s2330_s1 + $0x10] sm:$0x3] }
  0x96   : > { %v941_v16 = vunpack.c.l.b16 %v931_v35  ;;  %v395_v18 = vrot.slane %v265_v21, 2 }
  0x97   : > { %1523 = vrot.lane.b32.xlu1 %v1698_v19, %s1610_s27  ;;  %v1364_v34 = vpop.permute.xlu2 %1363 }
  0x98   : > { %1518 = vrot.lane.b32.xlu0 %v1959_v44, %s1611_s28  ;;  %v1366_v53 = vunpack.i.h.bf16 %v1364_v34  ;;  %v1365_v60 = vunpack.i.l.bf16 %v1364_v34  ;;  %v390_v34 = vrot.slane %v265_v21, 1 }
  0x99   : > { %v1314_v24 = vpop.permute.xlu1 %1313 }
  0x9a   : > { %v1316_v25 = vunpack.i.h.bf16 %v1314_v24  ;;  %v1315_v36 = vunpack.i.l.bf16 %v1314_v24  ;;  %v1309_v39 = vpop.permute.xlu0 %1308 }
  0x9b   : > { %v1311_v8 = vunpack.i.h.bf16 %v1309_v39  ;;  %v1310_v19 = vunpack.i.l.bf16 %v1309_v39 }
  0x9c   : > { %v1973_v41 = vsel %vm783_vm2, %v1753_v51, %v1316_v25  ;;  %v1977_v42 = vsel %vm783_vm2, %v1750_v50, %v1315_v36  ;;  %v266_v25 = vld [vmem:[%s1657_s21 + $0xe8] sm:$0x3]  ;;  %v944_v36 = vpack.c.b16 %v941_v16, %v941_v16 }
  0x9d   : > { %1543 = vrot.lane.b32.xlu2 %v1835_v2, %s1609_s26  ;;  %v797_v43 = vsel %vm783_vm2, %v1765_v58, %v1311_v8  ;;  %v796_v45 = vsel %vm783_vm2, %v1762_v57, %v1310_v19 }
  0x9e   : > { %v1988_v51 = vsel %vm800_vm3, %v796_v45, %v1350_v15  ;;  %v1991_v50 = vsel %vm800_vm3, %v797_v43, %v1351_v38  ;;  %v392_v38 = vrot.slane %v266_v25, 1  ;;  %v974_v15 = vsel %vm972_vm5, %v944_v36, 0 }
  0x9f   : > { %1538 = vrot.lane.b32.xlu1 %v1864_v33, %s1608_s25  ;;  %v1995_v57 = vpop.permute.xlu2 %1378  ;;  %v789_v33 = vsel %vm783_vm2, %v1675_v7, %v1291_v49  ;;  %v786_v7 = vsel %vm783_vm2, %v1718_v30, %v1285_v55  ;;  %981 = vmatpush.bf16.msra.mxu0 %v974_v15 }
  0xa0   : > { %1533 = vrot.lane.b32.xlu0 %v1799_v37, %s1610_s27  ;;  %v393_v39 = vsel %vm291_vm0, %v390_v34, %v392_v38  ;;  %1251 = vmatpush.bf16.msra.mxu1 %v974_v15 }
  0xa1   : > { %v1329_v58 = vpop.permute.xlu1 %1328  ;;  %1252 = vmatpush.bf16.msra.mxu2 %v974_v15  ;;  %1253 = vmatpush.bf16.msra.mxu3 %v974_v15 }
  0xa2   : > { %v1331_v2 = vunpack.i.h.bf16 %v1329_v58  ;;  %v1330_v17 = vunpack.i.l.bf16 %v1329_v58  ;;  %v1324_v59 = vpop.permute.xlu0 %1323 }
  0xa3   : > { %v1326_v3 = vunpack.i.h.bf16 %v1324_v59  ;;  %v1325_v61 = vunpack.i.l.bf16 %v1324_v59 }
  0xa4   : > { %v2002_v63 = vsel %vm800_vm3, %v788_v56, %v1330_v17  ;;  %v2005_v37 = vsel %vm800_vm3, %v789_v33, %v1331_v2  ;;  %v397_v33 = vrot.slane %v266_v25, 2 }
  0xa5   : > { %1558 = vrot.lane.b32.xlu2 %v1839_v14, %s1611_s28  ;;  %v803_v6 = vsel %vm800_vm3, %v786_v7, %v1325_v61  ;;  %v804_v9 = vsel %vm800_vm3, %v787_v5, %v1326_v3 }
  0xa6   : > { %v2018_v23 = vsel %vm817_vm4, %v803_v6, %v1365_v60  ;;  %v2021_v10 = vsel %vm817_vm4, %v804_v9, %v1366_v53  ;;  %v398_v3 = vsel %vm332_vm1, %v395_v18, %v397_v33 }
  0xa7   : > { %1553 = vrot.lane.b32.xlu1 %v1881_v29, %s1608_s25  ;;  %v264_v29 = vld [vmem:[%s1657_s21 + $0xd8] sm:$0xff] }
  0xa8   : > { %1548 = vrot.lane.b32.xlu0 %v1746_v48, %s1612_s29  ;;  %v1394_v48 = vpop.permute.xlu2 %1393  ;;  %v389_v24 = vrot.slane %v264_v29, 1  ;;  %v1582_v45 = vpack.i.bf16 %v265_v21, %v264_v29  ;;  %v394_v17 = vrot.slane %v264_v29, 2  ;;  %v1281_v29 = vunpack.i.h.bf16 %v1942_v62 }
  0xa9   : > { %v1344_v30 = vpop.permute.xlu1 %1343  ;;  %v1395_v19 = vunpack.i.l.bf16 %v1394_v48  ;;  %v1280_v21 = vunpack.i.l.bf16 %v1942_v62 }
  0xaa   : > { %v1346_v14 = vunpack.i.h.bf16 %v1344_v30  ;;  %v1345_v13 = vunpack.i.l.bf16 %v1344_v30  ;;  %v2028_v20 = vpop.permute.xlu0 %1338  ;;  %v396_v59 = vsel %vm332_vm1, %v394_v17, %v395_v18  ;;  %v785_v25 = vsel %vm783_vm2, %v1686_v12, %v1281_v29 }
  0xab   : > { %v784_v36 = vsel %vm783_vm2, %v1683_v11, %v1280_v21 }
  0xac   : > { %v2034_v22 = vsel %vm800_vm3, %v1916_v46, %v1346_v14  ;;  %v2038_v26 = vsel %vm800_vm3, %v1920_v47, %v1345_v13  ;;  %v1250_v46 = vld [vmem:[%s2330_s1 + $0x8] sm:$0xff]  ;;  %v391_v47 = vsel %vm291_vm0, %v389_v24, %v390_v34  ;;  %v1320_v24 = vunpack.i.l.bf16 %v1926_v40 }
  0xad   : > { %1573 = vrot.lane.b32.xlu2 %v1940_v31, %s1610_s27  ;;  %v1587_v8 = vpack.i.bf16 %v393_v39, %v391_v47  ;;  %982 = vmatpush.bf16.msra.mxu0 %v1250_v46 }
  0xae   : > { %1254 = vmatpush.bf16.msra.mxu1 %v1250_v46  ;;  %1255 = vmatpush.bf16.msra.mxu2 %v1250_v46  ;;  %v801_v47 = vsel %vm800_vm3, %v784_v36, %v1320_v24  ;;  %v1380_v36 = vunpack.i.l.bf16 %v1995_v57 }
  0xaf   : > { %1568 = vrot.lane.b32.xlu1 %v1858_v52, %s1611_s28  ;;  %v1396_v52 = vunpack.i.h.bf16 %v1394_v48  ;;  %1256 = vmatpush.bf16.msra.mxu3 %v1250_v46 }
  0xb0   : > { %1563 = vrot.lane.b32.xlu0 %v1793_v32, %s1612_s29  ;;  %v1249_v32 = vld [vmem:[%s2330_s1] sm:$0xff]  ;;  %v2058_v55 = vpop.permute.xlu2 %1408 }
  0xb1   : > { %v2052_v31 = vpop.permute.xlu1 %1358  ;;  %983 = vmatpush.bf16.msra.mxu0 %v1249_v32 }
  0xb2   : > { %v1354_v43 = vpop.permute.xlu0 %1353  ;;  %1257 = vmatpush.bf16.msra.mxu1 %v1249_v32  ;;  %1258 = vmatpush.bf16.msra.mxu2 %v1249_v32  ;;  %v1361_v62 = vunpack.i.h.bf16 %v2052_v31 }
  0xb3   : > { %v1356_v49 = vunpack.i.h.bf16 %v1354_v43  ;;  %v1355_v54 = vunpack.i.l.bf16 %v1354_v43  ;;  %1259 = vmatpush.bf16.msra.mxu3 %v1249_v32  ;;  %v1410_v43 = vunpack.i.l.bf16 %v2058_v55 }
  0xb5   : > { %1588 = vrot.lane.b32.xlu2 %v1587_v8, %s1612_s29  ;;  %v816_v58 = vsel %vm800_vm3, %v1973_v41, %v1356_v49  ;;  %v815_v2 = vsel %vm800_vm3, %v1977_v42, %v1355_v54 }
  0xb6   : > { %v2066_v56 = vsel %vm817_vm4, %v815_v2, %v1395_v19  ;;  %v2069_v53 = vsel %vm817_vm4, %v816_v58, %v1396_v52  ;;  %v1411_v19 = vunpack.i.h.bf16 %v2058_v55 }
  0xb7   : > { %1583 = vrot.lane.b32.xlu1 %v1582_v45, %s1608_s25 }
  0xb8   : > { %1578 = vrot.lane.b32.xlu0 %v1959_v44, %s1609_s26  ;;  %v1592_v44 = vpack.i.bf16 %v398_v3, %v396_v59  ;;  %v2085_v6 = vpop.permute.xlu2 %1423 }
  0xb9   : > { %v1374_v41 = vpop.permute.xlu1 %1373 }
  0xba   : > { %v1376_v60 = vunpack.i.h.bf16 %v1374_v41  ;;  %v1375_v42 = vunpack.i.l.bf16 %v1374_v41  ;;  %v2075_v61 = vpop.permute.xlu0 %1368 }
  0xbb   : > { %v1371_v21 = vunpack.i.h.bf16 %v2075_v61 }
  0xbc   : > { %v2079_v5 = vsel %vm817_vm4, %v1962_v27, %v1375_v42  ;;  %v2083_v7 = vsel %vm817_vm4, %v1965_v28, %v1376_v60 }
  0xc0   : > { %1593 = vrot.lane.b32.xlu0 %v1592_v44, %s1611_s28  ;;  %v2114_v38 = vpop.permute.xlu2 %1438 }
  0xc1   : > { %v1389_v9 = vpop.permute.xlu1 %1388 }
  0xc2   : > { %v1391_v30 = vunpack.i.h.bf16 %v1389_v9  ;;  %v1390_v35 = vunpack.i.l.bf16 %v1389_v9  ;;  %v1384_v14 = vpop.permute.xlu0 %1383 }
  0xc3   : > { %v1386_v16 = vunpack.i.h.bf16 %v1384_v14  ;;  %v1385_v28 = vunpack.i.l.bf16 %v1384_v14  ;;  %v1300_v14 = vunpack.i.l.bf16 %v1904_v4 }
  0xc4   : > { %v2090_v13 = vsel %vm817_vm4, %v1988_v51, %v1390_v35  ;;  %v2094_v27 = vsel %vm817_vm4, %v1991_v50, %v1391_v30  ;;  %v1321_v51 = vunpack.i.h.bf16 %v1926_v40  ;;  %v1301_v35 = vunpack.i.h.bf16 %v1904_v4 }
  0xc5   : > { %v2100_v48 = vsel %vm817_vm4, %v2034_v22, %v1386_v16  ;;  %v2104_v34 = vsel %vm817_vm4, %v2038_v26, %v1385_v28  ;;  %v1360_v22 = vunpack.i.l.bf16 %v2052_v31  ;;  %v1341_v16 = vunpack.i.h.bf16 %v2028_v20 }
  0xc6   : > { %v802_v40 = vsel %vm800_vm3, %v785_v25, %v1321_v51  ;;  %v1340_v28 = vunpack.i.l.bf16 %v2028_v20  ;;  %v1370_v51 = vunpack.i.l.bf16 %v2075_v61  ;;  %v793_v24 = vsel %vm783_vm2, %v1663_v1, %v1301_v35 }
  0xc7   : > { %v818_v39 = vsel %vm817_vm4, %v801_v47, %v1360_v22  ;;  %v819_v12 = vsel %vm817_vm4, %v802_v40, %v1361_v62  ;;  %v1381_v25 = vunpack.i.h.bf16 %v1995_v57  ;;  %v810_v62 = vsel %vm800_vm3, %v793_v24, %v1341_v16 }
  0xc8   : > { %v2126_v2 = vpop.permute.xlu2 %1453  ;;  %v1426_v22 = vunpack.i.h.bf16 %v2085_v6  ;;  %v823_v61 = vsel %vm817_vm4, %v2005_v37, %v1371_v21  ;;  %v822_v1 = vsel %vm817_vm4, %v2002_v63, %v1370_v51 }
  0xc9   : > { %v1404_v50 = vpop.permute.xlu1 %1403  ;;  %v1456_v63 = vunpack.i.h.bf16 %v2126_v2 }
  0xca   : > { %v1399_v15 = vpop.permute.xlu0 %1398  ;;  %v1406_v8 = vunpack.i.h.bf16 %v1404_v50  ;;  %v1405_v11 = vunpack.i.l.bf16 %v1404_v50  ;;  %v792_v50 = vsel %vm783_vm2, %v1660_v0, %v1300_v14 }
  0xcb   : > { %v1401_v26 = vunpack.i.h.bf16 %v1399_v15  ;;  %v1400_v46 = vunpack.i.l.bf16 %v1399_v15  ;;  %v809_v20 = vsel %vm800_vm3, %v792_v50, %v1340_v28  ;;  %v1425_v15 = vunpack.i.l.bf16 %v2085_v6 }
  0xcc   : > { %v1440_v6 = vunpack.i.l.bf16 %v2114_v38 }
  0xcd   : > { %v835_v52 = vsel %vm834_vm6, %v818_v39, %v1400_v46  ;;  %v836_v31 = vsel %vm834_vm6, %v819_v12, %v1401_v26  ;;  %v826_v12 = vsel %vm817_vm4, %v809_v20, %v1380_v36  ;;  %v839_v37 = vsel %vm834_vm6, %v822_v1, %v1425_v15 }
  0xce   : > { %v852_v49 = vsel %vm851_vm7, %v835_v52, %v1405_v11  ;;  %v853_v54 = vsel %vm851_vm7, %v836_v31, %v1406_v8  ;;  %v827_v8 = vsel %vm817_vm4, %v810_v62, %v1381_v25  ;;  %v1441_v11 = vunpack.i.h.bf16 %v2114_v38 }
  0xcf   : > { %v869_v41 = vsel %vm868_vm8, %v852_v49, %v1410_v43  ;;  %v870_v60 = vsel %vm868_vm8, %v853_v54, %v1411_v19  ;;  %v840_v52 = vsel %vm834_vm6, %v823_v61, %v1426_v22  ;;  %v1455_v31 = vunpack.i.l.bf16 %v2126_v2 }
  0xd0   : > { %v1469_v29 = vpop.permute.xlu2 %1468 }
  0xd1   : > { %v1419_v45 = vpop.permute.xlu1 %1418 }
  0xd2   : > { %v1421_v18 = vunpack.i.h.bf16 %v1419_v45  ;;  %v1420_v32 = vunpack.i.l.bf16 %v1419_v45  ;;  %v1414_v58 = vpop.permute.xlu0 %1413 }
  0xd3   : > { %v1416_v17 = vunpack.i.h.bf16 %v1414_v58  ;;  %v1415_v33 = vunpack.i.l.bf16 %v1414_v58  ;;  %v1470_v58 = vunpack.i.l.bf16 %v1469_v29 }
  0xd5   : > { %v886_v55 = vsel %vm885_vm9, %v869_v41, %v1415_v33  ;;  %v887_v42 = vsel %vm885_vm9, %v870_v60, %v1416_v17 }
  0xd6   : > { %v903_v59 = vsel %vm902_vm10, %v886_v55, %v1420_v32  ;;  %v904_v3 = vsel %vm902_vm10, %v887_v42, %v1421_v18  ;;  %v1471_v32 = vunpack.i.h.bf16 %v1469_v29 }
  0xd7   : > { %v919_v44 = vpack.c.bf16 %v904_v3, %v903_v59 }
  0xd8   : > { %v2165_v45 = vpop.permute.xlu2 %1483 }
  0xd9   : > { %v1434_v9 = vpop.permute.xlu1 %1433  ;;  %1238 = vmatmul.msk.bf16.vlgmr.msra.gmra.mxu0 %vm947_vm11, %v919_v44 }
  0xda   : > { %v1429_v30 = vpop.permute.xlu0 %1428  ;;  %v1436_v0 = vunpack.i.h.bf16 %v1434_v9  ;;  %v1435_v26 = vunpack.i.l.bf16 %v1434_v9 }
  0xdb   : > { %v1431_v47 = vunpack.i.h.bf16 %v1429_v30  ;;  %v1430_v57 = vunpack.i.l.bf16 %v1429_v30 }
  0xdc   : > { %v843_v19 = vsel %vm834_vm6, %v826_v12, %v1435_v26  ;;  %v844_v43 = vsel %vm834_vm6, %v827_v8, %v1436_v0 }
  0xdd   : > { %v856_v49 = vsel %vm851_vm7, %v839_v37, %v1430_v57  ;;  %v857_v54 = vsel %vm851_vm7, %v840_v52, %v1431_v47 }
  0xde   : > { %v873_v55 = vsel %vm868_vm8, %v856_v49, %v1440_v6  ;;  %v874_v42 = vsel %vm868_vm8, %v857_v54, %v1441_v11  ;;  %v1485_v49 = vunpack.i.l.bf16 %v2165_v45 }
  0xe1   : > { %v1449_v4 = vpop.permute.xlu1 %1448 }
  0xe2   : > { %v1444_v46 = vpop.permute.xlu0 %1443  ;;  %v1451_v17 = vunpack.i.h.bf16 %v1449_v4  ;;  %v1450_v33 = vunpack.i.l.bf16 %v1449_v4  ;;  %v1499_v4 = vpop.permute.xlu2 %1498 }
  0xe3   : > { %v1446_v40 = vunpack.i.h.bf16 %v1444_v46  ;;  %v1445_v39 = vunpack.i.l.bf16 %v1444_v46  ;;  %v1500_v12 = vunpack.i.l.bf16 %v1499_v4 }
  0xe4   : > { %v890_v16 = vsel %vm885_vm9, %v873_v55, %v1450_v33  ;;  %v891_v28 = vsel %vm885_vm9, %v874_v42, %v1451_v17 }
  0xe5   : > { %v860_v38 = vsel %vm851_vm7, %v843_v19, %v1445_v39  ;;  %v861_v18 = vsel %vm851_vm7, %v844_v43, %v1446_v40  ;;  %v1501_v39 = vunpack.i.h.bf16 %v1499_v4  ;;  %v1486_v43 = vunpack.i.h.bf16 %v2165_v45 }
  0xe6   : > { %v877_v59 = vsel %vm868_vm8, %v860_v38, %v1455_v31  ;;  %v878_v3 = vsel %vm868_vm8, %v861_v18, %v1456_v63 }
  0xe9   : > { %v1464_v41 = vpop.permute.xlu1 %1463 }
  0xea   : > { %v1466_v2 = vunpack.i.h.bf16 %v1464_v41  ;;  %v1465_v60 = vunpack.i.l.bf16 %v1464_v41  ;;  %v1459_v44 = vpop.permute.xlu0 %1458  ;;  %v1514_v26 = vpop.permute.xlu2 %1513 }
  0xeb   : > { %v1461_v35 = vunpack.i.h.bf16 %v1459_v44  ;;  %v1460_v14 = vunpack.i.l.bf16 %v1459_v44  ;;  %v1516_v55 = vunpack.i.h.bf16 %v1514_v26  ;;  %v1515_v45 = vunpack.i.l.bf16 %v1514_v26 }
  0xec   : > { %v894_v9 = vsel %vm885_vm9, %v877_v59, %v1465_v60  ;;  %v895_v30 = vsel %vm885_vm9, %v878_v3, %v1466_v2  ;;  %v847_v2 = vsel %vm834_vm6, %v2090_v13, %v1485_v49  ;;  %v848_v60 = vsel %vm834_vm6, %v2094_v27, %v1486_v43 }
  0xed   : > { %v911_v29 = vsel %vm902_vm10, %v894_v9, %v1470_v58  ;;  %v912_v21 = vsel %vm902_vm10, %v895_v30, %v1471_v32  ;;  %v907_v51 = vsel %vm902_vm10, %v890_v16, %v1460_v14  ;;  %v908_v24 = vsel %vm902_vm10, %v891_v28, %v1461_v35 }
  0xee   : > { %v923_v50 = vpack.c.bf16 %v912_v21, %v911_v29  ;;  %v921_v25 = vpack.c.bf16 %v908_v24, %v907_v51 }
  0xf0   : > { %1242 = vmatmul.msk.bf16.vlgmr.msra.gmra.mxu2 %vm947_vm11, %v923_v50  ;;  %1240 = vmatmul.msk.bf16.vlgmr.msra.gmra.mxu1 %vm947_vm11, %v921_v25 }
  0xf1   : > { %v1479_v36 = vpop.permute.xlu1 %1478 }
  0xf2   : > { %v1474_v62 = vpop.permute.xlu0 %1473  ;;  %v1481_v61 = vunpack.i.h.bf16 %v1479_v36  ;;  %v1480_v1 = vunpack.i.l.bf16 %v1479_v36  ;;  %v1529_v17 = vpop.permute.xlu2 %1528 }
  0xf3   : > { %v1476_v20 = vunpack.i.h.bf16 %v1474_v62  ;;  %v1475_v22 = vunpack.i.l.bf16 %v1474_v62  ;;  %v1531_v36 = vunpack.i.h.bf16 %v1529_v17  ;;  %v1530_v4 = vunpack.i.l.bf16 %v1529_v17 }
  0xf5   : > { %v837_v46 = vsel %vm834_vm6, %v2018_v23, %v1475_v22  ;;  %v838_v47 = vsel %vm834_vm6, %v2021_v10, %v1476_v20 }
  0xf6   : > { %v854_v8 = vsel %vm851_vm7, %v837_v46, %v1480_v1  ;;  %v855_v11 = vsel %vm851_vm7, %v838_v47, %v1481_v61 }
  0xf9   : > { %v1494_v15 = vpop.permute.xlu1 %1493 }
  0xfa   : > { %v1489_v0 = vpop.permute.xlu0 %1488  ;;  %v1496_v18 = vunpack.i.h.bf16 %v1494_v15  ;;  %v1495_v32 = vunpack.i.l.bf16 %v1494_v15  ;;  %v1544_v21 = vpop.permute.xlu2 %1543 }
  0xfb   : > { %v1491_v57 = vunpack.i.h.bf16 %v1489_v0  ;;  %v1490_v40 = vunpack.i.l.bf16 %v1489_v0 }
  0xfc   : > { %v864_v42 = vsel %vm851_vm7, %v847_v2, %v1495_v32  ;;  %v865_v59 = vsel %vm851_vm7, %v848_v60, %v1496_v18 }
  0xfd   : > { %v871_v6 = vsel %vm868_vm8, %v854_v8, %v1490_v40  ;;  %v872_v37 = vsel %vm868_vm8, %v855_v11, %v1491_v57 }
  0xfe   : > { %v888_v23 = vsel %vm885_vm9, %v871_v6, %v1500_v12  ;;  %v889_v10 = vsel %vm885_vm9, %v872_v37, %v1501_v39 }
 0x101   : > { %v1509_v52 = vpop.permute.xlu1 %1508 }
 0x102   : > { %v1511_v63 = vunpack.i.h.bf16 %v1509_v52  ;;  %v1510_v31 = vunpack.i.l.bf16 %v1509_v52  ;;  %v1504_v19 = vpop.permute.xlu0 %1503  ;;  %v1559_v1 = vpop.permute.xlu2 %1558 }
 0x103   : > { %v1506_v33 = vunpack.i.h.bf16 %v1504_v19  ;;  %v1505_v41 = vunpack.i.l.bf16 %v1504_v19  ;;  %v1561_v0 = vunpack.i.h.bf16 %v1559_v1  ;;  %v1560_v26 = vunpack.i.l.bf16 %v1559_v1 }
 0x104   : > { %v905_v54 = vsel %vm902_vm10, %v888_v23, %v1510_v31  ;;  %v906_v38 = vsel %vm902_vm10, %v889_v10, %v1511_v63  ;;  %v1546_v63 = vunpack.i.h.bf16 %v1544_v21  ;;  %v1545_v31 = vunpack.i.l.bf16 %v1544_v21 }
 0x105   : > { %v920_v58 = vpack.c.bf16 %v906_v38, %v905_v54  ;;  %v881_v44 = vsel %vm868_vm8, %v864_v42, %v1505_v41  ;;  %v882_v9 = vsel %vm868_vm8, %v865_v59, %v1506_v33 }
 0x106   : > { %v898_v16 = vsel %vm885_vm9, %v881_v44, %v1515_v45  ;;  %v899_v13 = vsel %vm885_vm9, %v882_v9, %v1516_v55 }
 0x107   : > { %1239 = vmatmul.msk.bf16.gmra.mxu0 %vm947_vm11, %v920_v58 }
 0x109   : > { %v1524_v3 = vpop.permute.xlu1 %1523 }
 0x10a   : > { %v1519_v30 = vpop.permute.xlu0 %1518  ;;  %v1526_v50 = vunpack.i.h.bf16 %v1524_v3  ;;  %v1525_v25 = vunpack.i.l.bf16 %v1524_v3  ;;  %v1574_v60 = vpop.permute.xlu2 %1573 }
 0x10b   : > { %v1521_v35 = vunpack.i.h.bf16 %v1519_v30  ;;  %v1520_v14 = vunpack.i.l.bf16 %v1519_v30  ;;  %v1576_v3 = vunpack.i.h.bf16 %v1574_v60  ;;  %v1575_v44 = vunpack.i.l.bf16 %v1574_v60 }
 0x10c   : > { %v841_v62 = vsel %vm834_vm6, %v2079_v5, %v1525_v25  ;;  %v842_v20 = vsel %vm834_vm6, %v2083_v7, %v1526_v50 }
 0x10d   : > { %v915_v27 = vsel %vm902_vm10, %v898_v16, %v1520_v14  ;;  %v916_v28 = vsel %vm902_vm10, %v899_v13, %v1521_v35  ;;  %v858_v47 = vsel %vm851_vm7, %v841_v62, %v1530_v4  ;;  %v859_v57 = vsel %vm851_vm7, %v842_v20, %v1531_v36 }
 0x10e   : > { %v925_v29 = vpack.c.bf16 %v916_v28, %v915_v27  ;;  %v849_v16 = vsel %vm834_vm6, %v2066_v56, %v1575_v44  ;;  %v850_v13 = vsel %vm834_vm6, %v2069_v53, %v1576_v3 }
 0x110   : > { %1244 = vmatmul.msk.bf16.vlgmr.msra.gmra.mxu3 %vm947_vm11, %v925_v29 }
 0x111   : > { %v1539_v51 = vpop.permute.xlu1 %1538 }
 0x112   : > { %v1534_v24 = vpop.permute.xlu0 %1533  ;;  %v1541_v22 = vunpack.i.h.bf16 %v1539_v51  ;;  %v1540_v15 = vunpack.i.l.bf16 %v1539_v51  ;;  %v1589_v29 = vpop.permute.xlu2 %1588 }
 0x113   : > { %v1536_v8 = vunpack.i.h.bf16 %v1534_v24  ;;  %v1535_v11 = vunpack.i.l.bf16 %v1534_v24  ;;  %v1591_v24 = vunpack.i.h.bf16 %v1589_v29  ;;  %v1590_v50 = vunpack.i.l.bf16 %v1589_v29 }
 0x114   : > { %v875_v12 = vsel %vm868_vm8, %v858_v47, %v1540_v15  ;;  %v876_v5 = vsel %vm868_vm8, %v859_v57, %v1541_v22 }
 0x115   : > { %v845_v23 = vsel %vm834_vm6, %v2104_v34, %v1535_v11  ;;  %v846_v10 = vsel %vm834_vm6, %v2100_v48, %v1536_v8 }
 0x116   : > { %v862_v58 = vsel %vm851_vm7, %v845_v23, %v1545_v31  ;;  %v863_v17 = vsel %vm851_vm7, %v846_v10, %v1546_v63 }
 0x119   : > { %v1554_v61 = vpop.permute.xlu1 %1553 }
 0x11a   : > { %v1549_v46 = vpop.permute.xlu0 %1548  ;;  %v1556_v43 = vunpack.i.h.bf16 %v1554_v61  ;;  %v1555_v49 = vunpack.i.l.bf16 %v1554_v61 }
 0x11b   : > { %v1551_v40 = vunpack.i.h.bf16 %v1549_v46  ;;  %v1550_v39 = vunpack.i.l.bf16 %v1549_v46 }
 0x11c   : > { %v879_v2 = vsel %vm868_vm8, %v862_v58, %v1555_v49  ;;  %v880_v34 = vsel %vm868_vm8, %v863_v17, %v1556_v43 }
 0x11d   : > { %v893_v7 = vsel %vm885_vm9, %v876_v5, %v1551_v40  ;;  %v892_v6 = vsel %vm885_vm9, %v875_v12, %v1550_v39 }
 0x11e   : > { %v909_v37 = vsel %vm902_vm10, %v892_v6, %v1560_v26  ;;  %v910_v52 = vsel %vm902_vm10, %v893_v7, %v1561_v0 }
 0x11f   : > { %v922_v19 = vpack.c.bf16 %v910_v52, %v909_v37 }
 0x121   : > { %v1569_v54 = vpop.permute.xlu1 %1568  ;;  %1241 = vmatmul.msk.bf16.gmra.mxu1 %vm947_vm11, %v922_v19 }
 0x122   : > { %v1564_v38 = vpop.permute.xlu0 %1563  ;;  %v1571_v18 = vunpack.i.h.bf16 %v1569_v54  ;;  %v1570_v32 = vunpack.i.l.bf16 %v1569_v54 }
 0x123   : > { %v1566_v33 = vunpack.i.h.bf16 %v1564_v38  ;;  %v1565_v41 = vunpack.i.l.bf16 %v1564_v38 }
 0x125   : > { %v896_v48 = vsel %vm885_vm9, %v879_v2, %v1565_v41  ;;  %v897_v55 = vsel %vm885_vm9, %v880_v34, %v1566_v33 }
 0x126   : > { %v913_v45 = vsel %vm902_vm10, %v896_v48, %v1570_v32  ;;  %v914_v42 = vsel %vm902_vm10, %v897_v55, %v1571_v18 }
 0x127   : > { %v924_v59 = vpack.c.bf16 %v914_v42, %v913_v45 }
 0x129   : > { %1243 = vmatmul.msk.bf16.gmra.mxu2 %vm947_vm11, %v924_v59  ;;  %v1584_v30 = vpop.permute.xlu1 %1583 }
 0x12a   : > { %v1579_v9 = vpop.permute.xlu0 %1578  ;;  %v1586_v27 = vunpack.i.h.bf16 %v1584_v30  ;;  %v1585_v28 = vunpack.i.l.bf16 %v1584_v30 }
 0x12b   : > { %v1581_v35 = vunpack.i.h.bf16 %v1579_v9  ;;  %v1580_v14 = vunpack.i.l.bf16 %v1579_v9 }
 0x12d   : > { %v866_v21 = vsel %vm851_vm7, %v849_v16, %v1580_v14  ;;  %v867_v51 = vsel %vm851_vm7, %v850_v13, %v1581_v35 }
 0x12e   : > { %v883_v25 = vsel %vm868_vm8, %v866_v21, %v1585_v28  ;;  %v884_v36 = vsel %vm868_vm8, %v867_v51, %v1586_v27 }
 0x12f   : > { %v900_v20 = vsel %vm885_vm9, %v883_v25, %v1590_v50  ;;  %v901_v53 = vsel %vm885_vm9, %v884_v36, %v1591_v24 }
 0x132   : > { %v1594_v4 = vpop.permute.xlu0 %1593 }
 0x133   : > { %v1596_v62 = vunpack.i.h.bf16 %v1594_v4  ;;  %v1595_v56 = vunpack.i.l.bf16 %v1594_v4 }
 0x135   : > { %v917_v22 = vsel %vm902_vm10, %v900_v20, %v1595_v56  ;;  %v918_v15 = vsel %vm902_vm10, %v901_v53, %v1596_v62 }
 0x136   : > { %v926_v61 = vpack.c.bf16 %v918_v15, %v917_v22 }
 0x138   : > { %1245 = vmatmul.msk.bf16.gmra.mxu3 %vm947_vm11, %v926_v61 }
 0x156   : > { %v985_v1 = vpop.f32.mrf.mxu0 }
 0x157   : > { %1025 = vst.msk [vmem:[%s2256_s14] sm:$0xff] %vm902_vm10, %v985_v1  ;;  %v1078_v0 = vmul.f32 %v985_v1, %v985_v1  ;;  %v1041_v46 = vsel %vm902_vm10, %v985_v1, 0.0 }
 0x159   : > { %v1094_v39 = vsel %vm902_vm10, %v1078_v0, 0.0 }
 0x15e   : > { %v987_v26 = vpop.f32.mrf.mxu0 }
 0x15f   : > { %1026 = vst.msk [vmem:[%s2256_s14 + $0x8] sm:$0xff] %vm902_vm10, %v987_v26  ;;  %v1042_v47 = vsel %vm902_vm10, %v987_v26, 0.0  ;;  %v1079_v57 = vmul.f32 %v987_v26, %v987_v26 }
 0x160   : > { %v1043_v40 = vadd.f32 %v1042_v47, %v1041_v46 }
 0x161   : > { %v1095_v12 = vsel %vm902_vm10, %v1079_v57, 0.0 }
 0x162   : > { %v1096_v5 = vadd.f32 %v1095_v12, %v1094_v39 }
 0x16d   : > { %v995_v8 = vpop.f32.mrf.mxu1 }
 0x16e   : > { %1029 = vst.msk [vmem:[%s2256_s14 + $0x20] sm:$0xff] %vm902_vm10, %v995_v8  ;;  %v1082_v10 = vmul.f32 %v995_v8, %v995_v8  ;;  %v1048_v18 = vsel %vm902_vm10, %v995_v8, 0.0 }
 0x170   : > { %v1101_v33 = vsel %vm902_vm10, %v1082_v10, 0.0 }
 0x173   : > { %v1005_v11 = vpop.f32.mrf.mxu2 }
 0x174   : > { %1033 = vst.msk [vmem:[%s2256_s14 + $0x40] sm:$0xff] %vm902_vm10, %v1005_v11  ;;  %v1086_v14 = vmul.f32 %v1005_v11, %v1005_v11  ;;  %v1056_v29 = vsel %vm902_vm10, %v1005_v11, 0.0 }
 0x175   : > { %v997_v7 = vpop.f32.mrf.mxu1 }
 0x176   : > { %1030 = vst.msk [vmem:[%s2256_s14 + $0x28] sm:$0xff] %vm902_vm10, %v997_v7  ;;  %v1083_v48 = vmul.f32 %v997_v7, %v997_v7  ;;  %v1050_v45 = vsel %vm902_vm10, %v997_v7, 0.0  ;;  %v1109_v50 = vsel %vm902_vm10, %v1086_v14, 0.0 }
 0x178   : > { %v1103_v3 = vsel %vm902_vm10, %v1083_v48, 0.0 }
 0x17b   : > { %v1007_v6 = vpop.f32.mrf.mxu2 }
 0x17c   : > { %1034 = vst.msk [vmem:[%s2256_s14 + $0x48] sm:$0xff] %vm902_vm10, %v1007_v6  ;;  %v1087_v4 = vmul.f32 %v1007_v6, %v1007_v6  ;;  %v1058_v62 = vsel %vm902_vm10, %v1007_v6, 0.0 }
 0x17e   : > { %v1111_v53 = vsel %vm902_vm10, %v1087_v4, 0.0 }
 0x184   : > { %v990_v37 = vpop.f32.mrf.mxu0 }
 0x185   : > { %1027 = vst.msk [vmem:[%s2256_s14 + $0x10] sm:$0xff] %vm902_vm10, %v990_v37  ;;  %v1080_v52 = vmul.f32 %v990_v37, %v990_v37  ;;  %v1044_v63 = vsel %vm902_vm10, %v990_v37, 0.0 }
 0x186   : > { %v1045_v19 = vadd.f32 %v1044_v63, %v1043_v40 }
 0x187   : > { %v1097_v31 = vsel %vm902_vm10, %v1080_v52, 0.0 }
 0x188   : > { %v1098_v54 = vadd.f32 %v1097_v31, %v1096_v5 }
 0x18c   : > { %v992_v23 = vpop.f32.mrf.mxu0 }
 0x18d   : > { %1028 = vst.msk [vmem:[%s2256_s14 + $0x18] sm:$0xff] %vm902_vm10, %v992_v23  ;;  %v1046_v43 = vsel %vm902_vm10, %v992_v23, 0.0  ;;  %v1081_v49 = vmul.f32 %v992_v23, %v992_v23 }
 0x18e   : > { %v1047_v38 = vadd.f32 %v1046_v43, %v1045_v19 }
 0x18f   : > { %v1099_v32 = vsel %vm902_vm10, %v1081_v49, 0.0 }
 0x190   : > { %v1049_v58 = vadd.f32 %v1048_v18, %v1047_v38  ;;  %v1100_v17 = vadd.f32 %v1099_v32, %v1098_v54 }
 0x192   : > { %v1102_v41 = vadd.f32 %v1101_v33, %v1100_v17  ;;  %v1051_v59 = vadd.f32 %v1050_v45, %v1049_v58 }
 0x193   : > { %v1015_v2 = vpop.f32.mrf.mxu3 }
 0x194   : > { %1037 = vst.msk [vmem:[%s2256_s14 + $0x60] sm:$0xff] %vm902_vm10, %v1015_v2  ;;  %v1104_v30 = vadd.f32 %v1103_v3, %v1102_v41  ;;  %v1090_v39 = vmul.f32 %v1015_v2, %v1015_v2  ;;  %v1064_v5 = vsel %vm902_vm10, %v1015_v2, 0.0 }
 0x196   : > { %v1117_v7 = vsel %vm902_vm10, %v1090_v39, 0.0 }
 0x19b   : > { %v1017_v34 = vpop.f32.mrf.mxu3 }
 0x19c   : > { %1038 = vst.msk [vmem:[%s2256_s14 + $0x68] sm:$0xff] %vm902_vm10, %v1017_v34  ;;  %v1091_v6 = vmul.f32 %v1017_v34, %v1017_v34  ;;  %v1066_v52 = vsel %vm902_vm10, %v1017_v34, 0.0 }
 0x19e   : > { %v1000_v60 = vpop.f32.mrf.mxu1  ;;  %v1119_v19 = vsel %vm902_vm10, %v1091_v6, 0.0 }
 0x19f   : > { %1031 = vst.msk [vmem:[%s2256_s14 + $0x30] sm:$0xff] %vm902_vm10, %v1000_v60  ;;  %v1084_v55 = vmul.f32 %v1000_v60, %v1000_v60  ;;  %v1052_v42 = vsel %vm902_vm10, %v1000_v60, 0.0 }
 0x1a0   : > { %v1053_v9 = vadd.f32 %v1052_v42, %v1051_v59 }
 0x1a1   : > { %v1105_v44 = vsel %vm902_vm10, %v1084_v55, 0.0 }
 0x1a2   : > { %v1106_v27 = vadd.f32 %v1105_v44, %v1104_v30 }
 0x1a6   : > { %v1002_v35 = vpop.f32.mrf.mxu1 }
 0x1a7   : > { %1032 = vst.msk [vmem:[%s2256_s14 + $0x38] sm:$0xff] %vm902_vm10, %v1002_v35  ;;  %v1054_v16 = vsel %vm902_vm10, %v1002_v35, 0.0  ;;  %v1085_v13 = vmul.f32 %v1002_v35, %v1002_v35 }
 0x1a8   : > { %v1055_v28 = vadd.f32 %v1054_v16, %v1053_v9 }
 0x1a9   : > { %v1107_v21 = vsel %vm902_vm10, %v1085_v13, 0.0 }
 0x1aa   : > { %v1057_v51 = vadd.f32 %v1056_v29, %v1055_v28  ;;  %v1108_v24 = vadd.f32 %v1107_v21, %v1106_v27 }
 0x1ac   : > { %v1110_v25 = vadd.f32 %v1109_v50, %v1108_v24  ;;  %v1010_v36 = vpop.f32.mrf.mxu2  ;;  %v1059_v20 = vadd.f32 %v1058_v62, %v1057_v51 }
 0x1ad   : > { %1035 = vst.msk [vmem:[%s2256_s14 + $0x50] sm:$0xff] %vm902_vm10, %v1010_v36  ;;  %v1088_v56 = vmul.f32 %v1010_v36, %v1010_v36  ;;  %v1060_v22 = vsel %vm902_vm10, %v1010_v36, 0.0 }
 0x1ae   : > { %v1112_v15 = vadd.f32 %v1111_v53, %v1110_v25  ;;  %v1061_v0 = vadd.f32 %v1060_v22, %v1059_v20 }
 0x1af   : > { %v1113_v61 = vsel %vm902_vm10, %v1088_v56, 0.0 }
 0x1b0   : > { %v1114_v47 = vadd.f32 %v1113_v61, %v1112_v15 }
 0x1b4   : > { %v1012_v1 = vpop.f32.mrf.mxu2 }
 0x1b5   : > { %1036 = vst.msk [vmem:[%s2256_s14 + $0x58] sm:$0xff] %vm902_vm10, %v1012_v1  ;;  %v1062_v26 = vsel %vm902_vm10, %v1012_v1, 0.0  ;;  %v1089_v46 = vmul.f32 %v1012_v1, %v1012_v1 }
 0x1b6   : > { %v1063_v57 = vadd.f32 %v1062_v26, %v1061_v0 }
 0x1b7   : > { %v1115_v40 = vsel %vm902_vm10, %v1089_v46, 0.0 }
 0x1b8   : > { %v1116_v12 = vadd.f32 %v1115_v40, %v1114_v47  ;;  %v1065_v8 = vadd.f32 %v1064_v5, %v1063_v57 }
 0x1ba   : > { %v1118_v37 = vadd.f32 %v1117_v7, %v1116_v12  ;;  %v1067_v31 = vadd.f32 %v1066_v52, %v1065_v8 }
 0x1bb   : > { %v1020_v11 = vpop.f32.mrf.mxu3 }
 0x1bc   : > { %1039 = vst.msk [vmem:[%s2256_s14 + $0x70] sm:$0xff] %vm902_vm10, %v1020_v11  ;;  %v1092_v63 = vmul.f32 %v1020_v11, %v1020_v11  ;;  %v1068_v23 = vsel %vm902_vm10, %v1020_v11, 0.0  ;;  %v1120_v10 = vadd.f32 %v1119_v19, %v1118_v37 }
 0x1bd   : > { %v1069_v49 = vadd.f32 %v1068_v23, %v1067_v31 }
 0x1be   : > { %v1121_v43 = vsel %vm902_vm10, %v1092_v63, 0.0 }
 0x1bf   : > { %v1122_v32 = vadd.f32 %v1121_v43, %v1120_v10 }
 0x1c3   : > { %v1022_v54 = vpop.f32.mrf.mxu3 }
 0x1c4   : > { %1040 = vst.msk [vmem:[%s2256_s14 + $0x78] sm:$0xff] %vm902_vm10, %v1022_v54  ;;  %v1070_v38 = vsel %vm902_vm10, %v1022_v54, 0.0  ;;  %v1093_v18 = vmul.f32 %v1022_v54, %v1022_v54 }
 0x1c5   : > { %v1071_v58 = vadd.f32 %v1070_v38, %v1069_v49 }
 0x1c6   : > { %v1123_v17 = vsel %vm902_vm10, %v1093_v18, 0.0 }
 0x1c7   : > { %v1072_v33 = vrot.slane %v1071_v58, 4  ;;  %v1124_v41 = vadd.f32 %v1123_v17, %v1122_v32 }
 0x1c9   : > { %v1073_v2 = vadd.f32 %v1072_v33, %v1071_v58  ;;  %v1125_v34 = vrot.slane %v1124_v41, 4 }
 0x1cb   : > { %v1074_v60 = vrot.slane %v1073_v2, 2  ;;  %v1126_v48 = vadd.f32 %v1125_v34, %v1124_v41 }
 0x1cd   : > { %v1075_v55 = vadd.f32 %v1074_v60, %v1073_v2  ;;  %v1127_v45 = vrot.slane %v1126_v48, 2 }
 0x1cf   : > { %v1076_v42 = vrot.slane %v1075_v55, 1  ;;  %v1128_v59 = vadd.f32 %v1127_v45, %v1126_v48 }
 0x1d1   : > { %v1129_v3 = vrot.slane %v1128_v59, 1  ;;  %v1077_v44 = vadd.f32 %v1076_v42, %v1075_v55 }
 0x1d3   : > { %v1130_v9 = vadd.f32 %v1129_v3, %v1128_v59 }
 0x1d5   : > { %v1132_v30 = vsel %vm1131_vm12, %v1077_v44, %v1130_v9 }
 0x1d6   : > { %1134 = vst.msk [vmem:[%s235_s3] sm:$0x3] %vm1133_vm13, %v1132_v30 }
 0x1d7 PF: > { %s16_s18 = sadd.s32 1, %s1603_s18  }
 0x1d8   : > { %p13_p4 = scmp.ge.s32.totalorder %s16_s18, 6  }
 0x1da   :  { %15 = sbr.rel (!%p13_p4) target bundleno = 1 (0x1), region = 78 }

// kernel: conv_block_forward.4
= control target key start
LH: loop header
LB: loop body
LE: loop exit
PB: predicated region body
PF: predicated region fallthrough
CT: control target
= control target key end

     0   :  { %s2089_s18 = smov 0   ;;  %s3044_s0 = inlined_call_operand.vmem [shape: f32[4,10,18,32], index: 0, kind: input, shape index: {}]   ;;  %s3045_s1 = inlined_call_operand.vmem [shape: bf16[288,32], index: 1, kind: input, shape index: {}]   ;;  %s3046_s2 = inlined_call_operand.vmem [shape: f32[1,32], index: 2, kind: input, shape index: {}]   ;;  %s3047_s3 = inlined_call_operand.vmem [shape: f32[1,32], index: 3, kind: input, shape index: {}]   ;;  %s3048_s4 = inlined_call_operand.vmem [shape: f32[4,128,32], index: 4, kind: output, shape index: {0}]   ;;  %s3049_s5 = inlined_call_operand.vmem [shape: f32[4,2,32], index: 5, kind: output, shape index: {1}]  }
   0x1 LB: > { %s1664_s19 = sadd.s32 4294967295, %s2054_s18   ;;  %p1668_p0 = scmp.ge.s32.totalorder %s2054_s18, 1  ;;  %s2054_s18 = sphi %s2089_s18, %s16_s18  }
   0x2   : > { %p190_p1 = scmp.lt.s32.totalorder %s2054_s18, 5 }
   0x4   : > { %p191_p2 = pnand %p1668_p0, %p190_p1 }
   0x6   : > { %194 = sbr.rel (%p191_p2) target bundleno = 443 (0x1bb), region = 36 }
   0xb   : > { %p222_p3 = scmp.lt.s32.totalorder %s1664_s19, 3  ;;  %s366_s20 = ssub.s32 0, %s1664_s19  ;;  %v388_v0 = vlaneseq  ;;  %v2103_v1 = vld [vmem:[%s3046_s2] ss:$0 sm:$0xff]  ;;  %vm602_vm1 = vcmask 1046528   ;;  %vm643_vm15 = vcmask 1045504  }
   0xc   : > { %p365_p4 = scmp.lt.s32.totalorder %s1664_s19, 0  ;;  %s1673_s22 = smin.u32 %s1664_s19, %s366_s20  ;;  %v2115_v3 = vld [vmem:[%s3047_s3] ss:$0 sm:$0xff] }
   0xd   : > { %s2097_s21 = scalar_select %p222_p3, %s1664_s19, 3  ;;  %v2105_v2 = vshrl.u32 %v388_v0, 7 }
   0xe   : > { %s368_s26 = sand.u32 1, %s1673_s22   ;;  %s2056_s10 = smov 64  }
   0xf   : > { %s1794_s23 = smul.u32 240, %s2097_s21  ;;  %s369_s27 = ssub.s32 0, %s368_s26  ;;  %v2127_v13 = vadd.s32 16, %v2105_v2  ;;  %vm422_vm0 = vcmp.gt.s32.totalorder %v2105_v2, 0 }
  0x10   : > { %s3096_s27 = smov (!%p365_p4, %s369_s27), %s368_s26  ;;  %s2057_s11 = smov 32  }
  0x11   : > { %s2110_s30 = scalar_lea.vmem %s3044_s0, %s1794_s23  ;;  %p1675_p5 = scmp.lt.s32.totalorder %s3096_s27, 0  ;;  %vm457_vm2 = vcmp.lt.s32.totalorder %v2127_v13, 17 }
  0x12   : > { %v243_v4 = vld [vmem:[%s2110_s30 + $0x30] sm:$0xff]  ;;  %v244_v5 = vld [vmem:[%s2110_s30 + $0x38] sm:$0xff]  ;;  %v237_v6 = vld [vmem:[%s2110_s30] sm:$0xff]  ;;  %s375_s8 = sadd.s32 2, %s3096_s27  ;;  %s2058_s12 = smov 96  }
  0x13   : > { %v278_v7 = vmul.f32 %v2103_v1, %v243_v4  ;;  %v279_v8 = vmul.f32 %v2103_v1, %v244_v5  ;;  %v238_v9 = vld [vmem:[%s2110_s30 + $0x8] sm:$0xff]  ;;  %v239_v10 = vld [vmem:[%s2110_s30 + $0x10] sm:$0x3]  ;;  %v272_v11 = vmul.f32 %v2103_v1, %v237_v6  ;;  %v240_v12 = vld [vmem:[%s2110_s30 + $0x18] sm:$0xff]  ;;  %s3098_s8 = smov (!%p1675_p5, %s375_s8), %s3096_s27 }
  0x14   : > { %v273_v14 = vmul.f32 %v2103_v1, %v238_v9  ;;  %v274_v15 = vmul.f32 %v2103_v1, %v239_v10  ;;  %v241_v16 = vld [vmem:[%s2110_s30 + $0x20] sm:$0xff]  ;;  %v275_v17 = vmul.f32 %v2103_v1, %v240_v12  ;;  %v242_v19 = vld [vmem:[%s2110_s30 + $0x28] sm:$0x3]  ;;  %s1676_s9 = sshll.u32 %s3098_s8, 3  ;;  %v255_v37 = vld [vmem:[%s2110_s30 + $0x90] sm:$0xff]  ;;  %s1672_s8 = sshll.u32 %s2097_s21, 1 }
  0x15   : > { %v305_v18 = vadd.f32 %v2115_v3, %v272_v11  ;;  %v276_v20 = vmul.f32 %v2103_v1, %v241_v16  ;;  %v312_v21 = vadd.f32 %v2115_v3, %v279_v8  ;;  %v245_v23 = vld [vmem:[%s2110_s30 + $0x40] sm:$0x3]  ;;  %v311_v24 = vadd.f32 %v2115_v3, %v278_v7  ;;  %v246_v9 = vld [vmem:[%s2110_s30 + $0x48] sm:$0xff]  ;;  %s235_s14 = scalar_lea.vmem %s3049_s5, %s1672_s8 }
  0x16   : > { %v306_v22 = vadd.f32 %v2115_v3, %v273_v14  ;;  %v307_v25 = vadd.f32 %v2115_v3, %v274_v15  ;;  %v277_v27 = vmul.f32 %v2103_v1, %v242_v19  ;;  %v308_v28 = vadd.f32 %v2115_v3, %v275_v17  ;;  %v247_v15 = vld [vmem:[%s2110_s30 + $0x50] sm:$0xff]  ;;  %v248_v17 = vld [vmem:[%s2110_s30 + $0x58] sm:$0x3] }
  0x17   : > { %v2145_v29 = vstv %s1676_s9  ;;  %v335_v30 = vmax.f32 %v305_v18, 0.0  ;;  %v309_v31 = vadd.f32 %v2115_v3, %v276_v20  ;;  %v280_v32 = vmul.f32 %v2103_v1, %v245_v23 }
  0x18   : > { %v336_v26 = vmax.f32 %v306_v22, 0.0  ;;  %v342_v33 = vmax.f32 %v312_v21, 0.0  ;;  %v380_v34 = vadd.s32 2, %v2145_v29  ;;  %vm392_vm3 = vcmp.gt.s32.totalorder %v2145_v29, 0 }
  0x19   : > { %vm402_vm4 = vcmp.lt.s32.totalorder %v2145_v29, 17  ;;  %v341_v35 = vmax.f32 %v311_v24, 0.0  ;;  %v337_v36 = vmax.f32 %v307_v25, 0.0  ;;  %v379_v38 = vadd.s32 1, %v2145_v29 }
  0x1a   : > { %vm2152_vm5 = vmand %vm392_vm3, %vm402_vm4  ;;  %v313_v39 = vadd.f32 %v2115_v3, %v280_v32  ;;  %vm394_vm6 = vcmp.gt.s32.totalorder %v380_v34, 0  ;;  %vm404_vm7 = vcmp.lt.s32.totalorder %v380_v34, 17  ;;  %v310_v41 = vadd.f32 %v2115_v3, %v277_v27 }
  0x1b   : > { %vm425_vm8 = vmand %vm2152_vm5, %vm422_vm0  ;;  %v2164_v40 = vsel %vm2152_vm5, %v336_v26, 0.0  ;;  %v338_v44 = vmax.f32 %v308_v28, 0.0  ;;  %v339_v45 = vmax.f32 %v309_v31, 0.0  ;;  %vm393_vm11 = vcmp.gt.s32.totalorder %v379_v38, 0 }
  0x1c   : > { %vm414_vm9 = vmand %vm394_vm6, %vm404_vm7  ;;  %v2167_v42 = vsel %vm425_vm8, %v335_v30, 0.0  ;;  %v604_v43 = vrot.slane %v2164_v40, 1  ;;  %vm403_vm12 = vcmp.lt.s32.totalorder %v379_v38, 17  ;;  %v645_v51 = vrot.slane %v2164_v40, 2 }
  0x1d   : > { %vm431_vm10 = vmand %vm414_vm9, %vm422_vm0  ;;  %v2172_v46 = vsel %vm414_vm9, %v342_v33, 0.0  ;;  %v603_v47 = vrot.slane %v2167_v42, 1  ;;  %v644_v50 = vrot.slane %v2167_v42, 2  ;;  %v343_v52 = vmax.f32 %v313_v39, 0.0 }
  0x1e   : > { %vm2177_vm13 = vmand %vm414_vm9, %vm457_vm2  ;;  %v2181_v49 = vsel %vm431_vm10, %v341_v35, 0.0  ;;  %v340_v54 = vmax.f32 %v310_v41, 0.0  ;;  %v655_v12 = vrot.slane %v2172_v46, 2  ;;  %v281_v20 = vmul.f32 %v2103_v1, %v246_v9 }
  0x1f   : > { %v2187_v53 = vpack.i.bf16 %v2172_v46, %v2181_v49  ;;  %vm460_vm14 = vmand %vm2152_vm5, %vm457_vm2  ;;  %v605_v56 = vsel %vm602_vm1, %v603_v47, %v604_v43  ;;  %v646_v60 = vsel %vm643_vm15, %v644_v50, %v645_v51  ;;  %v556_v63 = vsel %vm2177_vm13, %v343_v52, 0.0 }
  0x20   : > { %v550_v55 = vsel %vm460_vm14, %v337_v36, 0.0  ;;  %vm413_vm3 = vmand %vm393_vm11, %vm403_vm12  ;;  %v654_v11 = vrot.slane %v2181_v49, 2  ;;  %v657_v14 = vrot.slane %v556_v63, 2  ;;  %v381_v21 = vadd.s32 3, %v2145_v29 }
  0x21   : > { %1807 = vrot.lane.b32.xlu1 %v2187_v53, %s2056_s10  ;;  %v606_v57 = vrot.slane %v550_v55, 1  ;;  %v647_v58 = vrot.slane %v550_v55, 2  ;;  %vm428_vm4 = vmand %vm413_vm3, %vm422_vm0  ;;  %v2198_v59 = vsel %vm413_vm3, %v339_v45, 0.0  ;;  %v282_v22 = vmul.f32 %v2103_v1, %v247_v15 }
  0x22   : > { %vm463_vm5 = vmand %vm413_vm3, %vm457_vm2  ;;  %v2203_v61 = vsel %vm428_vm4, %v338_v44, 0.0  ;;  %v650_v62 = vrot.slane %v2198_v59, 2  ;;  %v613_v23 = vrot.slane %v2181_v49, 1  ;;  %v614_v24 = vrot.slane %v2172_v46, 1  ;;  %v257_v44 = vld [vmem:[%s2110_s30 + $0xa0] sm:$0x3] }
  0x23   : > { %v607_v0 = vsel %vm602_vm1, %v604_v43, %v606_v57  ;;  %v648_v4 = vsel %vm643_vm15, %v645_v51, %v647_v58  ;;  %v553_v5 = vsel %vm463_vm5, %v340_v54, 0.0  ;;  %v649_v6 = vrot.slane %v2203_v61, 2  ;;  %v256_v43 = vld [vmem:[%s2110_s30 + $0x98] sm:$0xff] }
  0x24   : > { %v1816_v7 = vpack.i.bf16 %v607_v0, %v605_v56  ;;  %v652_v8 = vrot.slane %v553_v5, 2  ;;  %v1821_v10 = vpack.i.bf16 %v648_v4, %v646_v60  ;;  %v1811_v16 = vpack.i.bf16 %v2198_v59, %v2203_v61 }
  0x25   : > { %v651_v18 = vsel %vm643_vm15, %v649_v6, %v650_v62  ;;  %v616_v25 = vrot.slane %v556_v63, 1  ;;  %v2229_v26 = vsel %vm643_vm15, %v654_v11, %v655_v12  ;;  %v2232_v27 = vsel %vm643_vm15, %v655_v12, %v657_v14 }
  0x26   : > { %1817 = vrot.lane.b32.xlu0 %v1816_v7, %s2057_s11  ;;  %v653_v19 = vsel %vm643_vm15, %v650_v62, %v652_v8  ;;  %1812 = vrot.lane.b32.xlu2 %v1811_v16, %s2058_s12  ;;  %v609_v28 = vrot.slane %v2198_v59, 1  ;;  %v283_v30 = vmul.f32 %v2103_v1, %v248_v17  ;;  %v608_v32 = vrot.slane %v2203_v61, 1 }
  0x27   : > { %v1826_v31 = vpack.i.bf16 %v653_v19, %v651_v18  ;;  %v2238_v33 = vsel %vm602_vm1, %v613_v23, %v614_v24  ;;  %v2241_v34 = vsel %vm602_vm1, %v614_v24, %v616_v25  ;;  %v611_v35 = vrot.slane %v553_v5, 1  ;;  %v249_v18 = vld [vmem:[%s2110_s30 + $0x60] sm:$0xff]  ;;  %v250_v19 = vld [vmem:[%s2110_s30 + $0x68] sm:$0xff]  ;;  %v251_v23 = vld [vmem:[%s2110_s30 + $0x70] sm:$0x3] }
  0x28   : > { %vm395_vm6 = vcmp.gt.s32.totalorder %v381_v21, 0  ;;  %vm405_vm7 = vcmp.lt.s32.totalorder %v381_v21, 17  ;;  %v316_v36 = vadd.f32 %v2115_v3, %v283_v30  ;;  %v314_v38 = vadd.f32 %v2115_v3, %v281_v20 }
  0x29   : > { %1822 = vrot.lane.b32.xlu1 %v1821_v10, %s2056_s10  ;;  %v315_v39 = vadd.f32 %v2115_v3, %v282_v22  ;;  %v2249_v41 = vpack.i.bf16 %v2241_v34, %v2238_v33  ;;  %v2255_v45 = vpack.i.bf16 %v2232_v27, %v2229_v26  ;;  %v384_v47 = vadd.s32 6, %v2145_v29  ;;  %vm2262_vm8 = vmand %vm395_vm6, %vm405_vm7 }
  0x2a   : > { %v2260_v48 = vsel %vm602_vm1, %v608_v32, %v609_v28  ;;  %v290_v51 = vmul.f32 %v2103_v1, %v255_v37  ;;  %v2268_v52 = vsel %vm602_vm1, %v609_v28, %v611_v35  ;;  %v346_v54 = vmax.f32 %v316_v36, 0.0  ;;  %vm469_vm9 = vmand %vm2262_vm8, %vm457_vm2 }
  0x2b   : > { %v291_v55 = vmul.f32 %v2103_v1, %v256_v43  ;;  %v292_v56 = vmul.f32 %v2103_v1, %v257_v44  ;;  %v344_v57 = vmax.f32 %v314_v38, 0.0  ;;  %v345_v58 = vmax.f32 %v315_v39, 0.0  ;;  %vm434_vm10 = vmand %vm2262_vm8, %vm422_vm0 }
  0x2c   : > { %vm398_vm11 = vcmp.gt.s32.totalorder %v384_v47, 0  ;;  %vm408_vm12 = vcmp.lt.s32.totalorder %v384_v47, 17  ;;  %v1836_v60 = vpack.i.bf16 %v2268_v52, %v2260_v48  ;;  %v323_v62 = vadd.f32 %v2115_v3, %v290_v51 }
  0x2d   : > { %v559_v63 = vsel %vm469_vm9, %v346_v54, 0.0  ;;  %v324_v0 = vadd.f32 %v2115_v3, %v291_v55  ;;  %v325_v4 = vadd.f32 %v2115_v3, %v292_v56  ;;  %v2289_v5 = vsel %vm434_vm10, %v344_v57, 0.0  ;;  %vm2295_vm13 = vmand %vm398_vm11, %vm408_vm12 }
  0x2e   : > { %1827 = vrot.lane.b32.xlu0 %v1826_v31, %s2057_s11  ;;  %1832 = vrot.lane.b32.xlu2 %v2249_v41, %s2058_s12  ;;  %v2293_v6 = vsel %vm2262_vm8, %v345_v58, 0.0  ;;  %v618_v8 = vrot.slane %v2289_v5, 1  ;;  %v621_v10 = vrot.slane %v559_v63, 1  ;;  %v659_v11 = vrot.slane %v2289_v5, 2  ;;  %vm443_vm14 = vmand %vm2295_vm13, %vm422_vm0 }
  0x2f   : > { %v619_v9 = vrot.slane %v2293_v6, 1  ;;  %v660_v12 = vrot.slane %v2293_v6, 2  ;;  %v662_v14 = vrot.slane %v559_v63, 2  ;;  %v353_v15 = vmax.f32 %v323_v62, 0.0  ;;  %vm478_vm3 = vmand %vm2295_vm13, %vm457_vm2  ;;  %v259_v63 = vld [vmem:[%s2110_s30 + $0xb0] sm:$0xff] }
  0x30   : > { %v354_v16 = vmax.f32 %v324_v0, 0.0  ;;  %v355_v17 = vmax.f32 %v325_v4, 0.0  ;;  %v2319_v20 = vpack.i.bf16 %v2293_v6, %v2289_v5  ;;  %v284_v32 = vmul.f32 %v2103_v1, %v249_v18  ;;  %v260_v0 = vld [vmem:[%s2110_s30 + $0xb8] sm:$0x3] }
  0x31   : > { %1847 = vrot.lane.b32.xlu1 %v2255_v45, %s2057_s11  ;;  %v2322_v21 = vsel %vm602_vm1, %v618_v8, %v619_v9  ;;  %v2325_v22 = vsel %vm602_vm1, %v619_v9, %v621_v10  ;;  %v2329_v24 = vsel %vm643_vm15, %v659_v11, %v660_v12  ;;  %v2332_v25 = vsel %vm643_vm15, %v660_v12, %v662_v14 }
  0x32   : > { %v2334_v28 = vsel %vm443_vm14, %v353_v15, 0.0  ;;  %v2339_v30 = vsel %vm2295_vm13, %v354_v16, 0.0  ;;  %v285_v35 = vmul.f32 %v2103_v1, %v250_v19  ;;  %v2345_v36 = vpack.i.bf16 %v2325_v22, %v2322_v21 }
  0x33   : > { %v286_v37 = vmul.f32 %v2103_v1, %v251_v23  ;;  %v2350_v38 = vpack.i.bf16 %v2332_v25, %v2329_v24  ;;  %v633_v39 = vrot.slane %v2334_v28, 1  ;;  %v634_v43 = vrot.slane %v2339_v30, 1 }
  0x34   : > { %v317_v47 = vadd.f32 %v2115_v3, %v284_v32  ;;  %v318_v50 = vadd.f32 %v2115_v3, %v285_v35  ;;  %v674_v7 = vrot.slane %v2334_v28, 2  ;;  %v675_v8 = vrot.slane %v2339_v30, 2 }
  0x35   : > { %v319_v51 = vadd.f32 %v2115_v3, %v286_v37  ;;  %v2368_v55 = vsel %vm602_vm1, %v633_v39, %v634_v43  ;;  %v385_v9 = vadd.s32 7, %v2145_v29  ;;  %v294_v15 = vmul.f32 %v2103_v1, %v259_v63 }
  0x36   : > { %1837 = vrot.lane.b32.xlu0 %v1836_v60, %s2057_s11  ;;  %1857 = vrot.lane.b32.xlu2 %v1826_v31, %s2056_s10  ;;  %v568_v31 = vsel %vm478_vm3, %v355_v17, 0.0  ;;  %3069 = vst [vmem:[#allocation2_spill] sm:$0xff] %v2368_v55  ;;  %v347_v57 = vmax.f32 %v317_v47, 0.0  ;;  %v348_v58 = vmax.f32 %v318_v50, 0.0  ;;  %v258_v60 = vld [vmem:[%s2110_s30 + $0xa8] sm:$0xff]  ;;  %v295_v16 = vmul.f32 %v2103_v1, %v260_v0 }
  0x37   : > { %v636_v44 = vrot.slane %v568_v31, 1  ;;  %v349_v62 = vmax.f32 %v319_v51, 0.0  ;;  %v677_v10 = vrot.slane %v568_v31, 2  ;;  %v293_v11 = vmul.f32 %v2103_v1, %v258_v60  ;;  %v252_v60 = vld [vmem:[%s2110_s30 + $0x78] sm:$0xff]  ;;  %v254_v0 = vld [vmem:[%s2110_s30 + $0x88] sm:$0x3] }
  0x38   : > { %vm399_vm9 = vcmp.gt.s32.totalorder %v385_v9, 0  ;;  %vm409_vm10 = vcmp.lt.s32.totalorder %v385_v9, 17  ;;  %v327_v32 = vadd.f32 %v2115_v3, %v294_v15  ;;  %v328_v35 = vadd.f32 %v2115_v3, %v295_v16 }
  0x39   : > { %1852 = vrot.lane.b32.xlu1 %v2187_v53, %s2058_s12  ;;  %v382_v53 = vadd.s32 4, %v2145_v29  ;;  %v2371_v56 = vsel %vm602_vm1, %v634_v43, %v636_v44  ;;  %v2414_v19 = vsel %vm643_vm15, %v675_v8, %v677_v10  ;;  %vm2421_vm11 = vmand %vm399_vm9, %vm409_vm10  ;;  %v383_v9 = vadd.s32 5, %v2145_v29 }
  0x3a   : > { %3070 = vst [vmem:[#allocation3_spill] sm:$0xff] %v2371_v56  ;;  %v2382_v4 = vpack.i.bf16 %v2371_v56, %v2368_v55  ;;  %vm446_vm12 = vmand %vm2421_vm11, %vm422_vm0  ;;  %v287_v15 = vmul.f32 %v2103_v1, %v252_v60  ;;  %v261_v60 = vld [vmem:[%s2110_s30 + $0xc0] sm:$0xff] }
  0x3b   : > { %vm396_vm4 = vcmp.gt.s32.totalorder %v382_v53, 0  ;;  %vm406_vm5 = vcmp.lt.s32.totalorder %v382_v53, 17  ;;  %v326_v53 = vadd.f32 %v2115_v3, %v293_v11  ;;  %vm481_vm13 = vmand %vm2421_vm11, %vm457_vm2  ;;  %vm397_vm14 = vcmp.gt.s32.totalorder %v383_v9, 0 }
  0x3c   : > { %vm2363_vm6 = vmand %vm396_vm4, %vm406_vm5  ;;  %vm407_vm3 = vcmp.lt.s32.totalorder %v383_v9, 17 }
  0x3d   : > { %vm437_vm7 = vmand %vm2363_vm6, %vm422_vm0  ;;  %v2398_v14 = vsel %vm2363_vm6, %v348_v58, 0.0  ;;  %v356_v50 = vmax.f32 %v326_v53, 0.0  ;;  %v358_v58 = vmax.f32 %v328_v35, 0.0  ;;  %v320_v35 = vadd.f32 %v2115_v3, %v287_v15 }
  0x3e   : > { %1842 = vrot.lane.b32.xlu0 %v2319_v20, %s2056_s10  ;;  %1862 = vrot.lane.b32.xlu2 %v2345_v36, %s2058_s12  ;;  %vm472_vm8 = vmand %vm2363_vm6, %vm457_vm2  ;;  %v2394_v12 = vsel %vm437_vm7, %v347_v57, 0.0  ;;  %v665_v44 = vrot.slane %v2398_v14, 2  ;;  %v357_v57 = vmax.f32 %v327_v32, 0.0  ;;  %v296_v15 = vmul.f32 %v2103_v1, %v261_v60 }
  0x3f   : > { %3071 = vst [vmem:[#allocation4_spill] sm:$0xff] %v2394_v12  ;;  %v562_v17 = vsel %vm472_vm8, %v349_v62, 0.0  ;;  %v2411_v18 = vpack.i.bf16 %v2398_v14, %v2394_v12  ;;  %v623_v23 = vrot.slane %v2394_v12, 1  ;;  %v664_v43 = vrot.slane %v2394_v12, 2  ;;  %v253_v62 = vld [vmem:[%s2110_s30 + $0x80] sm:$0xff]  ;;  %vm2493_vm4 = vmand %vm397_vm14, %vm407_vm3 }
  0x40   : > { %v626_v31 = vrot.slane %v562_v17, 1  ;;  %v667_v47 = vrot.slane %v562_v17, 2  ;;  %v2469_v10 = vsel %vm2421_vm11, %v357_v57, 0.0  ;;  %v571_v11 = vsel %vm481_vm13, %v358_v58, 0.0  ;;  %vm440_vm5 = vmand %vm2493_vm4, %vm422_vm0 }
  0x41   : > { %1872 = vrot.lane.b32.xlu1 %v2350_v38, %s2057_s11  ;;  %v2454_v63 = vsel %vm643_vm15, %v664_v43, %v665_v44  ;;  %v288_v16 = vmul.f32 %v2103_v1, %v253_v62  ;;  %v641_v32 = vrot.slane %v571_v11, 1  ;;  %v350_v57 = vmax.f32 %v320_v35, 0.0  ;;  %v262_v62 = vld [vmem:[%s2110_s30 + $0xc8] sm:$0xff]  ;;  %vm475_vm6 = vmand %vm2493_vm4, %vm457_vm2 }
  0x43   : > { %v321_v37 = vadd.f32 %v2115_v3, %v288_v16  ;;  %v297_v16 = vmul.f32 %v2103_v1, %v262_v62  ;;  %v2524_v35 = vsel %vm440_vm5, %v350_v57, 0.0 }
  0x44   : > { %3078 = vst [vmem:[#allocation7_spill] sm:$0xff] %v2524_v35 }
  0x45   : > { %v351_v58 = vmax.f32 %v321_v37, 0.0  ;;  %v330_v60 = vadd.f32 %v2115_v3, %v297_v16 }
  0x46   : > { %1867 = vrot.lane.b32.xlu0 %v2249_v41, %s2057_s11  ;;  %1877 = vrot.lane.b32.xlu2 %v2255_v45, %s2056_s10  ;;  %v2407_v41 = vsel %vm643_vm15, %v674_v7, %v675_v8  ;;  %v624_v45 = vrot.slane %v2398_v14, 1  ;;  %v2464_v8 = vsel %vm446_vm12, %v356_v50, 0.0  ;;  %vm1030_vm12 = vcmask 261120  }
  0x47   : > { %v2427_v39 = vpack.i.bf16 %v2414_v19, %v2407_v41  ;;  %v2475_v17 = vpack.i.bf16 %v2469_v10, %v2464_v8  ;;  %v2528_v37 = vsel %vm2493_vm4, %v351_v58, 0.0 }
  0x48   : > { %v2434_v51 = vsel %vm602_vm1, %v623_v23, %v624_v45  ;;  %v2437_v54 = vsel %vm602_vm1, %v624_v45, %v626_v31  ;;  %v289_v23 = vmul.f32 %v2103_v1, %v254_v0  ;;  %v638_v45 = vrot.slane %v2464_v8, 1  ;;  %3079 = vst [vmem:[#allocation8_spill] sm:$0xff] %v2528_v37 }
  0x49   : > { %1887 = vrot.lane.b32.xlu1 %v2382_v4, %s2057_s11  ;;  %v2459_v7 = vpack.i.bf16 %v2437_v54, %v2434_v51  ;;  %v639_v31 = vrot.slane %v2469_v10, 1  ;;  %v629_v58 = vrot.slane %v2528_v37, 1 }
  0x4a   : > { %v322_v43 = vadd.f32 %v2115_v3, %v289_v23  ;;  %v386_v23 = vadd.s32 8, %v2145_v29 }
  0x4b   : > { %v2501_v50 = vsel %vm602_vm1, %v639_v31, %v641_v32  ;;  %v682_v32 = vrot.slane %v571_v11, 2  ;;  %v1926_v11 = vpack.i.bf16 %v2528_v37, %v2524_v35 }
  0x4c   : > { %3077 = vst [vmem:[#allocation6_spill] sm:$0xff] %v2501_v50  ;;  %v352_v0 = vmax.f32 %v322_v43, 0.0  ;;  %vm400_vm7 = vcmp.gt.s32.totalorder %v386_v23, 0  ;;  %vm410_vm8 = vcmp.lt.s32.totalorder %v386_v23, 17  ;;  %v360_v23 = vmax.f32 %v330_v60, 0.0 }
  0x4d   : > { %vm2546_vm9 = vmand %vm400_vm7, %vm410_vm8 }
  0x4e   : > { %1882 = vrot.lane.b32.xlu0 %v2411_v18, %s2056_s10  ;;  %1892 = vrot.lane.b32.xlu2 %v2319_v20, %s2058_s12  ;;  %v2462_v20 = vsel %vm643_vm15, %v665_v44, %v667_v47  ;;  %v2498_v47 = vsel %vm602_vm1, %v638_v45, %v639_v31  ;;  %v679_v45 = vrot.slane %v2464_v8, 2  ;;  %v680_v31 = vrot.slane %v2469_v10, 2  ;;  %vm449_vm10 = vmand %vm2546_vm9, %vm422_vm0 }
  0x4f   : > { %v2480_v53 = vpack.i.bf16 %v2462_v20, %v2454_v63  ;;  %3076 = vst [vmem:[#allocation5_spill] sm:$0xff] %v2498_v47  ;;  %v2511_v9 = vpack.i.bf16 %v2501_v50, %v2498_v47  ;;  %v565_v43 = vsel %vm475_vm6, %v352_v0, 0.0  ;;  %v2645_v50 = vld [vmem:[%s3045_s1 + $0x58] sm:$0xff]  ;;  %vm484_vm11 = vmand %vm2546_vm9, %vm457_vm2 }
  0x50   : > { %v2539_v44 = vsel %vm643_vm15, %v679_v45, %v680_v31  ;;  %v2542_v57 = vsel %vm643_vm15, %v680_v31, %v682_v32  ;;  %v631_v62 = vrot.slane %v565_v43, 1  ;;  %v1767_v45 = vld [vmem:[%s3045_s1 + $0x38] sm:$0xff]  ;;  %v669_v31 = vrot.slane %v2524_v35, 2 }
  0x51   : > { %1902 = vrot.lane.b32.xlu1 %v2427_v39, %s2056_s10  ;;  %v670_v32 = vrot.slane %v2528_v37, 2  ;;  %v672_v55 = vrot.slane %v565_v43, 2  ;;  %1321 = vmatpush.bf16.msra.mxu0 %v1767_v45  ;;  %v1766_v43 = vld [vmem:[%s3045_s1 + $0x30] sm:$0xff] }
  0x52   : > { %v2573_v56 = vsel %vm602_vm1, %v629_v58, %v631_v62  ;;  %1778 = vmatpush.bf16.msra.mxu3 %v1767_v45  ;;  %v263_v37 = vld [vmem:[%s2110_s30 + $0xd0] sm:$0x3] }
  0x53   : > { %3083 = vst [vmem:[#allocation10_spill] sm:$0xff] %v2573_v56  ;;  %v2602_v45 = vsel %vm643_vm15, %v670_v32, %v672_v55  ;;  %v2619_v55 = vld [vmem:[%s3045_s1 + $0x68] sm:$0xff] }
  0x55   : > { %1322 = vmatpush.bf16.msra.mxu0 %v1766_v43 }
  0x56   : > { %1897 = vrot.lane.b32.xlu0 %v2459_v7, %s2058_s12  ;;  %1907 = vrot.lane.b32.xlu2 %v2475_v17, %s2058_s12 }
  0x57   : > { %1779 = vmatpush.bf16.msra.mxu3 %v1766_v43  ;;  %v2629_v43 = vld [vmem:[%s3045_s1 + $0x60] sm:$0xff] }
  0x59   : > { %1917 = vrot.lane.b32.xlu1 %v2480_v53, %s2057_s11 }
  0x5e   : > { %1912 = vrot.lane.b32.xlu0 %v2345_v36, %s2057_s11  ;;  %1922 = vrot.lane.b32.xlu2 %v2350_v38, %s2056_s10  ;;  %v329_v36 = vadd.f32 %v2115_v3, %v296_v15  ;;  %v628_v38 = vrot.slane %v2524_v35, 1  ;;  %v2552_v15 = vpack.i.bf16 %v2542_v57, %v2539_v44  ;;  %v2584_v35 = vld [vmem:[%s3045_s1 + $0x70] sm:$0xff] }
  0x60   : > { %v359_v16 = vmax.f32 %v329_v36, 0.0  ;;  %v2567_v36 = vld [vmem:[%s3045_s1 + $0x78] sm:$0xff]  ;;  %v2570_v60 = vsel %vm602_vm1, %v628_v38, %v629_v58  ;;  %v2592_v58 = vsel %vm2546_vm9, %v360_v23, 0.0 }
  0x61   : > { %1932 = vrot.lane.b32.xlu1 %v2511_v9, %s2057_s11  ;;  %3082 = vst [vmem:[#allocation9_spill] sm:$0xff] %v2570_v60  ;;  %1370 = vmatpush.bf16.msra.mxu1 %v2567_v36  ;;  %v2596_v62 = vpack.i.bf16 %v2573_v56, %v2570_v60  ;;  %v298_v60 = vmul.f32 %v2103_v1, %v263_v37  ;;  %v1763_v56 = vld [vmem:[%s3045_s1 + $0x18] sm:$0xff]  ;;  %v1777_v37 = vld [vmem:[%s3045_s1 + $0x88] sm:$0xff]  ;;  %v688_v0 = vrot.slane %v2592_v58, 1 }
  0x62   : > { %v2588_v38 = vsel %vm449_vm10, %v359_v16, 0.0  ;;  %1425 = vmatpush.bf16.msra.mxu2 %v1777_v37  ;;  %v1131_v37 = vpack.c.bf16 %v2232_v27, %v2229_v26  ;;  %v1760_v26 = vld [vmem:[%s3045_s1] sm:$0xff] }
  0x63   : > { %v1951_v16 = vpack.i.bf16 %v2592_v58, %v2588_v38 }
  0x65   : > { %1371 = vmatpush.bf16.msra.mxu1 %v2584_v35 }
  0x66   : > { %1927 = vrot.lane.b32.xlu0 %v1926_v11, %s2056_s10  ;;  %1937 = vrot.lane.b32.xlu2 %v2411_v18, %s2058_s12  ;;  %v2599_v18 = vsel %vm643_vm15, %v669_v31, %v670_v32  ;;  %v1765_v31 = vld [vmem:[%s3045_s1 + $0x28] sm:$0xff]  ;;  %v1764_v32 = vld [vmem:[%s3045_s1 + $0x20] sm:$0xff] }
  0x67   : > { %v2609_v23 = vpack.i.bf16 %v2602_v45, %v2599_v18  ;;  %1323 = vmatpush.bf16.msra.mxu0 %v1765_v31  ;;  %1780 = vmatpush.bf16.msra.mxu3 %v1765_v31  ;;  %v331_v31 = vadd.f32 %v2115_v3, %v298_v60  ;;  %v2663_v60 = vpack.i.bf16 %v2339_v30, %v2334_v28 }
  0x69   : > { %1947 = vrot.lane.b32.xlu1 %v2552_v15, %s2056_s10  ;;  %1372 = vmatpush.bf16.msra.mxu1 %v2619_v55  ;;  %v361_v47 = vmax.f32 %v331_v31, 0.0  ;;  %v1761_v31 = vld [vmem:[%s3045_s1 + $0x8] sm:$0xff] }
  0x6b   : > { %1324 = vmatpush.bf16.msra.mxu0 %v1764_v32  ;;  %1781 = vmatpush.bf16.msra.mxu3 %v1764_v32  ;;  %v2665_v32 = vsel %vm484_vm11, %v361_v47, 0.0 }
  0x6c   : > { %v690_v47 = vrot.slane %v2665_v32, 1 }
  0x6d   : > { %1373 = vmatpush.bf16.msra.mxu1 %v2629_v43 }
  0x6e   : > { %1942 = vrot.lane.b32.xlu0 %v2596_v62, %s2058_s12  ;;  %1952 = vrot.lane.b32.xlu2 %v1951_v16, %s2058_s12 }
  0x6f   : > { %1325 = vmatpush.bf16.msra.mxu0 %v1763_v56  ;;  %1782 = vmatpush.bf16.msra.mxu3 %v1763_v56  ;;  %v2670_v56 = vld [vmem:[%s3045_s1 + $0x50] sm:$0xff] }
  0x71   : > { %1962 = vrot.lane.b32.xlu1 %v2609_v23, %s2057_s11  ;;  %1374 = vmatpush.bf16.msra.mxu1 %v2645_v50 }
  0x75   : > { %1375 = vmatpush.bf16.msra.mxu1 %v2670_v56 }
  0x76   : > { %1957 = vrot.lane.b32.xlu0 %v2459_v7, %s2057_s11  ;;  %1967 = vrot.lane.b32.xlu2 %v2480_v53, %s2056_s10  ;;  %v1762_v7 = vld [vmem:[%s3045_s1 + $0x10] sm:$0xff]  ;;  %v1776_v53 = vld [vmem:[%s3045_s1 + $0x80] sm:$0xff] }
  0x77   : > { %1326 = vmatpush.bf16.msra.mxu0 %v1762_v7  ;;  %1783 = vmatpush.bf16.msra.mxu3 %v1762_v7  ;;  %v2689_v7 = vld [vmem:[%s3045_s1 + $0x48] sm:$0xff] }
  0x78   : > { %1426 = vmatpush.bf16.msra.mxu2 %v1776_v53  ;;  %v2698_v53 = vsel %vm602_vm1, %v688_v0, %v690_v47 }
  0x79   : > { %1977 = vrot.lane.b32.xlu1 %v1926_v11, %s2058_s12  ;;  %v687_v11 = vrot.slane %v2588_v38, 1  ;;  %1376 = vmatpush.bf16.msra.mxu1 %v2689_v7 }
  0x7b   : > { %1327 = vmatpush.bf16.msra.mxu0 %v1761_v31  ;;  %1784 = vmatpush.bf16.msra.mxu3 %v1761_v31  ;;  %v2695_v12 = vsel %vm602_vm1, %v687_v11, %v688_v0  ;;  %v265_v31 = vld [vmem:[%s2110_s30 + $0xe0] sm:$0xff]  ;;  %v387_v11 = vadd.s32 9, %v2145_v29  ;;  %v266_v29 = vld [vmem:[%s2110_s30 + $0xe8] sm:$0x3] }
  0x7c   : > { %1749 = vmatmul.msk.bf16.vlgmr.msra.gmra.mxu2 %vm1030_vm12, %v1131_v37  ;;  %v1996_v0 = vpack.i.bf16 %v2698_v53, %v2695_v12  ;;  %v300_v37 = vmul.f32 %v2103_v1, %v265_v31 }
  0x7d   : > { %vm401_vm13 = vcmp.gt.s32.totalorder %v387_v11, 0  ;;  %vm411_vm14 = vcmp.lt.s32.totalorder %v387_v11, 17 }
  0x7e   : > { %1972 = vrot.lane.b32.xlu0 %v2663_v60, %s2056_s10  ;;  %1982 = vrot.lane.b32.xlu2 %v2552_v15, %s2057_s11  ;;  %v264_v15 = vld [vmem:[%s2110_s30 + $0xd8] sm:$0xff]  ;;  %vm2733_vm3 = vmand %vm401_vm13, %vm411_vm14  ;;  %s1759_s30 = sshll.u32 %s2097_s21, 7 }
  0x7f   : > { %1328 = vmatpush.bf16.msra.mxu0 %v1760_v26  ;;  %1785 = vmatpush.bf16.msra.mxu3 %v1760_v26  ;;  %v299_v47 = vmul.f32 %v2103_v1, %v264_v15  ;;  %v333_v26 = vadd.f32 %v2115_v3, %v300_v37  ;;  %v301_v15 = vmul.f32 %v2103_v1, %v266_v29  ;;  %vm452_vm4 = vmand %vm2733_vm3, %vm422_vm0  ;;  %vm1047_vm0 = vcmask 523264  }
  0x80   : > { %v2704_v27 = vpop.permute.xlu2 %1812  ;;  %vm487_vm5 = vmand %vm2733_vm3, %vm457_vm2  ;;  %vm1064_vm2 = vcmask 785408  }
  0x81   : > { %1992 = vrot.lane.b32.xlu1 %v1951_v16, %s2056_s10  ;;  %v2712_v16 = vld [vmem:[%s3045_s1 + $0x40] sm:$0xff]  ;;  %v334_v11 = vadd.f32 %v2115_v3, %v301_v15  ;;  %v363_v37 = vmax.f32 %v333_v26, 0.0 }
  0x82   : > { %1377 = vmatpush.bf16.msra.mxu1 %v2712_v16 }
  0x83   : > { %1786 = vmatpush.bf16.msrb.mxu3 %v2567_v36 }
  0x86   : > { %1987 = vrot.lane.b32.xlu0 %v2382_v4, %s2058_s12  ;;  %1997 = vrot.lane.b32.xlu2 %v1996_v0, %s2058_s12  ;;  %v332_v4 = vadd.f32 %v2115_v3, %v299_v47  ;;  %v711_v0 = vrot.slane %v2665_v32, 2  ;;  %v1134_v47 = vpack.c.bf16 %v2332_v25, %v2329_v24  ;;  %v364_v3 = vmax.f32 %v334_v11, 0.0 }
  0x87   : > { %1787 = vmatpush.bf16.msrb.mxu3 %v2584_v35  ;;  %v708_v35 = vrot.slane %v2588_v38, 2  ;;  %v2770_v25 = vsel %vm2733_vm3, %v363_v37, 0.0 }
  0x88   : > { %v2728_v36 = vpop.permute.xlu2 %1832  ;;  %v362_v1 = vmax.f32 %v332_v4, 0.0 }
  0x89   : > { %2007 = vrot.lane.b32.xlu1 %v2427_v39, %s2057_s11  ;;  %v709_v39 = vrot.slane %v2592_v58, 2  ;;  %v2774_v58 = vsel %vm487_vm5, %v364_v3, 0.0 }
  0x8a   : > { %v2766_v13 = vsel %vm452_vm4, %v362_v1, 0.0  ;;  %v719_v32 = vrot.slane %v2774_v58, 1 }
  0x8b   : > { %1788 = vmatpush.bf16.msrb.mxu3 %v2619_v55  ;;  %v2760_v24 = vsel %vm643_vm15, %v708_v35, %v709_v39  ;;  %v2763_v2 = vsel %vm643_vm15, %v709_v39, %v711_v0  ;;  %v717_v55 = vrot.slane %v2770_v25, 1  ;;  %v1814_v0 = vunpack.i.l.bf16 %v2704_v27 }
  0x8c   : > { %1750 = vmatmul.msk.bf16.gmra.mxu2 %vm1030_vm12, %v1134_v47 }
  0x8d   : > { %v720_v15 = vsel %vm602_vm1, %v717_v55, %v719_v32 }
  0x8e   : > { %2002 = vrot.lane.b32.xlu0 %v2596_v62, %s2057_s11  ;;  %2012 = vrot.lane.b32.xlu2 %v2609_v23, %s2056_s10  ;;  %v2026_v23 = vpack.i.bf16 %v2763_v2, %v2760_v24 }
  0x8f   : > { %1789 = vmatpush.bf16.msrb.mxu3 %v2629_v43  ;;  %v2036_v43 = vpack.i.bf16 %v2770_v25, %v2766_v13 }
  0x90   : > { %v2772_v38 = vpop.permute.xlu2 %1857 }
  0x91   : > { %2022 = vrot.lane.b32.xlu1 %v2663_v60, %s2058_s12  ;;  %v716_v60 = vrot.slane %v2766_v13, 1 }
  0x93   : > { %v1808_v62 = vpop.permute.xlu1 %1807  ;;  %1790 = vmatpush.bf16.msrb.mxu3 %v2645_v50  ;;  %v718_v50 = vsel %vm602_vm1, %v716_v60, %v717_v55  ;;  %vm1574_vm1 = vcmask 1040384  }
  0x94   : > { %v1810_v32 = vunpack.i.h.bf16 %v1808_v62 }
  0x96   : > { %2017 = vrot.lane.b32.xlu0 %v2475_v17, %s2056_s10  ;;  %2027 = vrot.lane.b32.xlu2 %v2026_v23, %s2057_s11  ;;  %v2041_v17 = vpack.i.bf16 %v720_v15, %v718_v50 }
  0x97   : > { %1791 = vmatpush.bf16.msrb.mxu3 %v2670_v56  ;;  %v1815_v56 = vunpack.i.h.bf16 %v2704_v27 }
  0x98   : > { %v1818_v29 = vpop.permute.xlu0 %1817  ;;  %v2791_v31 = vpop.permute.xlu2 %1862 }
  0x99   : > { %v1820_v4 = vunpack.i.h.bf16 %v1818_v29  ;;  %v1819_v26 = vunpack.i.l.bf16 %v1818_v29  ;;  %2037 = vrot.lane.b32.xlu1 %v2036_v43, %s2056_s10 }
  0x9b   : > { %v1823_v11 = vpop.permute.xlu1 %1822  ;;  %1792 = vmatpush.bf16.msrb.mxu3 %v2689_v7  ;;  %v1032_v47 = vsel %vm1030_vm12, %v2164_v40, %v1820_v4  ;;  %v1031_v1 = vsel %vm1030_vm12, %v2167_v42, %v1819_v26  ;;  %v1137_v7 = vpack.c.bf16 %v2462_v20, %v2454_v63  ;;  %v1835_v40 = vunpack.i.h.bf16 %v2728_v36 }
  0x9c   : > { %v1825_v35 = vunpack.i.h.bf16 %v1823_v11  ;;  %v1824_v39 = vunpack.i.l.bf16 %v1823_v11  ;;  %v1834_v42 = vunpack.i.l.bf16 %v2728_v36  ;;  %v1809_v63 = vunpack.i.l.bf16 %v1808_v62 }
  0x9d   : > { %1751 = vmatmul.msk.bf16.gmra.mxu2 %vm1030_vm12, %v1137_v7  ;;  %v1860_v62 = vunpack.i.h.bf16 %v2772_v38 }
  0x9e   : > { %2032 = vrot.lane.b32.xlu0 %v2511_v9, %s2058_s12  ;;  %v1048_v37 = vsel %vm1047_vm0, %v1031_v1, %v1824_v39  ;;  %v1049_v3 = vsel %vm1047_vm0, %v1032_v47, %v1825_v35  ;;  %2042 = vrot.lane.b32.xlu2 %v2041_v17, %s2058_s12  ;;  %v1859_v39 = vunpack.i.l.bf16 %v2772_v38  ;;  %s2959_s12 = scalar_lea.vmem %s3048_s4, %s1759_s30 }
  0x9f   : > { %v1065_v23 = vsel %vm1064_vm2, %v1048_v37, %v1814_v0  ;;  %v1066_v27 = vsel %vm1064_vm2, %v1049_v3, %v1815_v56  ;;  %1793 = vmatpush.bf16.msrb.mxu3 %v2712_v16 }
  0xa0   : > { %v1828_v55 = vpop.permute.xlu0 %1827  ;;  %v1129_v43 = vpack.c.bf16 %v1066_v27, %v1065_v23  ;;  %v1878_v20 = vpop.permute.xlu2 %1877 }
  0xa1   : > { %v1830_v9 = vunpack.i.h.bf16 %v1828_v55  ;;  %v1829_v60 = vunpack.i.l.bf16 %v1828_v55 }
  0xa2   : > { %1329 = vmatmul.bf16.vlgmr.msra.gmra.mxu0 %v1129_v43  ;;  %v1140_v43 = vpack.c.bf16 %v2602_v45, %v2599_v18 }
  0xa3   : > { %v1082_v29 = vsel %vm1030_vm12, %v2268_v52, %v1830_v9  ;;  %v1081_v4 = vsel %vm1030_vm12, %v2260_v48, %v1829_v60  ;;  %v1848_v26 = vpop.permute.xlu1 %1847 }
  0xa4   : > { %v1097_v16 = vsel %vm1047_vm0, %v1081_v4, %v1809_v63  ;;  %v1098_v50 = vsel %vm1047_vm0, %v1082_v29, %v1810_v32  ;;  %v1850_v3 = vunpack.i.h.bf16 %v1848_v26  ;;  %v1849_v27 = vunpack.i.l.bf16 %v1848_v26 }
  0xa5   : > { %v1113_v36 = vsel %vm1064_vm2, %v1097_v16, %v1834_v42  ;;  %v1114_v15 = vsel %vm1064_vm2, %v1098_v50, %v1835_v40  ;;  %v1865_v40 = vunpack.i.h.bf16 %v2791_v31  ;;  %v1880_v50 = vunpack.i.h.bf16 %v1878_v20 }
  0xa6   : > { %v1130_v11 = vpack.c.bf16 %v1114_v15, %v1113_v36  ;;  %v1084_v32 = vsel %vm1030_vm12, %v2241_v34, %v1850_v3  ;;  %v1083_v63 = vsel %vm1030_vm12, %v2238_v33, %v1849_v27  ;;  %v1879_v36 = vunpack.i.l.bf16 %v1878_v20 }
  0xa8   : > { %v1838_v35 = vpop.permute.xlu0 %1837  ;;  %1378 = vmatmul.bf16.vlgmr.msra.gmra.mxu1 %v1130_v11  ;;  %v1893_v56 = vpop.permute.xlu2 %1892 }
  0xa9   : > { %v1840_v52 = vunpack.i.h.bf16 %v1838_v35  ;;  %v1839_v17 = vunpack.i.l.bf16 %v1838_v35  ;;  %v1895_v35 = vunpack.i.h.bf16 %v1893_v56  ;;  %v1894_v33 = vunpack.i.l.bf16 %v1893_v56 }
  0xab   : > { %v1034_v48 = vsel %vm1030_vm12, %v2198_v59, %v1840_v52  ;;  %v1033_v0 = vsel %vm1030_vm12, %v2203_v61, %v1839_v17  ;;  %v1853_v47 = vpop.permute.xlu1 %1852  ;;  %v1864_v61 = vunpack.i.l.bf16 %v2791_v31 }
  0xac   : > { %v1855_v1 = vunpack.i.h.bf16 %v1853_v47  ;;  %v1854_v37 = vunpack.i.l.bf16 %v1853_v47  ;;  %v1050_v7 = vsel %vm1047_vm0, %v1033_v0, %v1859_v39  ;;  %v1051_v23 = vsel %vm1047_vm0, %v1034_v48, %v1860_v62 }
  0xad   : > { %1752 = vmatmul.msk.bf16.gmra.mxu2 %vm1030_vm12, %v1140_v43 }
  0xae   : > { %v1067_v38 = vsel %vm1064_vm2, %v1050_v7, %v1854_v37  ;;  %v1068_v55 = vsel %vm1064_vm2, %v1051_v23, %v1855_v1  ;;  %v1143_v1 = vpack.c.bf16 %v2414_v19, %v2407_v41 }
  0xaf   : > { %v1132_v59 = vpack.c.bf16 %v1068_v55, %v1067_v38 }
  0xb0   : > { %v1843_v42 = vpop.permute.xlu0 %1842  ;;  %v1908_v29 = vpop.permute.xlu2 %1907 }
  0xb1   : > { %v1845_v9 = vunpack.i.h.bf16 %v1843_v42  ;;  %v1844_v60 = vunpack.i.l.bf16 %v1843_v42 }
  0xb2   : > { %1334 = vmatmul.bf16.gmra.mxu0 %v1132_v59 }
  0xb3   : > { %v1873_v4 = vpop.permute.xlu1 %1872  ;;  %v1099_v18 = vsel %vm1047_vm0, %v1083_v63, %v1844_v60  ;;  %v1100_v45 = vsel %vm1047_vm0, %v1084_v32, %v1845_v9 }
  0xb4   : > { %v1115_v31 = vsel %vm1064_vm2, %v1099_v18, %v1864_v61  ;;  %v1116_v26 = vsel %vm1064_vm2, %v1100_v45, %v1865_v40  ;;  %v1875_v43 = vunpack.i.h.bf16 %v1873_v4  ;;  %v1874_v59 = vunpack.i.l.bf16 %v1873_v4 }
  0xb5   : > { %v1133_v16 = vpack.c.bf16 %v1116_v26, %v1115_v31 }
  0xb6   : > { %v1086_v4 = vsel %vm1030_vm12, %v2325_v22, %v1875_v43  ;;  %v1146_v22 = vpack.c.bf16 %v2542_v57, %v2539_v44 }
  0xb8   : > { %v1868_v15 = vpop.permute.xlu0 %1867  ;;  %1383 = vmatmul.bf16.gmra.mxu1 %v1133_v16  ;;  %v1923_v62 = vpop.permute.xlu2 %1922 }
  0xb9   : > { %v1870_v34 = vunpack.i.h.bf16 %v1868_v15  ;;  %v1869_v11 = vunpack.i.l.bf16 %v1868_v15 }
  0xbb   : > { %v1036_v39 = vsel %vm1030_vm12, %v2172_v46, %v1870_v34  ;;  %v1035_v52 = vsel %vm1030_vm12, %v2181_v49, %v1869_v11  ;;  %v1888_v17 = vpop.permute.xlu1 %1887  ;;  %v1910_v46 = vunpack.i.h.bf16 %v1908_v29  ;;  %v1909_v49 = vunpack.i.l.bf16 %v1908_v29 }
  0xbc   : > { %v1052_v48 = vsel %vm1047_vm0, %v1035_v52, %v1879_v36  ;;  %v1053_v0 = vsel %vm1047_vm0, %v1036_v39, %v1880_v50  ;;  %v1890_v3 = vunpack.i.h.bf16 %v1888_v17  ;;  %v1889_v7 = vunpack.i.l.bf16 %v1888_v17 }
  0xbd   : > { %v1069_v20 = vsel %vm1064_vm2, %v1052_v48, %v1894_v33  ;;  %v1070_v47 = vsel %vm1064_vm2, %v1053_v0, %v1895_v35  ;;  %1753 = vmatmul.msk.bf16.gmra.mxu2 %vm1030_vm12, %v1143_v1  ;;  %v1925_v34 = vunpack.i.h.bf16 %v1923_v62 }
  0xbe   : > { %v1135_v37 = vpack.c.bf16 %v1070_v47, %v1069_v20  ;;  %v1044_v40 = vsel %vm1030_vm12, %v2339_v30, %v1890_v3  ;;  %v1043_v41 = vsel %vm1030_vm12, %v2334_v28, %v1889_v7  ;;  %v1085_v30 = vsel %vm1030_vm12, %v2322_v21, %v1874_v59 }
  0xbf   : > { %v1924_v21 = vunpack.i.l.bf16 %v1923_v62 }
  0xc0   : > { %v1883_v56 = vpop.permute.xlu0 %1882  ;;  %v1938_v55 = vpop.permute.xlu2 %1937 }
  0xc1   : > { %v1885_v19 = vunpack.i.h.bf16 %v1883_v56  ;;  %v1884_v61 = vunpack.i.l.bf16 %v1883_v56  ;;  %v1940_v39 = vunpack.i.h.bf16 %v1938_v55  ;;  %v1939_v52 = vunpack.i.l.bf16 %v1938_v55 }
  0xc2   : > { %1339 = vmatmul.bf16.gmra.mxu0 %v1135_v37 }
  0xc3   : > { %v1903_v23 = vpop.permute.xlu1 %1902  ;;  %v1101_v45 = vsel %vm1047_vm0, %v1085_v30, %v1884_v61  ;;  %v1102_v31 = vsel %vm1047_vm0, %v1086_v4, %v1885_v19  ;;  %v1149_v19 = vpack.c.bf16 %v2763_v2, %v2760_v24 }
  0xc4   : > { %v1905_v27 = vunpack.i.h.bf16 %v1903_v23  ;;  %v1904_v38 = vunpack.i.l.bf16 %v1903_v23 }
  0xc6   : > { %v1060_v42 = vsel %vm1047_vm0, %v1043_v41, %v1904_v38  ;;  %v1061_v9 = vsel %vm1047_vm0, %v1044_v40, %v1905_v27 }
  0xc7   : > { %v1077_v60 = vsel %vm1064_vm2, %v1060_v42, %v1909_v49  ;;  %v1078_v32 = vsel %vm1064_vm2, %v1061_v9, %v1910_v46 }
  0xc8   : > { %v1898_v63 = vpop.permute.xlu0 %1897  ;;  %v1147_v29 = vpack.c.bf16 %v1078_v32, %v1077_v60  ;;  %v1953_v15 = vpop.permute.xlu2 %1952 }
  0xc9   : > { %v1900_v18 = vunpack.i.h.bf16 %v1898_v63  ;;  %v1899_v28 = vunpack.i.l.bf16 %v1898_v63  ;;  %v1954_v46 = vunpack.i.l.bf16 %v1953_v15 }
  0xca   : > { %1359 = vmatmul.bf16.vlgmr.msra.gmra.mxu3 %v1147_v29 }
  0xcb   : > { %v1117_v26 = vsel %vm1064_vm2, %v1101_v45, %v1899_v28  ;;  %v1118_v16 = vsel %vm1064_vm2, %v1102_v31, %v1900_v18  ;;  %v1918_v50 = vpop.permute.xlu1 %1917 }
  0xcc   : > { %v1136_v36 = vpack.c.bf16 %v1118_v16, %v1117_v26  ;;  %v1920_v49 = vunpack.i.h.bf16 %v1918_v50  ;;  %v1919_v27 = vunpack.i.l.bf16 %v1918_v50  ;;  %v722_v50 = vrot.slane %v2770_v25, 2 }
  0xcd   : > { %1754 = vmatmul.msk.bf16.gmra.mxu2 %vm1030_vm12, %v1146_v22  ;;  %v3086_v22 = vld [vmem:[#allocation4_spill] sm:$0xff] }
  0xce   : > { %1388 = vmatmul.bf16.gmra.mxu1 %v1136_v36  ;;  %v721_v36 = vrot.slane %v2766_v13, 2 }
  0xd0   : > { %v1913_v11 = vpop.permute.xlu0 %1912  ;;  %v1968_v1 = vpop.permute.xlu2 %1967 }
  0xd1   : > { %v1915_v35 = vunpack.i.h.bf16 %v1913_v11  ;;  %v1914_v33 = vunpack.i.l.bf16 %v1913_v11  ;;  %v1970_v45 = vunpack.i.h.bf16 %v1968_v1  ;;  %v1969_v31 = vunpack.i.l.bf16 %v1968_v1 }
  0xd3   : > { %v1038_v17 = vsel %vm1030_vm12, %v2293_v6, %v1915_v35  ;;  %v1037_v48 = vsel %vm1030_vm12, %v2289_v5, %v1914_v33  ;;  %v1933_v0 = vpop.permute.xlu1 %1932  ;;  %v1955_v6 = vunpack.i.h.bf16 %v1953_v15 }
  0xd4   : > { %v1054_v20 = vsel %vm1047_vm0, %v1037_v48, %v1924_v21  ;;  %v1055_v44 = vsel %vm1047_vm0, %v1038_v17, %v1925_v34  ;;  %v1935_v37 = vunpack.i.h.bf16 %v1933_v0  ;;  %v1934_v3 = vunpack.i.l.bf16 %v1933_v0 }
  0xd5   : > { %v1071_v57 = vsel %vm1064_vm2, %v1054_v20, %v1939_v52  ;;  %v1072_v62 = vsel %vm1064_vm2, %v1055_v44, %v1940_v39  ;;  %v724_v52 = vrot.slane %v2774_v58, 2  ;;  %v723_v48 = vsel %vm643_vm15, %v721_v36, %v722_v50 }
  0xd6   : > { %v1138_v47 = vpack.c.bf16 %v1072_v62, %v1071_v57  ;;  %v1046_v38 = vsel %vm1030_vm12, %v2469_v10, %v1935_v37  ;;  %v1045_v55 = vsel %vm1030_vm12, %v2464_v8, %v1934_v3  ;;  %v1088_v10 = vsel %vm1030_vm12, %v2437_v54, %v1920_v49  ;;  %v3088_v49 = vld [vmem:[#allocation5_spill] sm:$0xff] }
  0xd7   : > { %v1087_v8 = vsel %vm1030_vm12, %v2434_v51, %v1919_v27 }
  0xd8   : > { %v1928_v56 = vpop.permute.xlu0 %1927  ;;  %1344 = vmatmul.bf16.gmra.mxu0 %v1138_v47  ;;  %v1983_v32 = vpop.permute.xlu2 %1982 }
  0xd9   : > { %v1930_v43 = vunpack.i.h.bf16 %v1928_v56  ;;  %v1929_v59 = vunpack.i.l.bf16 %v1928_v56  ;;  %v1985_v44 = vunpack.i.h.bf16 %v1983_v32  ;;  %v1984_v57 = vunpack.i.l.bf16 %v1983_v32 }
  0xdb   : > { %v1948_v7 = vpop.permute.xlu1 %1947  ;;  %v1103_v24 = vsel %vm1047_vm0, %v1087_v8, %v1929_v59  ;;  %v1104_v2 = vsel %vm1047_vm0, %v1088_v10, %v1930_v43 }
  0xdc   : > { %v1950_v5 = vunpack.i.h.bf16 %v1948_v7  ;;  %v1949_v23 = vunpack.i.l.bf16 %v1948_v7 }
  0xdd   : > { %1755 = vmatmul.msk.bf16.gmra.mxu2 %vm1030_vm12, %v1149_v19  ;;  %v3089_v19 = vld [vmem:[#allocation10_spill] sm:$0xff] }
  0xde   : > { %v1062_v40 = vsel %vm1047_vm0, %v1045_v55, %v1949_v23  ;;  %v1063_v41 = vsel %vm1047_vm0, %v1046_v38, %v1950_v5  ;;  %v1093_v5 = vsel %vm1030_vm12, %v3088_v49, %v1984_v57 }
  0xdf   : > { %v1079_v61 = vsel %vm1064_vm2, %v1062_v40, %v1954_v46  ;;  %v1080_v42 = vsel %vm1064_vm2, %v1063_v41, %v1955_v6  ;;  %v3087_v6 = vld [vmem:[#allocation6_spill] sm:$0xff] }
  0xe0   : > { %v1943_v9 = vpop.permute.xlu0 %1942  ;;  %v1150_v60 = vpack.c.bf16 %v1080_v42, %v1079_v61  ;;  %v1998_v16 = vpop.permute.xlu2 %1997  ;;  %v1094_v46 = vsel %vm1030_vm12, %v3087_v6, %v1985_v44  ;;  %v3090_v42 = vld [vmem:[#allocation9_spill] sm:$0xff] }
  0xe1   : > { %v1945_v63 = vunpack.i.h.bf16 %v1943_v9  ;;  %v1944_v29 = vunpack.i.l.bf16 %v1943_v9  ;;  %v2000_v47 = vunpack.i.h.bf16 %v1998_v16  ;;  %v1999_v1 = vunpack.i.l.bf16 %v1998_v16 }
  0xe2   : > { %1364 = vmatmul.bf16.gmra.mxu3 %v1150_v60 }
  0xe3   : > { %v1119_v4 = vsel %vm1064_vm2, %v1103_v24, %v1944_v29  ;;  %v1120_v30 = vsel %vm1064_vm2, %v1104_v2, %v1945_v63  ;;  %v1963_v18 = vpop.permute.xlu1 %1962 }
  0xe4   : > { %v1139_v28 = vpack.c.bf16 %v1120_v30, %v1119_v4  ;;  %v1965_v3 = vunpack.i.h.bf16 %v1963_v18  ;;  %v1964_v7 = vunpack.i.l.bf16 %v1963_v18 }
  0xe6   : > { %1393 = vmatmul.bf16.gmra.mxu1 %v1139_v28  ;;  %v1090_v61 = vsel %vm1030_vm12, %v3089_v19, %v1965_v3  ;;  %v1089_v9 = vsel %vm1030_vm12, %v3090_v42, %v1964_v7 }
  0xe8   : > { %v1958_v54 = vpop.permute.xlu0 %1957  ;;  %v2013_v37 = vpop.permute.xlu2 %2012 }
  0xe9   : > { %v1960_v51 = vunpack.i.h.bf16 %v1958_v54  ;;  %v1959_v26 = vunpack.i.l.bf16 %v1958_v54  ;;  %v2015_v18 = vunpack.i.h.bf16 %v2013_v37  ;;  %v2014_v28 = vunpack.i.l.bf16 %v2013_v37 }
  0xeb   : > { %v1040_v15 = vsel %vm1030_vm12, %v2398_v14, %v1960_v51  ;;  %v1039_v34 = vsel %vm1030_vm12, %v3086_v22, %v1959_v26  ;;  %v1978_v21 = vpop.permute.xlu1 %1977  ;;  %v725_v14 = vsel %vm643_vm15, %v722_v50, %v724_v52  ;;  %v3092_v26 = vld [vmem:[#allocation7_spill] sm:$0xff]  ;;  %vm1576_vm15 = vcmask 254976  }
  0xec   : > { %v1980_v11 = vunpack.i.h.bf16 %v1978_v21  ;;  %v1979_v35 = vunpack.i.l.bf16 %v1978_v21  ;;  %v1056_v33 = vsel %vm1047_vm0, %v1039_v34, %v1969_v31  ;;  %v1057_v39 = vsel %vm1047_vm0, %v1040_v15, %v1970_v45  ;;  %v3091_v31 = vld [vmem:[#allocation8_spill] sm:$0xff] }
  0xed   : > { %v1152_v20 = vpack.c.bf16 %v725_v14, %v723_v48 }
  0xee   : > { %v1073_v17 = vsel %vm1064_vm2, %v1056_v33, %v1979_v35  ;;  %v1074_v25 = vsel %vm1064_vm2, %v1057_v39, %v1980_v11 }
  0xef   : > { %v1141_v13 = vpack.c.bf16 %v1074_v25, %v1073_v17  ;;  %1756 = vmatmul.msk.bf16.gmra.mxu2 %vm1030_vm12, %v1152_v20 }
  0xf0   : > { %v1973_v0 = vpop.permute.xlu0 %1972  ;;  %v2028_v4 = vpop.permute.xlu2 %2027 }
  0xf1   : > { %1349 = vmatmul.bf16.gmra.mxu0 %v1141_v13  ;;  %v1975_v23 = vunpack.i.h.bf16 %v1973_v0  ;;  %v1974_v27 = vunpack.i.l.bf16 %v1973_v0  ;;  %v2030_v17 = vunpack.i.h.bf16 %v2028_v4  ;;  %v2029_v25 = vunpack.i.l.bf16 %v2028_v4 }
  0xf3   : > { %v1993_v62 = vpop.permute.xlu1 %1992  ;;  %v1105_v10 = vsel %vm1047_vm0, %v1089_v9, %v1974_v27  ;;  %v1106_v8 = vsel %vm1047_vm0, %v1090_v61, %v1975_v23 }
  0xf4   : > { %v1995_v58 = vunpack.i.h.bf16 %v1993_v62  ;;  %v1994_v56 = vunpack.i.l.bf16 %v1993_v62 }
  0xf6   : > { %v1110_v38 = vsel %vm1047_vm0, %v1094_v46, %v1995_v58  ;;  %v1109_v55 = vsel %vm1047_vm0, %v1093_v5, %v1994_v56  ;;  %v3093_v5 = vld [vmem:[#allocation3_spill] sm:$0xff] }
  0xf7   : > { %v1125_v43 = vsel %vm1064_vm2, %v1109_v55, %v1999_v1  ;;  %v1126_v59 = vsel %vm1064_vm2, %v1110_v38, %v2000_v47  ;;  %v1096_v47 = vsel %vm1030_vm12, %v2698_v53, %v2030_v17  ;;  %v1095_v1 = vsel %vm1030_vm12, %v2695_v12, %v2029_v25  ;;  %v3094_v53 = vld [vmem:[#allocation2_spill] sm:$0xff] }
  0xf8   : > { %v1988_v40 = vpop.permute.xlu0 %1987  ;;  %v1148_v41 = vpack.c.bf16 %v1126_v59, %v1125_v43  ;;  %v2043_v52 = vpop.permute.xlu2 %2042 }
  0xf9   : > { %v1990_v60 = vunpack.i.h.bf16 %v1988_v40  ;;  %v1989_v32 = vunpack.i.l.bf16 %v1988_v40  ;;  %v2045_v48 = vunpack.i.h.bf16 %v2043_v52  ;;  %v2044_v14 = vunpack.i.l.bf16 %v2043_v52 }
  0xfa   : > { %1408 = vmatmul.bf16.vlgmr.msrb.gmra.mxu3 %v1148_v41 }
  0xfb   : > { %v1121_v63 = vsel %vm1064_vm2, %v1105_v10, %v1989_v32  ;;  %v1122_v29 = vsel %vm1064_vm2, %v1106_v8, %v1990_v60  ;;  %v2008_v24 = vpop.permute.xlu1 %2007 }
  0xfc   : > { %v1142_v2 = vpack.c.bf16 %v1122_v29, %v1121_v63  ;;  %v2010_v57 = vunpack.i.h.bf16 %v2008_v24  ;;  %v2009_v62 = vunpack.i.l.bf16 %v2008_v24 }
  0xfe   : > { %1398 = vmatmul.bf16.gmra.mxu1 %v1142_v2  ;;  %v1092_v23 = vsel %vm1030_vm12, %v3093_v5, %v2010_v57  ;;  %v1091_v27 = vsel %vm1030_vm12, %v3094_v53, %v2009_v62 }
  0xff   : > { %v1428_v22 = vpop.f32.mrf.mxu2 }
 0x100   : > { %v2003_v30 = vpop.permute.xlu0 %2002 }
 0x101   : > { %v2005_v54 = vunpack.i.h.bf16 %v2003_v30  ;;  %v2004_v45 = vunpack.i.l.bf16 %v2003_v30 }
 0x103   : > { %v1042_v51 = vsel %vm1030_vm12, %v3091_v31, %v2005_v54  ;;  %v1041_v16 = vsel %vm1030_vm12, %v3092_v26, %v2004_v45  ;;  %v2023_v50 = vpop.permute.xlu1 %2022 }
 0x104   : > { %v2025_v36 = vunpack.i.h.bf16 %v2023_v50  ;;  %v2024_v15 = vunpack.i.l.bf16 %v2023_v50  ;;  %v1058_v34 = vsel %vm1047_vm0, %v1041_v16, %v2014_v28  ;;  %v1059_v21 = vsel %vm1047_vm0, %v1042_v51, %v2015_v18 }
 0x106   : > { %v1075_v11 = vsel %vm1064_vm2, %v1058_v34, %v2024_v15  ;;  %v1076_v35 = vsel %vm1064_vm2, %v1059_v21, %v2025_v36 }
 0x107   : > { %v1144_v33 = vpack.c.bf16 %v1076_v35, %v1075_v11  ;;  %v1430_v44 = vpop.f32.mrf.mxu2 }
 0x108   : > { %v2018_v39 = vpop.permute.xlu0 %2017 }
 0x109   : > { %1354 = vmatmul.bf16.gmra.mxu0 %v1144_v33  ;;  %v2020_v58 = vunpack.i.h.bf16 %v2018_v39  ;;  %v2019_v56 = vunpack.i.l.bf16 %v2018_v39 }
 0x10b   : > { %v2038_v13 = vpop.permute.xlu1 %2037  ;;  %v1107_v55 = vsel %vm1047_vm0, %v1091_v27, %v2019_v56  ;;  %v1108_v43 = vsel %vm1047_vm0, %v1092_v23, %v2020_v58 }
 0x10c   : > { %v2040_v0 = vunpack.i.h.bf16 %v2038_v13  ;;  %v2039_v20 = vunpack.i.l.bf16 %v2038_v13 }
 0x10e   : > { %v1111_v37 = vsel %vm1047_vm0, %v1095_v1, %v2039_v20  ;;  %v1112_v3 = vsel %vm1047_vm0, %v1096_v47, %v2040_v0 }
 0x10f   : > { %v1127_v7 = vsel %vm1064_vm2, %v1111_v37, %v2044_v14  ;;  %v1128_v6 = vsel %vm1064_vm2, %v1112_v3, %v2045_v48  ;;  %v1433_v19 = vpop.f32.mrf.mxu2 }
 0x110   : > { %v2033_v46 = vpop.permute.xlu0 %2032  ;;  %v1151_v49 = vpack.c.bf16 %v1128_v6, %v1127_v7 }
 0x111   : > { %v2035_v12 = vunpack.i.h.bf16 %v2033_v46  ;;  %v2034_v38 = vunpack.i.l.bf16 %v2033_v46 }
 0x112   : > { %1413 = vmatmul.bf16.gmra.mxu3 %v1151_v49 }
 0x113   : > { %v1123_v59 = vsel %vm1064_vm2, %v1107_v55, %v2034_v38  ;;  %v1124_v40 = vsel %vm1064_vm2, %v1108_v43, %v2035_v12 }
 0x114   : > { %v1145_v41 = vpack.c.bf16 %v1124_v40, %v1123_v59 }
 0x116   : > { %1403 = vmatmul.bf16.gmra.mxu1 %v1145_v41 }
 0x117   : > { %v1435_v42 = vpop.f32.mrf.mxu2 }
 0x11f   : > { %v1330_v61 = vpop.f32.mrf.mxu0 }
 0x120   : > { %v1438_v8 = vpop.f32.mrf.mxu2 }
 0x125   : > { %v1379_v9 = vpop.f32.mrf.mxu1 }
 0x126   : > { %v1380_v60 = vadd.f32 %v1379_v9, %v1330_v61 }
 0x127   : > { %v1332_v10 = vpop.f32.mrf.mxu0 }
 0x128   : > { %v1429_v32 = vadd.f32 %v1428_v22, %v1380_v60  ;;  %v1440_v51 = vpop.f32.mrf.mxu2 }
 0x12a   : > { %1468 = vst.msk [vmem:[%s2959_s12] sm:$0xff] %vm1030_vm12, %v1429_v32  ;;  %v1521_v24 = vmul.f32 %v1429_v32, %v1429_v32  ;;  %v1484_v4 = vsel %vm1030_vm12, %v1429_v32, 0.0 }
 0x12c   : > { %v1537_v45 = vsel %vm1030_vm12, %v1521_v24, 0.0 }
 0x12d   : > { %v1381_v63 = vpop.f32.mrf.mxu1 }
 0x12e   : > { %v1382_v29 = vadd.f32 %v1381_v63, %v1332_v10 }
 0x12f   : > { %v1335_v54 = vpop.f32.mrf.mxu0 }
 0x130   : > { %v1431_v2 = vadd.f32 %v1430_v44, %v1382_v29  ;;  %v1443_v52 = vpop.f32.mrf.mxu2 }
 0x132   : > { %1469 = vst.msk [vmem:[%s2959_s12 + $0x8] sm:$0xff] %vm1030_vm12, %v1431_v2  ;;  %v1485_v30 = vsel %vm1030_vm12, %v1431_v2, 0.0  ;;  %v1522_v18 = vmul.f32 %v1431_v2, %v1431_v2 }
 0x133   : > { %v1486_v28 = vadd.f32 %v1485_v30, %v1484_v4 }
 0x134   : > { %v1538_v31 = vsel %vm1030_vm12, %v1522_v18, 0.0 }
 0x135   : > { %v1539_v26 = vadd.f32 %v1538_v31, %v1537_v45  ;;  %v1384_v16 = vpop.f32.mrf.mxu1 }
 0x136   : > { %v1385_v50 = vadd.f32 %v1384_v16, %v1335_v54 }
 0x137   : > { %v1337_v35 = vpop.f32.mrf.mxu0 }
 0x138   : > { %v1434_v36 = vadd.f32 %v1433_v19, %v1385_v50  ;;  %v1445_v20 = vpop.f32.mrf.mxu2 }
 0x13a   : > { %1470 = vst.msk [vmem:[%s2959_s12 + $0x10] sm:$0xff] %vm1030_vm12, %v1434_v36  ;;  %v1487_v15 = vsel %vm1030_vm12, %v1434_v36, 0.0  ;;  %v1523_v22 = vmul.f32 %v1434_v36, %v1434_v36 }
 0x13b   : > { %v1488_v34 = vadd.f32 %v1487_v15, %v1486_v28 }
 0x13c   : > { %v1540_v21 = vsel %vm1030_vm12, %v1523_v22, 0.0 }
 0x13d   : > { %v1541_v11 = vadd.f32 %v1540_v21, %v1539_v26  ;;  %v1386_v33 = vpop.f32.mrf.mxu1 }
 0x13e   : > { %v1387_v39 = vadd.f32 %v1386_v33, %v1337_v35 }
 0x13f   : > { %v1340_v44 = vpop.f32.mrf.mxu0 }
 0x140   : > { %v1436_v17 = vadd.f32 %v1435_v42, %v1387_v39  ;;  %v1448_v3 = vpop.f32.mrf.mxu2 }
 0x142   : > { %1471 = vst.msk [vmem:[%s2959_s12 + $0x18] sm:$0xff] %vm1030_vm12, %v1436_v17  ;;  %v1489_v25 = vsel %vm1030_vm12, %v1436_v17, 0.0  ;;  %v1524_v13 = vmul.f32 %v1436_v17, %v1436_v17 }
 0x143   : > { %v1490_v48 = vadd.f32 %v1489_v25, %v1488_v34 }
 0x144   : > { %v1542_v14 = vsel %vm1030_vm12, %v1524_v13, 0.0 }
 0x145   : > { %v1543_v0 = vadd.f32 %v1542_v14, %v1541_v11 }
 0x147   : > { %v1342_v7 = vpop.f32.mrf.mxu0 }
 0x148   : > { %v1450_v53 = vpop.f32.mrf.mxu2 }
 0x14b   : > { %v1389_v57 = vpop.f32.mrf.mxu1 }
 0x14c   : > { %v1390_v62 = vadd.f32 %v1389_v57, %v1340_v44 }
 0x14d   : > { %v1360_v23 = vpop.f32.mrf.mxu3 }
 0x14e   : > { %v1439_v47 = vadd.f32 %v1438_v8, %v1390_v62 }
 0x150   : > { %1472 = vst.msk [vmem:[%s2959_s12 + $0x20] sm:$0xff] %vm1030_vm12, %v1439_v47  ;;  %v1491_v1 = vsel %vm1030_vm12, %v1439_v47, 0.0  ;;  %v1525_v58 = vmul.f32 %v1439_v47, %v1439_v47  ;;  %v1453_v59 = vpop.f32.mrf.mxu2 }
 0x151   : > { %v1492_v56 = vadd.f32 %v1491_v1, %v1490_v48 }
 0x152   : > { %v1544_v37 = vsel %vm1030_vm12, %v1525_v58, 0.0 }
 0x153   : > { %v1545_v6 = vadd.f32 %v1544_v37, %v1543_v0  ;;  %v1391_v46 = vpop.f32.mrf.mxu1 }
 0x154   : > { %v1392_v49 = vadd.f32 %v1391_v46, %v1342_v7 }
 0x155   : > { %v1345_v27 = vpop.f32.mrf.mxu0  ;;  %v1362_v12 = vpop.f32.mrf.mxu3 }
 0x156   : > { %v1441_v5 = vadd.f32 %v1440_v51, %v1392_v49 }
 0x158   : > { %1473 = vst.msk [vmem:[%s2959_s12 + $0x28] sm:$0xff] %vm1030_vm12, %v1441_v5  ;;  %v2987_v9 = vpop.f32.mrf.mxu2  ;;  %v1526_v16 = vmul.f32 %v1441_v5, %v1441_v5  ;;  %v1493_v15 = vsel %vm1030_vm12, %v1441_v5, 0.0 }
 0x159   : > { %v1494_v33 = vadd.f32 %v1493_v15, %v1492_v56 }
 0x15a   : > { %v1546_v34 = vsel %vm1030_vm12, %v1526_v16, 0.0 }
 0x15b   : > { %v1547_v0 = vadd.f32 %v1546_v34, %v1545_v6 }
 0x15d   : > { %v1347_v40 = vpop.f32.mrf.mxu0 }
 0x160   : > { %v1458_v8 = vpop.f32.mrf.mxu2 }
 0x163   : > { %v1394_v38 = vpop.f32.mrf.mxu1 }
 0x164   : > { %v1395_v55 = vadd.f32 %v1394_v38, %v1345_v27 }
 0x165   : > { %v1365_v41 = vpop.f32.mrf.mxu3 }
 0x166   : > { %v1444_v43 = vadd.f32 %v1443_v52, %v1395_v55 }
 0x168   : > { %1474 = vst.msk [vmem:[%s2959_s12 + $0x30] sm:$0xff] %vm1030_vm12, %v1444_v43  ;;  %v1460_v45 = vpop.f32.mrf.mxu2  ;;  %v1527_v50 = vmul.f32 %v1444_v43, %v1444_v43  ;;  %v1495_v21 = vsel %vm1030_vm12, %v1444_v43, 0.0 }
 0x16a   : > { %v1548_v39 = vsel %vm1030_vm12, %v1527_v50, 0.0 }
 0x16b   : > { %v1396_v19 = vpop.f32.mrf.mxu1  ;;  %v1549_v1 = vadd.f32 %v1548_v39, %v1547_v0 }
 0x16c   : > { %v1397_v61 = vadd.f32 %v1396_v19, %v1347_v40 }
 0x16d   : > { %v2989_v60 = vpop.f32.mrf.mxu3 }
 0x16e   : > { %v1446_v42 = vadd.f32 %v1445_v20, %v1397_v61  ;;  %v1350_v32 = vpop.f32.mrf.mxu0  ;;  %v1496_v20 = vadd.f32 %v1495_v21, %v1494_v33 }
 0x170   : > { %1475 = vst.msk [vmem:[%s2959_s12 + $0x38] sm:$0xff] %vm1030_vm12, %v1446_v42  ;;  %v1528_v11 = vmul.f32 %v1446_v42, %v1446_v42  ;;  %v1497_v25 = vsel %vm1030_vm12, %v1446_v42, 0.0 }
 0x171   : > { %v1498_v58 = vadd.f32 %v1497_v25, %v1496_v20 }
 0x172   : > { %v1463_v52 = vpop.f32.mrf.mxu2  ;;  %v1550_v44 = vsel %vm1030_vm12, %v1528_v11, 0.0 }
 0x173   : > { %v1551_v7 = vadd.f32 %v1550_v44, %v1549_v1 }
 0x176   : > { %v1352_v30 = vpop.f32.mrf.mxu0 }
 0x17a   : > { %v1465_v19 = vpop.f32.mrf.mxu2 }
 0x17b   : > { %v1399_v10 = vpop.f32.mrf.mxu1 }
 0x17c   : > { %v1400_v63 = vadd.f32 %v1399_v10, %v1350_v32 }
 0x17d   : > { %v1409_v29 = vpop.f32.mrf.mxu3 }
 0x17e   : > { %v1449_v24 = vadd.f32 %v1448_v3, %v1400_v63  ;;  %v1410_v2 = vadd.f32 %v1409_v29, %v1360_v23 }
 0x180   : > { %1476 = vst.msk [vmem:[%s2959_s12 + $0x40] sm:$0xff] %vm1030_vm12, %v1449_v24  ;;  %v2993_v4 = vadd.f32 %v1458_v8, %v1410_v2  ;;  %v1529_v13 = vmul.f32 %v1449_v24, %v1449_v24  ;;  %v1499_v57 = vsel %vm1030_vm12, %v1449_v24, 0.0 }
 0x181   : > { %v1500_v6 = vadd.f32 %v1499_v57, %v1498_v58 }
 0x182   : > { %1480 = vst.msk [vmem:[%s2959_s12 + $0x60] sm:$0xff] %vm1030_vm12, %v2993_v4  ;;  %v1552_v56 = vsel %vm1030_vm12, %v1529_v13, 0.0  ;;  %v1533_v61 = vmul.f32 %v2993_v4, %v2993_v4  ;;  %v1507_v29 = vsel %vm1030_vm12, %v2993_v4, 0.0 }
 0x183   : > { %v1401_v18 = vpop.f32.mrf.mxu1  ;;  %v1553_v27 = vadd.f32 %v1552_v56, %v1551_v7 }
 0x184   : > { %v1402_v28 = vadd.f32 %v1401_v18, %v1352_v30  ;;  %v1560_v30 = vsel %vm1030_vm12, %v1533_v61, 0.0 }
 0x185   : > { %v1411_v54 = vpop.f32.mrf.mxu3 }
 0x186   : > { %v1451_v31 = vadd.f32 %v1450_v53, %v1402_v28  ;;  %v1412_v51 = vadd.f32 %v1411_v54, %v1362_v12  ;;  %v1355_v36 = vpop.f32.mrf.mxu0 }
 0x188   : > { %1477 = vst.msk [vmem:[%s2959_s12 + $0x48] sm:$0xff] %vm1030_vm12, %v1451_v31  ;;  %v1461_v26 = vadd.f32 %v1460_v45, %v1412_v51  ;;  %v1530_v62 = vmul.f32 %v1451_v31, %v1451_v31  ;;  %v1501_v37 = vsel %vm1030_vm12, %v1451_v31, 0.0 }
 0x189   : > { %v1502_v12 = vadd.f32 %v1501_v37, %v1500_v6 }
 0x18a   : > { %1481 = vst.msk [vmem:[%s2959_s12 + $0x68] sm:$0xff] %vm1030_vm12, %v1461_v26  ;;  %v1554_v5 = vsel %vm1030_vm12, %v1530_v62, 0.0  ;;  %v1509_v18 = vsel %vm1030_vm12, %v1461_v26, 0.0 }
 0x18b   : > { %v1555_v40 = vadd.f32 %v1554_v5, %v1553_v27 }
 0x18e   : > { %v1357_v46 = vpop.f32.mrf.mxu0 }
 0x193   : > { %v1404_v22 = vpop.f32.mrf.mxu1 }
 0x194   : > { %v1405_v35 = vadd.f32 %v1404_v22, %v1355_v36 }
 0x195   : > { %v1414_v17 = vpop.f32.mrf.mxu3 }
 0x196   : > { %v1454_v48 = vadd.f32 %v1453_v59, %v1405_v35  ;;  %v1415_v14 = vadd.f32 %v1414_v17, %v1365_v41 }
 0x198   : > { %1478 = vst.msk [vmem:[%s2959_s12 + $0x50] sm:$0xff] %vm1030_vm12, %v1454_v48  ;;  %v1464_v47 = vadd.f32 %v1463_v52, %v1415_v14  ;;  %v1531_v3 = vmul.f32 %v1454_v48, %v1454_v48  ;;  %v1503_v23 = vsel %vm1030_vm12, %v1454_v48, 0.0 }
 0x199   : > { %v1504_v41 = vadd.f32 %v1503_v23, %v1502_v12 }
 0x19a   : > { %1482 = vst.msk [vmem:[%s2959_s12 + $0x70] sm:$0xff] %vm1030_vm12, %v1464_v47  ;;  %v1556_v55 = vsel %vm1030_vm12, %v1531_v3, 0.0  ;;  %v1535_v28 = vmul.f32 %v1464_v47, %v1464_v47  ;;  %v1511_v51 = vsel %vm1030_vm12, %v1464_v47, 0.0 }
 0x19b   : > { %v1406_v49 = vpop.f32.mrf.mxu1  ;;  %v1557_v8 = vadd.f32 %v1556_v55, %v1555_v40 }
 0x19c   : > { %v1407_v53 = vadd.f32 %v1406_v49, %v1357_v46  ;;  %v1564_v36 = vsel %vm1030_vm12, %v1535_v28, 0.0 }
 0x19d   : > { %v1416_v38 = vpop.f32.mrf.mxu3 }
 0x19e   : > { %v1456_v43 = vadd.f32 %v2987_v9, %v1407_v53  ;;  %v1417_v59 = vadd.f32 %v1416_v38, %v2989_v60  ;;  %v1534_v9 = vmul.f32 %v1461_v26, %v1461_v26 }
 0x1a0   : > { %1479 = vst.msk [vmem:[%s2959_s12 + $0x58] sm:$0xff] %vm1030_vm12, %v1456_v43  ;;  %v1505_v42 = vsel %vm1030_vm12, %v1456_v43, 0.0  ;;  %v1532_v32 = vmul.f32 %v1456_v43, %v1456_v43  ;;  %v1466_v10 = vadd.f32 %v1465_v19, %v1417_v59  ;;  %v1562_v31 = vsel %vm1030_vm12, %v1534_v9, 0.0 }
 0x1a1   : > { %v1506_v63 = vadd.f32 %v1505_v42, %v1504_v41 }
 0x1a2   : > { %v1558_v60 = vsel %vm1030_vm12, %v1532_v32, 0.0  ;;  %1483 = vst.msk [vmem:[%s2959_s12 + $0x78] sm:$0xff] %vm1030_vm12, %v1466_v10  ;;  %v1536_v16 = vmul.f32 %v1466_v10, %v1466_v10  ;;  %v1513_v15 = vsel %vm1030_vm12, %v1466_v10, 0.0 }
 0x1a3   : > { %v1508_v24 = vadd.f32 %v1507_v29, %v1506_v63  ;;  %v1559_v2 = vadd.f32 %v1558_v60, %v1557_v8 }
 0x1a4   : > { %v1566_v21 = vsel %vm1030_vm12, %v1536_v16, 0.0 }
 0x1a5   : > { %v1561_v54 = vadd.f32 %v1560_v30, %v1559_v2  ;;  %v1510_v45 = vadd.f32 %v1509_v18, %v1508_v24 }
 0x1a7   : > { %v1512_v4 = vadd.f32 %v1511_v51, %v1510_v45  ;;  %v1563_v50 = vadd.f32 %v1562_v31, %v1561_v54 }
 0x1a9   : > { %v1514_v22 = vadd.f32 %v1513_v15, %v1512_v4  ;;  %v1565_v34 = vadd.f32 %v1564_v36, %v1563_v50 }
 0x1ab   : > { %v1515_v26 = vrot.slane %v1514_v22, 4  ;;  %v1567_v11 = vadd.f32 %v1566_v21, %v1565_v34 }
 0x1ad   : > { %v1516_v35 = vadd.f32 %v1515_v26, %v1514_v22  ;;  %v1568_v33 = vrot.slane %v1567_v11, 4 }
 0x1af   : > { %v1517_v39 = vrot.slane %v1516_v35, 2  ;;  %v1569_v52 = vadd.f32 %v1568_v33, %v1567_v11 }
 0x1b1   : > { %v1518_v17 = vadd.f32 %v1517_v39, %v1516_v35  ;;  %v1570_v25 = vrot.slane %v1569_v52, 2 }
 0x1b3   : > { %v1519_v13 = vrot.slane %v1518_v17, 1  ;;  %v1571_v48 = vadd.f32 %v1570_v25, %v1569_v52 }
 0x1b5   : > { %v1572_v14 = vrot.slane %v1571_v48, 1  ;;  %v1520_v0 = vadd.f32 %v1519_v13, %v1518_v17 }
 0x1b7   : > { %v1573_v20 = vadd.f32 %v1572_v14, %v1571_v48 }
 0x1b9   : > { %v1575_v44 = vsel %vm1574_vm1, %v1520_v0, %v1573_v20 }
 0x1ba   : > { %1577 = vst.msk [vmem:[%s235_s14] sm:$0x3] %vm1576_vm15, %v1575_v44 }
 0x1bb PF: > { %s16_s18 = sadd.s32 1, %s2054_s18  }
 0x1bc   : > { %p13_p6 = scmp.ge.s32.totalorder %s16_s18, 6  }
 0x1be   :  { %15 = sbr.rel (!%p13_p6) target bundleno = 1 (0x1), region = 78 }

</bundles_post_ra>
